<compile_context>
chip_gen: v7x
topology: tpu7x:2x2x1
jax: 0.10.0
libtpu: 0.0.40
codegen_flags: <defaults>
</compile_context>

<pallas_src>
import math
import functools

import jax
import jax.numpy as jnp
from jax.experimental import pallas as pl
from jax.experimental.pallas import tpu as pltpu


PARAM_DTYPE = jnp.bfloat16      # weights / activations stored in HBM as bf16
_VMEM_LIMIT = 32 * 1024 * 1024  # safe on v5e / v6e / v7x scoped budgets
_LN_EPS = 1e-6


def _pick_tile(dim, target, align):
    """Largest tile <= target that divides `dim` and is `align`-aligned; falls
    back to the full dimension (always legal per the (8,128) block rule)."""
    if dim <= target:
        return dim
    t = (target // align) * align
    while t >= align:
        if dim % t == 0:
            return t
        t -= align
    return dim


# ----------------------------------------------------------------------------
# Pallas kernels
# ----------------------------------------------------------------------------

def _linear_kernel(x_ref, w_ref, b_ref, *rest, activation, has_residual,
                   has_ln, eps):
    # o = act(LN?(x) @ w + b) [+ residual]; K-axis accumulation in f32 scratch.
    rest = list(rest)
    if has_ln:
        g_ref = rest.pop(0)
        beta_ref = rest.pop(0)
    if has_residual:
        r_ref = rest.pop(0)
    o_ref, acc_ref = rest

    @pl.when(pl.program_id(2) == 0)
    def _():
        acc_ref[...] = jnp.zeros_like(acc_ref)

    x = x_ref[...]
    if has_ln:
        # Annotated-Transformer LayerNorm fused as a prologue (x spans full K):
        # a2 * (x - mean) / (std + eps) + b2, UNBIASED std (ddof=1).
        xf = x.astype(jnp.float32)
        mean = jnp.mean(xf, axis=-1, keepdims=True)
        cen = xf - mean
        var = jnp.sum(cen * cen, axis=-1, keepdims=True) / float(xf.shape[-1] - 1)
        inv = pl.reciprocal(jnp.sqrt(var) + eps, approx=False)
        x = (g_ref[...].astype(jnp.float32) * cen * inv
             + beta_ref[...].astype(jnp.float32)).astype(x_ref.dtype)

    acc_ref[...] += jnp.dot(x, w_ref[...], preferred_element_type=jnp.float32)

    @pl.when(pl.program_id(2) == pl.num_programs(2) - 1)
    def _():
        y = acc_ref[...] + b_ref[...].astype(jnp.float32)
        if activation == "relu":
            y = jnp.maximum(y, 0.0)
        if has_residual:
            y = y + r_ref[...].astype(jnp.float32)
        o_ref[...] = y.astype(o_ref.dtype)


def linear2d(x, w, b, activation=None, residual=None, ln=None):
    """Tiled y = act(LN?(x) @ w + b) [+ residual]; w stored [in, out]."""
    M, K = x.shape
    N = w.shape[1]
    tm = _pick_tile(M, 512, 16)
    tn = _pick_tile(N, 512, 128)
    tk = K if ln is not None else _pick_tile(K, 512, 128)  # LN needs full row
    grid = (M // tm, N // tn, K // tk)

    in_specs = [pl.BlockSpec((tm, tk), lambda i, j, k: (i, k)),
                pl.BlockSpec((tk, tn), lambda i, j, k: (k, j)),
                pl.BlockSpec((1, tn), lambda i, j, k: (0, j))]
    args = [x, w, b]
    eps = 0.0
    if ln is not None:
        gamma, beta, eps = ln
        in_specs += [pl.BlockSpec((1, K), lambda i, j, k: (0, 0)),
                     pl.BlockSpec((1, K), lambda i, j, k: (0, 0))]
        args += [gamma, beta]
    if residual is not None:
        in_specs.append(pl.BlockSpec((tm, tn), lambda i, j, k: (i, j)))
        args.append(residual)

    return pl.pallas_call(
        functools.partial(_linear_kernel, activation=activation,
                          has_residual=residual is not None,
                          has_ln=ln is not None, eps=eps),
        out_shape=jax.ShapeDtypeStruct((M, N), x.dtype),
        grid=grid,
        in_specs=in_specs,
        out_specs=pl.BlockSpec((tm, tn), lambda i, j, k: (i, j)),
        scratch_shapes=[pltpu.VMEM((tm, tn), jnp.float32)],
        compiler_params=pltpu.CompilerParams(
            dimension_semantics=("parallel", "parallel", "arbitrary"),
            vmem_limit_bytes=_VMEM_LIMIT),
    )(*args)


def _layernorm_kernel(x_ref, g_ref, b_ref, o_ref, *, eps):
    # Standalone LayerNorm (used only for the final encoder/decoder norms).
    x = x_ref[...].astype(jnp.float32)
    mean = jnp.mean(x, axis=-1, keepdims=True)
    cen = x - mean
    var = jnp.sum(cen * cen, axis=-1, keepdims=True) / float(x.shape[-1] - 1)
    inv = pl.reciprocal(jnp.sqrt(var) + eps, approx=False)
    o_ref[...] = (g_ref[...].astype(jnp.float32) * cen * inv
                  + b_ref[...].astype(jnp.float32)).astype(o_ref.dtype)


def layernorm2d(x, gamma, beta, eps=_LN_EPS):
    M, D = x.shape
    # tm capped so larger M gives >=2 grid steps (v7x dual-TC sharding).
    tm = _pick_tile(M, 256, 16)
    return pl.pallas_call(
        functools.partial(_layernorm_kernel, eps=eps),
        out_shape=jax.ShapeDtypeStruct((M, D), x.dtype),
        grid=(M // tm,),
        in_specs=[pl.BlockSpec((tm, D), lambda i: (i, 0)),
                  pl.BlockSpec((1, D), lambda i: (0, 0)),
                  pl.BlockSpec((1, D), lambda i: (0, 0))],
        out_specs=pl.BlockSpec((tm, D), lambda i: (i, 0)),
        compiler_params=pltpu.CompilerParams(
            dimension_semantics=("parallel",),
            vmem_limit_bytes=_VMEM_LIMIT),
    )(x, gamma, beta)


def _attention_kernel(q_ref, kt_ref, v_ref, bias_ref, o_ref,
                      m_sc, l_sc, acc_sc):
    # Flash-style attention block: all heads batched in one dot_general,
    # online softmax over the kv grid axis, additive mask bias.
    ki = pl.program_id(2)

    @pl.when(ki == 0)
    def _():
        m_sc[...] = jnp.full_like(m_sc, -1e30)
        l_sc[...] = jnp.zeros_like(l_sc)
        acc_sc[...] = jnp.zeros_like(acc_sc)

    q = q_ref[0]        # [h, tq, dk]  bf16, 1/sqrt(dk) already folded in
    kt = kt_ref[0]      # [h, dk, tk]  bf16 (K pre-transposed: MXU RHS untransposed)
    v = v_ref[0]        # [h, tk, dk]  bf16
    bias = bias_ref[0]  # [1 or tq, tk] f32 additive (-1e9 where masked)

    s = jax.lax.dot_general(q, kt, (((2,), (1,)), ((0,), (0,))),
                            preferred_element_type=jnp.float32)  # [h, tq, tk]
    s = s + bias[None]

    m_prev = m_sc[...]                                            # [h, tq, 1]
    m_new = jnp.maximum(m_prev, jnp.max(s, axis=-1, keepdims=True))
    alpha = jnp.exp(m_prev - m_new)
    p = jnp.exp(s - m_new)
    l_sc[...] = alpha * l_sc[...] + jnp.sum(p, axis=-1, keepdims=True)
    acc_sc[...] = alpha * acc_sc[...] + jax.lax.dot_general(
        p.astype(v.dtype), v, (((2,), (1,)), ((0,), (0,))),
        preferred_element_type=jnp.float32)
    m_sc[...] = m_new

    @pl.when(ki == pl.num_programs(2) - 1)
    def _():
        o_ref[0] = (acc_sc[...] *
                    pl.reciprocal(l_sc[...], approx=True)).astype(o_ref.dtype)


def attention(q, kt, v, bias):
    """q: [B,h,Lq,dk], kt: [B,h,dk,Lk], v: [B,h,Lk,dk],
    bias: [B, 1 or Lq, Lk] additive mask; returns [B,h,Lq,dk]."""
    B, h, Lq, dk = q.shape
    Lk = v.shape[2]
    Lm = bias.shape[1]
    tq = _pick_tile(Lq, 256, 16)
    tk = _pick_tile(Lk, 512, 128)   # lane axis of the bias -> 128-aligned

    if Lm == 1:
        bias_spec = pl.BlockSpec((1, 1, tk), lambda b, qi, ki: (b, 0, ki))
    else:
        bias_spec = pl.BlockSpec((1, tq, tk), lambda b, qi, ki: (b, qi, ki))

    return pl.pallas_call(
        _attention_kernel,
        out_shape=jax.ShapeDtypeStruct((B, h, Lq, dk), q.dtype),
        grid=(B, Lq // tq, Lk // tk),
        in_specs=[
            pl.BlockSpec((1, h, tq, dk), lambda b, qi, ki: (b, 0, qi, 0)),
            pl.BlockSpec((1, h, dk, tk), lambda b, qi, ki: (b, 0, 0, ki)),
            pl.BlockSpec((1, h, tk, dk), lambda b, qi, ki: (b, 0, ki, 0)),
            bias_spec,
        ],
        out_specs=pl.BlockSpec((1, h, tq, dk), lambda b, qi, ki: (b, 0, qi, 0)),
        scratch_shapes=[pltpu.VMEM((h, tq, 1), jnp.float32),
                        pltpu.VMEM((h, tq, 1), jnp.float32),
                        pltpu.VMEM((h, tq, dk), jnp.float32)],
        compiler_params=pltpu.CompilerParams(
            dimension_semantics=("parallel", "parallel", "arbitrary"),
            vmem_limit_bytes=_VMEM_LIMIT),
    )(q, kt, v, bias)


# ----------------------------------------------------------------------------
# Model glue (reshapes / head-major transposes stay in plain JAX)
# ----------------------------------------------------------------------------

def apply_linear(x, w, b, activation=None, residual=None, ln=None):
    B, L, D = x.shape
    N = w.shape[1]
    r2 = None if residual is None else residual.reshape(B * L, N)
    y = linear2d(x.reshape(B * L, D), w, b, activation=activation,
                 residual=r2, ln=ln)
    return y.reshape(B, L, N)


def layer_norm(x, gamma, beta):
    B, L, D = x.shape
    return layernorm2d(x.reshape(B * L, D), gamma, beta).reshape(B, L, D)


def self_attention(p, x, bias, h, ln, residual):
    # LN fused into the QKV projection; one matmul against [D, 3D].
    B, L, D = x.shape
    dk = D // h
    scale = 1.0 / math.sqrt(dk)
    qkv = apply_linear(x, p["wqkv"], p["bqkv"], ln=ln)            # [B, L, 3D]
    qkv = qkv.reshape(B, L, 3, h, dk)
    q = (qkv[:, :, 0] * jnp.asarray(scale, qkv.dtype)).transpose(0, 2, 1, 3)
    kt = qkv[:, :, 1].transpose(0, 2, 3, 1)                       # [B, h, dk, L]
    v = qkv[:, :, 2].transpose(0, 2, 1, 3)                        # [B, h, L, dk]
    o = attention(q, kt, v, bias)                                 # [B, h, L, dk]
    o = o.transpose(0, 2, 1, 3).reshape(B, L, D)
    return apply_linear(o, p["wo"], p["bo"], residual=residual)


def cross_attention(p, x_q, memory, bias, h, ln, residual):
    # Q from decoder state (LN fused); fused K/V projection of encoder memory.
    B, Lq, D = x_q.shape
    Lk = memory.shape[1]
    dk = D // h
    scale = 1.0 / math.sqrt(dk)
    q = apply_linear(x_q, p["wq"], p["bq"], ln=ln)                # [B, Lq, D]
    kv = apply_linear(memory, p["wkv"], p["bkv"])                 # [B, Lk, 2D]
    q = (q * jnp.asarray(scale, q.dtype)).reshape(B, Lq, h, dk).transpose(0, 2, 1, 3)
    kv = kv.reshape(B, Lk, 2, h, dk)
    kt = kv[:, :, 0].transpose(0, 2, 3, 1)                        # [B, h, dk, Lk]
    v = kv[:, :, 1].transpose(0, 2, 1, 3)                         # [B, h, Lk, dk]
    o = attention(q, kt, v, bias)
    o = o.transpose(0, 2, 1, 3).reshape(B, Lq, D)
    return apply_linear(o, p["wo"], p["bo"], residual=residual)


def feed_forward(p, x, ln, residual):
    hidden = apply_linear(x, p["w1"], p["b1"], activation="relu", ln=ln)
    return apply_linear(hidden, p["w2"], p["b2"], residual=residual)


# Pre-norm residual sublayers: x + dropout(sublayer(norm(x))); dropout is
# identity in eval / p=0 -- TODO(synk): training-mode dropout not implemented.
def encoder_layer(p, x, src_bias, h):
    x = self_attention(p["self_attn"], x, src_bias, h,
                       ln=(p["ln1_g"], p["ln1_b"], _LN_EPS), residual=x)
    x = feed_forward(p["ff"], x,
                     ln=(p["ln2_g"], p["ln2_b"], _LN_EPS), residual=x)
    return x


def decoder_layer(p, x, memory, src_bias, tgt_bias, h):
    x = self_attention(p["self_attn"], x, tgt_bias, h,
                       ln=(p["ln1_g"], p["ln1_b"], _LN_EPS), residual=x)
    x = cross_attention(p["src_attn"], x, memory, src_bias, h,
                        ln=(p["ln2_g"], p["ln2_b"], _LN_EPS), residual=x)
    x = feed_forward(p["ff"], x,
                     ln=(p["ln3_g"], p["ln3_b"], _LN_EPS), residual=x)
    return x


def positional_encoding(max_len, d_model):
    pos = jnp.arange(max_len, dtype=jnp.float32)[:, None]
    div = jnp.exp(jnp.arange(0, d_model, 2, dtype=jnp.float32)
                  * -(math.log(10000.0) / d_model))
    pe = jnp.zeros((max_len, d_model), jnp.float32)
    pe = pe.at[:, 0::2].set(jnp.sin(pos * div))
    pe = pe.at[:, 1::2].set(jnp.cos(pos * div))
    return pe


def embed(tokens, table, pe):
    # Embeddings: lut(x) * sqrt(d_model), then + positional encoding.
    # d_model comes from the (static) table shape, never from traced values.
    # TODO(synk): embedding gather stays in plain JAX (no clean Pallas gather here).
    d_model = table.shape[1]
    x = jnp.take(table, tokens, axis=0).astype(jnp.float32) * math.sqrt(d_model)
    x = x + pe[None, :tokens.shape[1], :]
    return x.astype(PARAM_DTYPE)


def encode(params, source, src_bias, h):
    x = embed(source, params["src_emb"], params["pe"])
    for lp in params["enc_layers"]:
        x = encoder_layer(lp, x, src_bias, h)
    return layer_norm(x, params["enc_ln_g"], params["enc_ln_b"])


def decode(params, memory, src_bias, target, tgt_bias, h):
    x = embed(target, params["tgt_emb"], params["pe"])
    for lp in params["dec_layers"]:
        x = decoder_layer(lp, x, memory, src_bias, tgt_bias, h)
    return layer_norm(x, params["dec_ln_g"], params["dec_ln_b"])


def encoder_decoder_forward(params, source, target, source_mask, target_mask, h):
    # Additive mask biases computed ONCE and reused by every attention layer
    # (replaces per-head / per-layer compare+select on the dense mask).
    src_bias = jnp.where(source_mask == 0, -1e9, 0.0).astype(jnp.float32)
    tgt_bias = jnp.where(target_mask == 0, -1e9, 0.0).astype(jnp.float32)
    memory = encode(params, source, src_bias, h)
    out = decode(params, memory, src_bias, target, tgt_bias, h)
    return out.astype(jnp.float32)


# ----------------------------------------------------------------------------
# Deterministic parameter init (synthetic; no checkpoint load) -- bf16 storage
# ----------------------------------------------------------------------------

def init_params(key, src_vocab, tgt_vocab, d_model, d_ff, n_heads, n_layers, max_len):
    keys = iter(jax.random.split(key, 1024))

    def lin(din, dout):
        w = (jax.random.normal(next(keys), (din, dout), jnp.float32) * 0.05
             ).astype(PARAM_DTYPE)
        b = jnp.zeros((1, dout), PARAM_DTYPE)
        return w, b

    def self_attn_params():
        wqkv, bqkv = lin(d_model, 3 * d_model)
        wo, bo = lin(d_model, d_model)
        return {"wqkv": wqkv, "bqkv": bqkv, "wo": wo, "bo": bo}

    def cross_attn_params():
        wq, bq = lin(d_model, d_model)
        wkv, bkv = lin(d_model, 2 * d_model)
        wo, bo = lin(d_model, d_model)
        return {"wq": wq, "bq": bq, "wkv": wkv, "bkv": bkv, "wo": wo, "bo": bo}

    def ff_params():
        w1, b1 = lin(d_model, d_ff)
        w2, b2 = lin(d_ff, d_model)
        return {"w1": w1, "b1": b1, "w2": w2, "b2": b2}

    def ln():
        return (jnp.ones((1, d_model), PARAM_DTYPE),
                jnp.zeros((1, d_model), PARAM_DTYPE))

    enc_layers, dec_layers = [], []
    for _ in range(n_layers):
        g1, b1 = ln(); g2, b2 = ln()
        enc_layers.append({"self_attn": self_attn_params(), "ff": ff_params(),
                           "ln1_g": g1, "ln1_b": b1, "ln2_g": g2, "ln2_b": b2})
    for _ in range(n_layers):
        g1, b1 = ln(); g2, b2 = ln(); g3, b3 = ln()
        dec_layers.append({"self_attn": self_attn_params(),
                           "src_attn": cross_attn_params(), "ff": ff_params(),
                           "ln1_g": g1, "ln1_b": b1, "ln2_g": g2, "ln2_b": b2,
                           "ln3_g": g3, "ln3_b": b3})

    enc_g, enc_b = ln()
    dec_g, dec_b = ln()
    return {
        "src_emb": (jax.random.normal(next(keys), (src_vocab, d_model), jnp.float32)
                    * 0.05).astype(PARAM_DTYPE),
        "tgt_emb": (jax.random.normal(next(keys), (tgt_vocab, d_model), jnp.float32)
                    * 0.05).astype(PARAM_DTYPE),
        "pe": positional_encoding(max_len, d_model),
        "enc_layers": enc_layers,
        "dec_layers": dec_layers,
        "enc_ln_g": enc_g, "enc_ln_b": enc_b,
        "dec_ln_g": dec_g, "dec_ln_b": dec_b,
        # NOTE: `generator` (linear + log_softmax) exists in __init__ but is
        # not applied in forward(), so it is intentionally omitted here.
    }


# ----------------------------------------------------------------------------
# Main
# ----------------------------------------------------------------------------

if __name__ == "__main__":
    B = 2
    SRC_LEN = 8
    TGT_LEN = 8
    D_MODEL = 32
    D_FF = 64
    N_HEADS = 4
    N_LAYERS = 2
    SRC_VOCAB = 16
    TGT_VOCAB = 16
    MAX_LEN = 64

    root = jax.random.PRNGKey(0)
    k_params, k_src, k_tgt = jax.random.split(root, 3)

    params = init_params(k_params, SRC_VOCAB, TGT_VOCAB, D_MODEL, D_FF,
                         N_HEADS, N_LAYERS, MAX_LEN)

    source = jax.random.randint(k_src, (B, SRC_LEN), 0, SRC_VOCAB, dtype=jnp.int32)
    target = jax.random.randint(k_tgt, (B, TGT_LEN), 0, TGT_VOCAB, dtype=jnp.int32)
    source_mask = jnp.ones((B, 1, SRC_LEN), jnp.float32)
    target_mask = jnp.broadcast_to(
        jnp.tril(jnp.ones((TGT_LEN, TGT_LEN), jnp.float32))[None],
        (B, TGT_LEN, TGT_LEN))

    fwd = jax.jit(functools.partial(encoder_decoder_forward, h=N_HEADS))
    out = fwd(params, source, target, source_mask, target_mask)
    out = jax.block_until_ready(out)

    assert out.shape == (B, TGT_LEN, D_MODEL), out.shape
    assert bool(jnp.all(jnp.isfinite(out)))
    print("KERNEL_OK")
</pallas_src>

<mosaic_0001>
module attributes {stable_mosaic.version = 11 : i64} {
  func.func @_linear_kernel(%arg0: i32, %arg1: i32, %arg2: i32, %arg3: memref<16x32xbf16, #tpu.memory_space<vmem>>, %arg4: memref<32x96xbf16, #tpu.memory_space<vmem>>, %arg5: memref<1x96xbf16, #tpu.memory_space<vmem>>, %arg6: memref<1x32xbf16, #tpu.memory_space<vmem>>, %arg7: memref<1x32xbf16, #tpu.memory_space<vmem>>, %arg8: memref<16x96xbf16, #tpu.memory_space<vmem>>, %arg9: memref<16x96xf32, #tpu.memory_space<vmem>>) attributes {dimension_semantics = [#tpu.dimension_semantics<parallel>, #tpu.dimension_semantics<parallel>, #tpu.dimension_semantics<arbitrary>], iteration_bounds = array<i64: 1, 1, 1>, scalar_prefetch = 0 : i64, scratch_operands = 1 : i64, tpu.core_type = #tpu.core_type<tc>, window_params = [{transform_indices = @transform_0, window_bounds = array<i64: 16, 32>}, {transform_indices = @transform_1, window_bounds = array<i64: 32, 96>}, {transform_indices = @transform_2, window_bounds = array<i64: 1, 96>}, {pipeline_mode = #tpu.pipeline_mode<synchronous>, transform_indices = @transform_3, window_bounds = array<i64: 1, 32>}, {pipeline_mode = #tpu.pipeline_mode<synchronous>, transform_indices = @transform_4, window_bounds = array<i64: 1, 32>}, {transform_indices = @transform_5, window_bounds = array<i64: 16, 96>}]} {
    %c0_i32 = arith.constant 0 : i32
    %0 = arith.cmpi eq, %arg2, %c0_i32 : i32
    %1 = arith.extui %0 : i1 to i32
    %c0_i32_0 = arith.constant 0 : i32
    %2 = arith.cmpi ne, %1, %c0_i32_0 : i32
    scf.if %2 {
      %cst_19 = arith.constant 0.000000e+00 : f32
      %39 = vector.broadcast %cst_19 : f32 to vector<16x96xf32>
      %c0_20 = arith.constant 0 : index
      %c0_21 = arith.constant 0 : index
      %40 = vector.load %arg9[%c0_20, %c0_21] : memref<16x96xf32, #tpu.memory_space<vmem>>, vector<16x96xf32>
      tpu.vector_store %arg9[%c0_20, %c0_21], %39 {strides = array<i32>} : memref<16x96xf32, #tpu.memory_space<vmem>>, vector<16x96xf32>,
    } else {
    }
    %c0 = arith.constant 0 : index
    %c0_1 = arith.constant 0 : index
    %3 = vector.load %arg3[%c0, %c0_1] : memref<16x32xbf16, #tpu.memory_space<vmem>>, vector<16x32xbf16>
    %4 = arith.extf %3 : vector<16x32xbf16> to vector<16x32xf32>
    %cst = arith.constant dense<0.000000e+00> : vector<16xf32>
    %5 = vector.multi_reduction <add>, %4, %cst [1] : vector<16x32xf32> to vector<16xf32>
    %6 = vector.shape_cast %5 : vector<16xf32> to vector<16x1xf32>
    %cst_2 = arith.constant 3.200000e+01 : f32
    %7 = vector.broadcast %cst_2 : f32 to vector<16x1xf32>
    %8 = arith.divf %6, %7 : vector<16x1xf32>
    %9 = vector.broadcast %8 : vector<16x1xf32> to vector<16x32xf32>
    %10 = arith.subf %4, %9 : vector<16x32xf32>
    %11 = arith.mulf %10, %10 : vector<16x32xf32>
    %cst_3 = arith.constant dense<0.000000e+00> : vector<16xf32>
    %12 = vector.multi_reduction <add>, %11, %cst_3 [1] : vector<16x32xf32> to vector<16xf32>
    %13 = vector.shape_cast %12 : vector<16xf32> to vector<16x1xf32>
    %cst_4 = arith.constant 3.100000e+01 : f32
    %14 = vector.broadcast %cst_4 : f32 to vector<16x1xf32>
    %15 = arith.divf %13, %14 : vector<16x1xf32>
    %16 = math.sqrt %15 : vector<16x1xf32>
    %cst_5 = arith.constant 9.99999997E-7 : f32
    %17 = vector.broadcast %cst_5 : f32 to vector<16x1xf32>
    %18 = arith.addf %16, %17 : vector<16x1xf32>
    %19 = tpu.reciprocal %18 : vector<16x1xf32> -> vector<16x1xf32>
    %c0_6 = arith.constant 0 : index
    %c0_7 = arith.constant 0 : index
    %20 = vector.load %arg6[%c0_6, %c0_7] : memref<1x32xbf16, #tpu.memory_space<vmem>>, vector<1x32xbf16>
    %21 = arith.extf %20 : vector<1x32xbf16> to vector<1x32xf32>
    %22 = vector.broadcast %21 : vector<1x32xf32> to vector<16x32xf32>
    %23 = arith.mulf %22, %10 : vector<16x32xf32>
    %24 = vector.broadcast %19 : vector<16x1xf32> to vector<16x32xf32>
    %25 = arith.mulf %23, %24 : vector<16x32xf32>
    %c0_8 = arith.constant 0 : index
    %c0_9 = arith.constant 0 : index
    %26 = vector.load %arg7[%c0_8, %c0_9] : memref<1x32xbf16, #tpu.memory_space<vmem>>, vector<1x32xbf16>
    %27 = arith.extf %26 : vector<1x32xbf16> to vector<1x32xf32>
    %28 = vector.broadcast %27 : vector<1x32xf32> to vector<16x32xf32>
    %29 = arith.addf %25, %28 : vector<16x32xf32>
    %30 = arith.truncf %29 : vector<16x32xf32> to vector<16x32xbf16>
    %c0_10 = arith.constant 0 : index
    %c0_11 = arith.constant 0 : index
    %31 = vector.load %arg9[%c0_10, %c0_11] : memref<16x96xf32, #tpu.memory_space<vmem>>, vector<16x96xf32>
    %c0_12 = arith.constant 0 : index
    %c0_13 = arith.constant 0 : index
    %32 = vector.load %arg4[%c0_12, %c0_13] : memref<32x96xbf16, #tpu.memory_space<vmem>>, vector<32x96xbf16>
    %cst_14 = arith.constant dense<0.000000e+00> : vector<16x96xf32>
    %33 = tpu.matmul %30, %32, %cst_14 {dimension_numbers = #tpu.dot_dimension_numbers<[1], [0], [0], [1], [0, 0, 1, 1], [], []>} : vector<16x32xbf16>, vector<32x96xbf16>, vector<16x96xf32> -> vector<16x96xf32>
    %34 = arith.addf %31, %33 : vector<16x96xf32>
    %c0_15 = arith.constant 0 : index
    %c0_16 = arith.constant 0 : index
    %35 = vector.load %arg9[%c0_15, %c0_16] : memref<16x96xf32, #tpu.memory_space<vmem>>, vector<16x96xf32>
    tpu.vector_store %arg9[%c0_15, %c0_16], %34 {strides = array<i32>} : memref<16x96xf32, #tpu.memory_space<vmem>>, vector<16x96xf32>,
    %c0_i32_17 = arith.constant 0 : i32
    %36 = arith.cmpi eq, %arg2, %c0_i32_17 : i32
    %37 = arith.extui %36 : i1 to i32
    %c0_i32_18 = arith.constant 0 : i32
    %38 = arith.cmpi ne, %37, %c0_i32_18 : i32
    scf.if %38 {
      %c0_19 = arith.constant 0 : index
      %c0_20 = arith.constant 0 : index
      %39 = vector.load %arg9[%c0_19, %c0_20] : memref<16x96xf32, #tpu.memory_space<vmem>>, vector<16x96xf32>
      %c0_21 = arith.constant 0 : index
      %c0_22 = arith.constant 0 : index
      %40 = vector.load %arg5[%c0_21, %c0_22] : memref<1x96xbf16, #tpu.memory_space<vmem>>, vector<1x96xbf16>
      %41 = arith.extf %40 : vector<1x96xbf16> to vector<1x96xf32>
      %42 = vector.broadcast %41 : vector<1x96xf32> to vector<16x96xf32>
      %43 = arith.addf %39, %42 : vector<16x96xf32>
      %44 = arith.truncf %43 : vector<16x96xf32> to vector<16x96xbf16>
      %c0_23 = arith.constant 0 : index
      %c0_24 = arith.constant 0 : index
      %45 = vector.load %arg8[%c0_23, %c0_24] : memref<16x96xbf16, #tpu.memory_space<vmem>>, vector<16x96xbf16>
      tpu.vector_store %arg8[%c0_23, %c0_24], %44 {strides = array<i32>} : memref<16x96xbf16, #tpu.memory_space<vmem>>, vector<16x96xbf16>,
    } else {
    }
    return
  }
  func.func @transform_0(%arg0: i32, %arg1: i32, %arg2: i32) -> (i32, i32) {
    %c0_i32 = arith.constant 0 : i32
    return %arg0, %arg2 : i32, i32
  }
  func.func @transform_1(%arg0: i32, %arg1: i32, %arg2: i32) -> (i32, i32) {
    %c0_i32 = arith.constant 0 : i32
    return %arg2, %arg1 : i32, i32
  }
  func.func @transform_2(%arg0: i32, %arg1: i32, %arg2: i32) -> (i32, i32) {
    %c0_i32 = arith.constant 0 : i32
    %c0_i32_0 = arith.constant 0 : i32
    return %c0_i32, %arg1 : i32, i32
  }
  func.func @transform_3(%arg0: i32, %arg1: i32, %arg2: i32) -> (i32, i32) {
    %c0_i32 = arith.constant 0 : i32
    %c0_i32_0 = arith.constant 0 : i32
    %c0_i32_1 = arith.constant 0 : i32
    return %c0_i32, %c0_i32_0 : i32, i32
  }
  func.func @transform_4(%arg0: i32, %arg1: i32, %arg2: i32) -> (i32, i32) {
    %c0_i32 = arith.constant 0 : i32
    %c0_i32_0 = arith.constant 0 : i32
    %c0_i32_1 = arith.constant 0 : i32
    return %c0_i32, %c0_i32_0 : i32, i32
  }
  func.func @transform_5(%arg0: i32, %arg1: i32, %arg2: i32) -> (i32, i32) {
    %c0_i32 = arith.constant 0 : i32
    return %arg0, %arg1 : i32, i32
  }
}

module attributes {stable_mosaic.version = 11 : i64} {
  func.func @_linear_kernel(%arg0: i32, %arg1: i32, %arg2: i32, %arg3: memref<16x32xbf16, #tpu.memory_space<vmem>>, %arg4: memref<32x32xbf16, #tpu.memory_space<vmem>>, %arg5: memref<1x32xbf16, #tpu.memory_space<vmem>>, %arg6: memref<16x32xbf16, #tpu.memory_space<vmem>>, %arg7: memref<16x32xbf16, #tpu.memory_space<vmem>>, %arg8: memref<16x32xf32, #tpu.memory_space<vmem>>) attributes {dimension_semantics = [#tpu.dimension_semantics<parallel>, #tpu.dimension_semantics<parallel>, #tpu.dimension_semantics<arbitrary>], iteration_bounds = array<i64: 1, 1, 1>, scalar_prefetch = 0 : i64, scratch_operands = 1 : i64, tpu.core_type = #tpu.core_type<tc>, window_params = [{transform_indices = @transform_0, window_bounds = array<i64: 16, 32>}, {transform_indices = @transform_1, window_bounds = array<i64: 32, 32>}, {transform_indices = @transform_2, window_bounds = array<i64: 1, 32>}, {transform_indices = @transform_3, window_bounds = array<i64: 16, 32>}, {transform_indices = @transform_4, window_bounds = array<i64: 16, 32>}]} {
    %c0_i32 = arith.constant 0 : i32
    %0 = arith.cmpi eq, %arg2, %c0_i32 : i32
    %1 = arith.extui %0 : i1 to i32
    %c0_i32_0 = arith.constant 0 : i32
    %2 = arith.cmpi ne, %1, %c0_i32_0 : i32
    scf.if %2 {
      %cst_10 = arith.constant 0.000000e+00 : f32
      %12 = vector.broadcast %cst_10 : f32 to vector<16x32xf32>
      %c0_11 = arith.constant 0 : index
      %c0_12 = arith.constant 0 : index
      %13 = vector.load %arg8[%c0_11, %c0_12] : memref<16x32xf32, #tpu.memory_space<vmem>>, vector<16x32xf32>
      tpu.vector_store %arg8[%c0_11, %c0_12], %12 {strides = array<i32>} : memref<16x32xf32, #tpu.memory_space<vmem>>, vector<16x32xf32>,
    } else {
    }
    %c0 = arith.constant 0 : index
    %c0_1 = arith.constant 0 : index
    %3 = vector.load %arg3[%c0, %c0_1] : memref<16x32xbf16, #tpu.memory_space<vmem>>, vector<16x32xbf16>
    %c0_2 = arith.constant 0 : index
    %c0_3 = arith.constant 0 : index
    %4 = vector.load %arg8[%c0_2, %c0_3] : memref<16x32xf32, #tpu.memory_space<vmem>>, vector<16x32xf32>
    %c0_4 = arith.constant 0 : index
    %c0_5 = arith.constant 0 : index
    %5 = vector.load %arg4[%c0_4, %c0_5] : memref<32x32xbf16, #tpu.memory_space<vmem>>, vector<32x32xbf16>
    %cst = arith.constant dense<0.000000e+00> : vector<16x32xf32>
    %6 = tpu.matmul %3, %5, %cst {dimension_numbers = #tpu.dot_dimension_numbers<[1], [0], [0], [1], [0, 0, 1, 1], [], []>} : vector<16x32xbf16>, vector<32x32xbf16>, vector<16x32xf32> -> vector<16x32xf32>
    %7 = arith.addf %4, %6 : vector<16x32xf32>
    %c0_6 = arith.constant 0 : index
    %c0_7 = arith.constant 0 : index
    %8 = vector.load %arg8[%c0_6, %c0_7] : memref<16x32xf32, #tpu.memory_space<vmem>>, vector<16x32xf32>
    tpu.vector_store %arg8[%c0_6, %c0_7], %7 {strides = array<i32>} : memref<16x32xf32, #tpu.memory_space<vmem>>, vector<16x32xf32>,
    %c0_i32_8 = arith.constant 0 : i32
    %9 = arith.cmpi eq, %arg2, %c0_i32_8 : i32
    %10 = arith.extui %9 : i1 to i32
    %c0_i32_9 = arith.constant 0 : i32
    %11 = arith.cmpi ne, %10, %c0_i32_9 : i32
    scf.if %11 {
      %c0_10 = arith.constant 0 : index
      %c0_11 = arith.constant 0 : index
      %12 = vector.load %arg8[%c0_10, %c0_11] : memref<16x32xf32, #tpu.memory_space<vmem>>, vector<16x32xf32>
      %c0_12 = arith.constant 0 : index
      %c0_13 = arith.constant 0 : index
      %13 = vector.load %arg5[%c0_12, %c0_13] : memref<1x32xbf16, #tpu.memory_space<vmem>>, vector<1x32xbf16>
      %14 = arith.extf %13 : vector<1x32xbf16> to vector<1x32xf32>
      %15 = vector.broadcast %14 : vector<1x32xf32> to vector<16x32xf32>
      %16 = arith.addf %12, %15 : vector<16x32xf32>
      %c0_14 = arith.constant 0 : index
      %c0_15 = arith.constant 0 : index
      %17 = vector.load %arg6[%c0_14, %c0_15] : memref<16x32xbf16, #tpu.memory_space<vmem>>, vector<16x32xbf16>
      %18 = arith.extf %17 : vector<16x32xbf16> to vector<16x32xf32>
      %19 = arith.addf %16, %18 : vector<16x32xf32>
      %20 = arith.truncf %19 : vector<16x32xf32> to vector<16x32xbf16>
      %c0_16 = arith.constant 0 : index
      %c0_17 = arith.constant 0 : index
      %21 = vector.load %arg7[%c0_16, %c0_17] : memref<16x32xbf16, #tpu.memory_space<vmem>>, vector<16x32xbf16>
      tpu.vector_store %arg7[%c0_16, %c0_17], %20 {strides = array<i32>} : memref<16x32xbf16, #tpu.memory_space<vmem>>, vector<16x32xbf16>,
    } else {
    }
    return
  }
  func.func @transform_0(%arg0: i32, %arg1: i32, %arg2: i32) -> (i32, i32) {
    %c0_i32 = arith.constant 0 : i32
    return %arg0, %arg2 : i32, i32
  }
  func.func @transform_1(%arg0: i32, %arg1: i32, %arg2: i32) -> (i32, i32) {
    %c0_i32 = arith.constant 0 : i32
    return %arg2, %arg1 : i32, i32
  }
  func.func @transform_2(%arg0: i32, %arg1: i32, %arg2: i32) -> (i32, i32) {
    %c0_i32 = arith.constant 0 : i32
    %c0_i32_0 = arith.constant 0 : i32
    return %c0_i32, %arg1 : i32, i32
  }
  func.func @transform_3(%arg0: i32, %arg1: i32, %arg2: i32) -> (i32, i32) {
    %c0_i32 = arith.constant 0 : i32
    return %arg0, %arg1 : i32, i32
  }
  func.func @transform_4(%arg0: i32, %arg1: i32, %arg2: i32) -> (i32, i32) {
    %c0_i32 = arith.constant 0 : i32
    return %arg0, %arg1 : i32, i32
  }
}

module attributes {stable_mosaic.version = 11 : i64} {
  func.func @_attention_kernel(%arg0: i32, %arg1: i32, %arg2: i32, %arg3: memref<1x4x8x8xbf16, #tpu.memory_space<vmem>>, %arg4: memref<1x4x8x8xbf16, #tpu.memory_space<vmem>>, %arg5: memref<1x4x8x8xbf16, #tpu.memory_space<vmem>>, %arg6: memref<1x8x8xf32, #tpu.memory_space<vmem>>, %arg7: memref<1x4x8x8xbf16, #tpu.memory_space<vmem>>, %arg8: memref<4x8x1xf32, #tpu.memory_space<vmem>>, %arg9: memref<4x8x1xf32, #tpu.memory_space<vmem>>, %arg10: memref<4x8x8xf32, #tpu.memory_space<vmem>>) attributes {dimension_semantics = [#tpu.dimension_semantics<parallel>, #tpu.dimension_semantics<parallel>, #tpu.dimension_semantics<arbitrary>], iteration_bounds = array<i64: 2, 1, 1>, scalar_prefetch = 0 : i64, scratch_operands = 3 : i64, tpu.core_type = #tpu.core_type<tc>, window_params = [{transform_indices = @transform_0, window_bounds = array<i64: 1, 4, 8, 8>}, {transform_indices = @transform_1, window_bounds = array<i64: 1, 4, 8, 8>}, {transform_indices = @transform_2, window_bounds = array<i64: 1, 4, 8, 8>}, {transform_indices = @transform_3, window_bounds = array<i64: 1, 8, 8>}, {transform_indices = @transform_4, window_bounds = array<i64: 1, 4, 8, 8>}]} {
    %c0_i32 = arith.constant 0 : i32
    %0 = arith.cmpi eq, %arg2, %c0_i32 : i32
    %1 = arith.extui %0 : i1 to i32
    %c0_i32_0 = arith.constant 0 : i32
    %2 = arith.cmpi ne, %1, %c0_i32_0 : i32
    scf.if %2 {
      %cst_38 = arith.constant -1.000000e+30 : f32
      %41 = vector.broadcast %cst_38 : f32 to vector<4x8x1xf32>
      %c0_39 = arith.constant 0 : index
      %c0_40 = arith.constant 0 : index
      %c0_41 = arith.constant 0 : index
      %42 = vector.load %arg8[%c0_39, %c0_40, %c0_41] : memref<4x8x1xf32, #tpu.memory_space<vmem>>, vector<4x8x1xf32>
      tpu.vector_store %arg8[%c0_39, %c0_40, %c0_41], %41 {strides = array<i32>} : memref<4x8x1xf32, #tpu.memory_space<vmem>>, vector<4x8x1xf32>,
      %cst_42 = arith.constant 0.000000e+00 : f32
      %43 = vector.broadcast %cst_42 : f32 to vector<4x8x1xf32>
      %c0_43 = arith.constant 0 : index
      %c0_44 = arith.constant 0 : index
      %c0_45 = arith.constant 0 : index
      %44 = vector.load %arg9[%c0_43, %c0_44, %c0_45] : memref<4x8x1xf32, #tpu.memory_space<vmem>>, vector<4x8x1xf32>
      tpu.vector_store %arg9[%c0_43, %c0_44, %c0_45], %43 {strides = array<i32>} : memref<4x8x1xf32, #tpu.memory_space<vmem>>, vector<4x8x1xf32>,
      %cst_46 = arith.constant 0.000000e+00 : f32
      %45 = vector.broadcast %cst_46 : f32 to vector<4x8x8xf32>
      %c0_47 = arith.constant 0 : index
      %c0_48 = arith.constant 0 : index
      %c0_49 = arith.constant 0 : index
      %46 = vector.load %arg10[%c0_47, %c0_48, %c0_49] : memref<4x8x8xf32, #tpu.memory_space<vmem>>, vector<4x8x8xf32>
      tpu.vector_store %arg10[%c0_47, %c0_48, %c0_49], %45 {strides = array<i32>} : memref<4x8x8xf32, #tpu.memory_space<vmem>>, vector<4x8x8xf32>,
    } else {
    }
    %c0 = arith.constant 0 : index
    %c0_1 = arith.constant 0 : index
    %c0_2 = arith.constant 0 : index
    %c0_3 = arith.constant 0 : index
    %3 = vector.load %arg3[%c0, %c0_1, %c0_2, %c0_3] : memref<1x4x8x8xbf16, #tpu.memory_space<vmem>>, vector<1x4x8x8xbf16>
    %4 = vector.shape_cast %3 : vector<1x4x8x8xbf16> to vector<4x8x8xbf16>
    %c0_4 = arith.constant 0 : index
    %c0_5 = arith.constant 0 : index
    %c0_6 = arith.constant 0 : index
    %c0_7 = arith.constant 0 : index
    %5 = vector.load %arg4[%c0_4, %c0_5, %c0_6, %c0_7] : memref<1x4x8x8xbf16, #tpu.memory_space<vmem>>, vector<1x4x8x8xbf16>
    %6 = vector.shape_cast %5 : vector<1x4x8x8xbf16> to vector<4x8x8xbf16>
    %c0_8 = arith.constant 0 : index
    %c0_9 = arith.constant 0 : index
    %c0_10 = arith.constant 0 : index
    %c0_11 = arith.constant 0 : index
    %7 = vector.load %arg5[%c0_8, %c0_9, %c0_10, %c0_11] : memref<1x4x8x8xbf16, #tpu.memory_space<vmem>>, vector<1x4x8x8xbf16>
    %8 = vector.shape_cast %7 : vector<1x4x8x8xbf16> to vector<4x8x8xbf16>
    %c0_12 = arith.constant 0 : index
    %c0_13 = arith.constant 0 : index
    %c0_14 = arith.constant 0 : index
    %9 = vector.load %arg6[%c0_12, %c0_13, %c0_14] : memref<1x8x8xf32, #tpu.memory_space<vmem>>, vector<1x8x8xf32>
    %10 = vector.shape_cast %9 : vector<1x8x8xf32> to vector<8x8xf32>
    %cst = arith.constant dense<0.000000e+00> : vector<4x8x8xf32>
    %11 = tpu.matmul %4, %6, %cst {dimension_numbers = #tpu.dot_dimension_numbers<[2], [1], [1], [2], [0, 0, 0, 1, 1, 2], [0], [0]>} : vector<4x8x8xbf16>, vector<4x8x8xbf16>, vector<4x8x8xf32> -> vector<4x8x8xf32>
    %12 = vector.shape_cast %10 : vector<8x8xf32> to vector<1x8x8xf32>
    %13 = vector.broadcast %12 : vector<1x8x8xf32> to vector<4x8x8xf32>
    %14 = arith.addf %11, %13 : vector<4x8x8xf32>
    %c0_15 = arith.constant 0 : index
    %c0_16 = arith.constant 0 : index
    %c0_17 = arith.constant 0 : index
    %15 = vector.load %arg8[%c0_15, %c0_16, %c0_17] : memref<4x8x1xf32, #tpu.memory_space<vmem>>, vector<4x8x1xf32>
    %cst_18 = arith.constant dense<0xFF800000> : vector<4x8xf32>
    %16 = vector.multi_reduction <maximumf>, %14, %cst_18 [2] : vector<4x8x8xf32> to vector<4x8xf32>
    %17 = vector.shape_cast %16 : vector<4x8xf32> to vector<4x8x1xf32>
    %18 = arith.maximumf %15, %17 : vector<4x8x1xf32>
    %19 = arith.subf %15, %18 : vector<4x8x1xf32>
    %20 = math.exp %19 : vector<4x8x1xf32>
    %21 = vector.broadcast %18 : vector<4x8x1xf32> to vector<4x8x8xf32>
    %22 = arith.subf %14, %21 : vector<4x8x8xf32>
    %23 = math.exp %22 : vector<4x8x8xf32>
    %c0_19 = arith.constant 0 : index
    %c0_20 = arith.constant 0 : index
    %c0_21 = arith.constant 0 : index
    %24 = vector.load %arg9[%c0_19, %c0_20, %c0_21] : memref<4x8x1xf32, #tpu.memory_space<vmem>>, vector<4x8x1xf32>
    %25 = arith.mulf %20, %24 : vector<4x8x1xf32>
    %cst_22 = arith.constant dense<0.000000e+00> : vector<4x8xf32>
    %26 = vector.multi_reduction <add>, %23, %cst_22 [2] : vector<4x8x8xf32> to vector<4x8xf32>
    %27 = vector.shape_cast %26 : vector<4x8xf32> to vector<4x8x1xf32>
    %28 = arith.addf %25, %27 : vector<4x8x1xf32>
    %c0_23 = arith.constant 0 : index
    %c0_24 = arith.constant 0 : index
    %c0_25 = arith.constant 0 : index
    %29 = vector.load %arg9[%c0_23, %c0_24, %c0_25] : memref<4x8x1xf32, #tpu.memory_space<vmem>>, vector<4x8x1xf32>
    tpu.vector_store %arg9[%c0_23, %c0_24, %c0_25], %28 {strides = array<i32>} : memref<4x8x1xf32, #tpu.memory_space<vmem>>, vector<4x8x1xf32>,
    %c0_26 = arith.constant 0 : index
    %c0_27 = arith.constant 0 : index
    %c0_28 = arith.constant 0 : index
    %30 = vector.load %arg10[%c0_26, %c0_27, %c0_28] : memref<4x8x8xf32, #tpu.memory_space<vmem>>, vector<4x8x8xf32>
    %31 = vector.broadcast %20 : vector<4x8x1xf32> to vector<4x8x8xf32>
    %32 = arith.mulf %31, %30 : vector<4x8x8xf32>
    %33 = arith.truncf %23 : vector<4x8x8xf32> to vector<4x8x8xbf16>
    %cst_29 = arith.constant dense<0.000000e+00> : vector<4x8x8xf32>
    %34 = tpu.matmul %33, %8, %cst_29 {dimension_numbers = #tpu.dot_dimension_numbers<[2], [1], [1], [2], [0, 0, 0, 1, 1, 2], [0], [0]>} : vector<4x8x8xbf16>, vector<4x8x8xbf16>, vector<4x8x8xf32> -> vector<4x8x8xf32>
    %35 = arith.addf %32, %34 : vector<4x8x8xf32>
    %c0_30 = arith.constant 0 : index
    %c0_31 = arith.constant 0 : index
    %c0_32 = arith.constant 0 : index
    %36 = vector.load %arg10[%c0_30, %c0_31, %c0_32] : memref<4x8x8xf32, #tpu.memory_space<vmem>>, vector<4x8x8xf32>
    tpu.vector_store %arg10[%c0_30, %c0_31, %c0_32], %35 {strides = array<i32>} : memref<4x8x8xf32, #tpu.memory_space<vmem>>, vector<4x8x8xf32>,
    %c0_33 = arith.constant 0 : index
    %c0_34 = arith.constant 0 : index
    %c0_35 = arith.constant 0 : index
    %37 = vector.load %arg8[%c0_33, %c0_34, %c0_35] : memref<4x8x1xf32, #tpu.memory_space<vmem>>, vector<4x8x1xf32>
    tpu.vector_store %arg8[%c0_33, %c0_34, %c0_35], %18 {strides = array<i32>} : memref<4x8x1xf32, #tpu.memory_space<vmem>>, vector<4x8x1xf32>,
    %c0_i32_36 = arith.constant 0 : i32
    %38 = arith.cmpi eq, %arg2, %c0_i32_36 : i32
    %39 = arith.extui %38 : i1 to i32
    %c0_i32_37 = arith.constant 0 : i32
    %40 = arith.cmpi ne, %39, %c0_i32_37 : i32
    scf.if %40 {
      %c0_38 = arith.constant 0 : index
      %c0_39 = arith.constant 0 : index
      %c0_40 = arith.constant 0 : index
      %41 = vector.load %arg10[%c0_38, %c0_39, %c0_40] : memref<4x8x8xf32, #tpu.memory_space<vmem>>, vector<4x8x8xf32>
      %c0_41 = arith.constant 0 : index
      %c0_42 = arith.constant 0 : index
      %c0_43 = arith.constant 0 : index
      %42 = vector.load %arg9[%c0_41, %c0_42, %c0_43] : memref<4x8x1xf32, #tpu.memory_space<vmem>>, vector<4x8x1xf32>
      %43 = tpu.reciprocal %42 {approx = true} : vector<4x8x1xf32> -> vector<4x8x1xf32>
      %44 = vector.broadcast %43 : vector<4x8x1xf32> to vector<4x8x8xf32>
      %45 = arith.mulf %41, %44 : vector<4x8x8xf32>
      %46 = arith.truncf %45 : vector<4x8x8xf32> to vector<4x8x8xbf16>
      %c0_44 = arith.constant 0 : index
      %c0_45 = arith.constant 0 : index
      %c0_46 = arith.constant 0 : index
      %c0_47 = arith.constant 0 : index
      %47 = vector.load %arg7[%c0_44, %c0_45, %c0_46, %c0_47] : memref<1x4x8x8xbf16, #tpu.memory_space<vmem>>, vector<1x4x8x8xbf16>
      %48 = vector.shape_cast %47 : vector<1x4x8x8xbf16> to vector<4x8x8xbf16>
      %49 = vector.shape_cast %46 : vector<4x8x8xbf16> to vector<1x4x8x8xbf16>
      tpu.vector_store %arg7[%c0_44, %c0_45, %c0_46, %c0_47], %49 {strides = array<i32>} : memref<1x4x8x8xbf16, #tpu.memory_space<vmem>>, vector<1x4x8x8xbf16>,
    } else {
    }
    return
  }
  func.func @transform_0(%arg0: i32, %arg1: i32, %arg2: i32) -> (i32, i32, i32, i32) {
    %c0_i32 = arith.constant 0 : i32
    %c0_i32_0 = arith.constant 0 : i32
    %c0_i32_1 = arith.constant 0 : i32
    return %arg0, %c0_i32, %arg1, %c0_i32_0 : i32, i32, i32, i32
  }
  func.func @transform_1(%arg0: i32, %arg1: i32, %arg2: i32) -> (i32, i32, i32, i32) {
    %c0_i32 = arith.constant 0 : i32
    %c0_i32_0 = arith.constant 0 : i32
    %c0_i32_1 = arith.constant 0 : i32
    return %arg0, %c0_i32, %c0_i32_0, %arg2 : i32, i32, i32, i32
  }
  func.func @transform_2(%arg0: i32, %arg1: i32, %arg2: i32) -> (i32, i32, i32, i32) {
    %c0_i32 = arith.constant 0 : i32
    %c0_i32_0 = arith.constant 0 : i32
    %c0_i32_1 = arith.constant 0 : i32
    return %arg0, %c0_i32, %arg2, %c0_i32_0 : i32, i32, i32, i32
  }
  func.func @transform_3(%arg0: i32, %arg1: i32, %arg2: i32) -> (i32, i32, i32) {
    %c0_i32 = arith.constant 0 : i32
    return %arg0, %arg1, %arg2 : i32, i32, i32
  }
  func.func @transform_4(%arg0: i32, %arg1: i32, %arg2: i32) -> (i32, i32, i32, i32) {
    %c0_i32 = arith.constant 0 : i32
    %c0_i32_0 = arith.constant 0 : i32
    %c0_i32_1 = arith.constant 0 : i32
    return %arg0, %c0_i32, %arg1, %c0_i32_0 : i32, i32, i32, i32
  }
}

module attributes {stable_mosaic.version = 11 : i64} {
  func.func @_linear_kernel(%arg0: i32, %arg1: i32, %arg2: i32, %arg3: memref<16x32xbf16, #tpu.memory_space<vmem>>, %arg4: memref<32x32xbf16, #tpu.memory_space<vmem>>, %arg5: memref<1x32xbf16, #tpu.memory_space<vmem>>, %arg6: memref<1x32xbf16, #tpu.memory_space<vmem>>, %arg7: memref<1x32xbf16, #tpu.memory_space<vmem>>, %arg8: memref<16x32xbf16, #tpu.memory_space<vmem>>, %arg9: memref<16x32xf32, #tpu.memory_space<vmem>>) attributes {dimension_semantics = [#tpu.dimension_semantics<parallel>, #tpu.dimension_semantics<parallel>, #tpu.dimension_semantics<arbitrary>], iteration_bounds = array<i64: 1, 1, 1>, scalar_prefetch = 0 : i64, scratch_operands = 1 : i64, tpu.core_type = #tpu.core_type<tc>, window_params = [{transform_indices = @transform_0, window_bounds = array<i64: 16, 32>}, {transform_indices = @transform_1, window_bounds = array<i64: 32, 32>}, {transform_indices = @transform_2, window_bounds = array<i64: 1, 32>}, {pipeline_mode = #tpu.pipeline_mode<synchronous>, transform_indices = @transform_3, window_bounds = array<i64: 1, 32>}, {pipeline_mode = #tpu.pipeline_mode<synchronous>, transform_indices = @transform_4, window_bounds = array<i64: 1, 32>}, {transform_indices = @transform_5, window_bounds = array<i64: 16, 32>}]} {
    %c0_i32 = arith.constant 0 : i32
    %0 = arith.cmpi eq, %arg2, %c0_i32 : i32
    %1 = arith.extui %0 : i1 to i32
    %c0_i32_0 = arith.constant 0 : i32
    %2 = arith.cmpi ne, %1, %c0_i32_0 : i32
    scf.if %2 {
      %cst_19 = arith.constant 0.000000e+00 : f32
      %39 = vector.broadcast %cst_19 : f32 to vector<16x32xf32>
      %c0_20 = arith.constant 0 : index
      %c0_21 = arith.constant 0 : index
      %40 = vector.load %arg9[%c0_20, %c0_21] : memref<16x32xf32, #tpu.memory_space<vmem>>, vector<16x32xf32>
      tpu.vector_store %arg9[%c0_20, %c0_21], %39 {strides = array<i32>} : memref<16x32xf32, #tpu.memory_space<vmem>>, vector<16x32xf32>,
    } else {
    }
    %c0 = arith.constant 0 : index
    %c0_1 = arith.constant 0 : index
    %3 = vector.load %arg3[%c0, %c0_1] : memref<16x32xbf16, #tpu.memory_space<vmem>>, vector<16x32xbf16>
    %4 = arith.extf %3 : vector<16x32xbf16> to vector<16x32xf32>
    %cst = arith.constant dense<0.000000e+00> : vector<16xf32>
    %5 = vector.multi_reduction <add>, %4, %cst [1] : vector<16x32xf32> to vector<16xf32>
    %6 = vector.shape_cast %5 : vector<16xf32> to vector<16x1xf32>
    %cst_2 = arith.constant 3.200000e+01 : f32
    %7 = vector.broadcast %cst_2 : f32 to vector<16x1xf32>
    %8 = arith.divf %6, %7 : vector<16x1xf32>
    %9 = vector.broadcast %8 : vector<16x1xf32> to vector<16x32xf32>
    %10 = arith.subf %4, %9 : vector<16x32xf32>
    %11 = arith.mulf %10, %10 : vector<16x32xf32>
    %cst_3 = arith.constant dense<0.000000e+00> : vector<16xf32>
    %12 = vector.multi_reduction <add>, %11, %cst_3 [1] : vector<16x32xf32> to vector<16xf32>
    %13 = vector.shape_cast %12 : vector<16xf32> to vector<16x1xf32>
    %cst_4 = arith.constant 3.100000e+01 : f32
    %14 = vector.broadcast %cst_4 : f32 to vector<16x1xf32>
    %15 = arith.divf %13, %14 : vector<16x1xf32>
    %16 = math.sqrt %15 : vector<16x1xf32>
    %cst_5 = arith.constant 9.99999997E-7 : f32
    %17 = vector.broadcast %cst_5 : f32 to vector<16x1xf32>
    %18 = arith.addf %16, %17 : vector<16x1xf32>
    %19 = tpu.reciprocal %18 : vector<16x1xf32> -> vector<16x1xf32>
    %c0_6 = arith.constant 0 : index
    %c0_7 = arith.constant 0 : index
    %20 = vector.load %arg6[%c0_6, %c0_7] : memref<1x32xbf16, #tpu.memory_space<vmem>>, vector<1x32xbf16>
    %21 = arith.extf %20 : vector<1x32xbf16> to vector<1x32xf32>
    %22 = vector.broadcast %21 : vector<1x32xf32> to vector<16x32xf32>
    %23 = arith.mulf %22, %10 : vector<16x32xf32>
    %24 = vector.broadcast %19 : vector<16x1xf32> to vector<16x32xf32>
    %25 = arith.mulf %23, %24 : vector<16x32xf32>
    %c0_8 = arith.constant 0 : index
    %c0_9 = arith.constant 0 : index
    %26 = vector.load %arg7[%c0_8, %c0_9] : memref<1x32xbf16, #tpu.memory_space<vmem>>, vector<1x32xbf16>
    %27 = arith.extf %26 : vector<1x32xbf16> to vector<1x32xf32>
    %28 = vector.broadcast %27 : vector<1x32xf32> to vector<16x32xf32>
    %29 = arith.addf %25, %28 : vector<16x32xf32>
    %30 = arith.truncf %29 : vector<16x32xf32> to vector<16x32xbf16>
    %c0_10 = arith.constant 0 : index
    %c0_11 = arith.constant 0 : index
    %31 = vector.load %arg9[%c0_10, %c0_11] : memref<16x32xf32, #tpu.memory_space<vmem>>, vector<16x32xf32>
    %c0_12 = arith.constant 0 : index
    %c0_13 = arith.constant 0 : index
    %32 = vector.load %arg4[%c0_12, %c0_13] : memref<32x32xbf16, #tpu.memory_space<vmem>>, vector<32x32xbf16>
    %cst_14 = arith.constant dense<0.000000e+00> : vector<16x32xf32>
    %33 = tpu.matmul %30, %32, %cst_14 {dimension_numbers = #tpu.dot_dimension_numbers<[1], [0], [0], [1], [0, 0, 1, 1], [], []>} : vector<16x32xbf16>, vector<32x32xbf16>, vector<16x32xf32> -> vector<16x32xf32>
    %34 = arith.addf %31, %33 : vector<16x32xf32>
    %c0_15 = arith.constant 0 : index
    %c0_16 = arith.constant 0 : index
    %35 = vector.load %arg9[%c0_15, %c0_16] : memref<16x32xf32, #tpu.memory_space<vmem>>, vector<16x32xf32>
    tpu.vector_store %arg9[%c0_15, %c0_16], %34 {strides = array<i32>} : memref<16x32xf32, #tpu.memory_space<vmem>>, vector<16x32xf32>,
    %c0_i32_17 = arith.constant 0 : i32
    %36 = arith.cmpi eq, %arg2, %c0_i32_17 : i32
    %37 = arith.extui %36 : i1 to i32
    %c0_i32_18 = arith.constant 0 : i32
    %38 = arith.cmpi ne, %37, %c0_i32_18 : i32
    scf.if %38 {
      %c0_19 = arith.constant 0 : index
      %c0_20 = arith.constant 0 : index
      %39 = vector.load %arg9[%c0_19, %c0_20] : memref<16x32xf32, #tpu.memory_space<vmem>>, vector<16x32xf32>
      %c0_21 = arith.constant 0 : index
      %c0_22 = arith.constant 0 : index
      %40 = vector.load %arg5[%c0_21, %c0_22] : memref<1x32xbf16, #tpu.memory_space<vmem>>, vector<1x32xbf16>
      %41 = arith.extf %40 : vector<1x32xbf16> to vector<1x32xf32>
      %42 = vector.broadcast %41 : vector<1x32xf32> to vector<16x32xf32>
      %43 = arith.addf %39, %42 : vector<16x32xf32>
      %44 = arith.truncf %43 : vector<16x32xf32> to vector<16x32xbf16>
      %c0_23 = arith.constant 0 : index
      %c0_24 = arith.constant 0 : index
      %45 = vector.load %arg8[%c0_23, %c0_24] : memref<16x32xbf16, #tpu.memory_space<vmem>>, vector<16x32xbf16>
      tpu.vector_store %arg8[%c0_23, %c0_24], %44 {strides = array<i32>} : memref<16x32xbf16, #tpu.memory_space<vmem>>, vector<16x32xbf16>,
    } else {
    }
    return
  }
  func.func @transform_0(%arg0: i32, %arg1: i32, %arg2: i32) -> (i32, i32) {
    %c0_i32 = arith.constant 0 : i32
    return %arg0, %arg2 : i32, i32
  }
  func.func @transform_1(%arg0: i32, %arg1: i32, %arg2: i32) -> (i32, i32) {
    %c0_i32 = arith.constant 0 : i32
    return %arg2, %arg1 : i32, i32
  }
  func.func @transform_2(%arg0: i32, %arg1: i32, %arg2: i32) -> (i32, i32) {
    %c0_i32 = arith.constant 0 : i32
    %c0_i32_0 = arith.constant 0 : i32
    return %c0_i32, %arg1 : i32, i32
  }
  func.func @transform_3(%arg0: i32, %arg1: i32, %arg2: i32) -> (i32, i32) {
    %c0_i32 = arith.constant 0 : i32
    %c0_i32_0 = arith.constant 0 : i32
    %c0_i32_1 = arith.constant 0 : i32
    return %c0_i32, %c0_i32_0 : i32, i32
  }
  func.func @transform_4(%arg0: i32, %arg1: i32, %arg2: i32) -> (i32, i32) {
    %c0_i32 = arith.constant 0 : i32
    %c0_i32_0 = arith.constant 0 : i32
    %c0_i32_1 = arith.constant 0 : i32
    return %c0_i32, %c0_i32_0 : i32, i32
  }
  func.func @transform_5(%arg0: i32, %arg1: i32, %arg2: i32) -> (i32, i32) {
    %c0_i32 = arith.constant 0 : i32
    return %arg0, %arg1 : i32, i32
  }
}

module attributes {stable_mosaic.version = 11 : i64} {
  func.func @_attention_kernel(%arg0: i32, %arg1: i32, %arg2: i32, %arg3: memref<1x4x8x8xbf16, #tpu.memory_space<vmem>>, %arg4: memref<1x4x8x8xbf16, #tpu.memory_space<vmem>>, %arg5: memref<1x4x8x8xbf16, #tpu.memory_space<vmem>>, %arg6: memref<1x1x8xf32, #tpu.memory_space<vmem>>, %arg7: memref<1x4x8x8xbf16, #tpu.memory_space<vmem>>, %arg8: memref<4x8x1xf32, #tpu.memory_space<vmem>>, %arg9: memref<4x8x1xf32, #tpu.memory_space<vmem>>, %arg10: memref<4x8x8xf32, #tpu.memory_space<vmem>>) attributes {dimension_semantics = [#tpu.dimension_semantics<parallel>, #tpu.dimension_semantics<parallel>, #tpu.dimension_semantics<arbitrary>], iteration_bounds = array<i64: 2, 1, 1>, scalar_prefetch = 0 : i64, scratch_operands = 3 : i64, tpu.core_type = #tpu.core_type<tc>, window_params = [{transform_indices = @transform_0, window_bounds = array<i64: 1, 4, 8, 8>}, {transform_indices = @transform_1, window_bounds = array<i64: 1, 4, 8, 8>}, {transform_indices = @transform_2, window_bounds = array<i64: 1, 4, 8, 8>}, {transform_indices = @transform_3, window_bounds = array<i64: 1, 1, 8>}, {transform_indices = @transform_4, window_bounds = array<i64: 1, 4, 8, 8>}]} {
    %c0_i32 = arith.constant 0 : i32
    %0 = arith.cmpi eq, %arg2, %c0_i32 : i32
    %1 = arith.extui %0 : i1 to i32
    %c0_i32_0 = arith.constant 0 : i32
    %2 = arith.cmpi ne, %1, %c0_i32_0 : i32
    scf.if %2 {
      %cst_38 = arith.constant -1.000000e+30 : f32
      %41 = vector.broadcast %cst_38 : f32 to vector<4x8x1xf32>
      %c0_39 = arith.constant 0 : index
      %c0_40 = arith.constant 0 : index
      %c0_41 = arith.constant 0 : index
      %42 = vector.load %arg8[%c0_39, %c0_40, %c0_41] : memref<4x8x1xf32, #tpu.memory_space<vmem>>, vector<4x8x1xf32>
      tpu.vector_store %arg8[%c0_39, %c0_40, %c0_41], %41 {strides = array<i32>} : memref<4x8x1xf32, #tpu.memory_space<vmem>>, vector<4x8x1xf32>,
      %cst_42 = arith.constant 0.000000e+00 : f32
      %43 = vector.broadcast %cst_42 : f32 to vector<4x8x1xf32>
      %c0_43 = arith.constant 0 : index
      %c0_44 = arith.constant 0 : index
      %c0_45 = arith.constant 0 : index
      %44 = vector.load %arg9[%c0_43, %c0_44, %c0_45] : memref<4x8x1xf32, #tpu.memory_space<vmem>>, vector<4x8x1xf32>
      tpu.vector_store %arg9[%c0_43, %c0_44, %c0_45], %43 {strides = array<i32>} : memref<4x8x1xf32, #tpu.memory_space<vmem>>, vector<4x8x1xf32>,
      %cst_46 = arith.constant 0.000000e+00 : f32
      %45 = vector.broadcast %cst_46 : f32 to vector<4x8x8xf32>
      %c0_47 = arith.constant 0 : index
      %c0_48 = arith.constant 0 : index
      %c0_49 = arith.constant 0 : index
      %46 = vector.load %arg10[%c0_47, %c0_48, %c0_49] : memref<4x8x8xf32, #tpu.memory_space<vmem>>, vector<4x8x8xf32>
      tpu.vector_store %arg10[%c0_47, %c0_48, %c0_49], %45 {strides = array<i32>} : memref<4x8x8xf32, #tpu.memory_space<vmem>>, vector<4x8x8xf32>,
    } else {
    }
    %c0 = arith.constant 0 : index
    %c0_1 = arith.constant 0 : index
    %c0_2 = arith.constant 0 : index
    %c0_3 = arith.constant 0 : index
    %3 = vector.load %arg3[%c0, %c0_1, %c0_2, %c0_3] : memref<1x4x8x8xbf16, #tpu.memory_space<vmem>>, vector<1x4x8x8xbf16>
    %4 = vector.shape_cast %3 : vector<1x4x8x8xbf16> to vector<4x8x8xbf16>
    %c0_4 = arith.constant 0 : index
    %c0_5 = arith.constant 0 : index
    %c0_6 = arith.constant 0 : index
    %c0_7 = arith.constant 0 : index
    %5 = vector.load %arg4[%c0_4, %c0_5, %c0_6, %c0_7] : memref<1x4x8x8xbf16, #tpu.memory_space<vmem>>, vector<1x4x8x8xbf16>
    %6 = vector.shape_cast %5 : vector<1x4x8x8xbf16> to vector<4x8x8xbf16>
    %c0_8 = arith.constant 0 : index
    %c0_9 = arith.constant 0 : index
    %c0_10 = arith.constant 0 : index
    %c0_11 = arith.constant 0 : index
    %7 = vector.load %arg5[%c0_8, %c0_9, %c0_10, %c0_11] : memref<1x4x8x8xbf16, #tpu.memory_space<vmem>>, vector<1x4x8x8xbf16>
    %8 = vector.shape_cast %7 : vector<1x4x8x8xbf16> to vector<4x8x8xbf16>
    %c0_12 = arith.constant 0 : index
    %c0_13 = arith.constant 0 : index
    %c0_14 = arith.constant 0 : index
    %9 = vector.load %arg6[%c0_12, %c0_13, %c0_14] : memref<1x1x8xf32, #tpu.memory_space<vmem>>, vector<1x1x8xf32>
    %10 = vector.shape_cast %9 : vector<1x1x8xf32> to vector<1x8xf32>
    %cst = arith.constant dense<0.000000e+00> : vector<4x8x8xf32>
    %11 = tpu.matmul %4, %6, %cst {dimension_numbers = #tpu.dot_dimension_numbers<[2], [1], [1], [2], [0, 0, 0, 1, 1, 2], [0], [0]>} : vector<4x8x8xbf16>, vector<4x8x8xbf16>, vector<4x8x8xf32> -> vector<4x8x8xf32>
    %12 = vector.shape_cast %10 : vector<1x8xf32> to vector<1x1x8xf32>
    %13 = vector.broadcast %12 : vector<1x1x8xf32> to vector<4x8x8xf32>
    %14 = arith.addf %11, %13 : vector<4x8x8xf32>
    %c0_15 = arith.constant 0 : index
    %c0_16 = arith.constant 0 : index
    %c0_17 = arith.constant 0 : index
    %15 = vector.load %arg8[%c0_15, %c0_16, %c0_17] : memref<4x8x1xf32, #tpu.memory_space<vmem>>, vector<4x8x1xf32>
    %cst_18 = arith.constant dense<0xFF800000> : vector<4x8xf32>
    %16 = vector.multi_reduction <maximumf>, %14, %cst_18 [2] : vector<4x8x8xf32> to vector<4x8xf32>
    %17 = vector.shape_cast %16 : vector<4x8xf32> to vector<4x8x1xf32>
    %18 = arith.maximumf %15, %17 : vector<4x8x1xf32>
    %19 = arith.subf %15, %18 : vector<4x8x1xf32>
    %20 = math.exp %19 : vector<4x8x1xf32>
    %21 = vector.broadcast %18 : vector<4x8x1xf32> to vector<4x8x8xf32>
    %22 = arith.subf %14, %21 : vector<4x8x8xf32>
    %23 = math.exp %22 : vector<4x8x8xf32>
    %c0_19 = arith.constant 0 : index
    %c0_20 = arith.constant 0 : index
    %c0_21 = arith.constant 0 : index
    %24 = vector.load %arg9[%c0_19, %c0_20, %c0_21] : memref<4x8x1xf32, #tpu.memory_space<vmem>>, vector<4x8x1xf32>
    %25 = arith.mulf %20, %24 : vector<4x8x1xf32>
    %cst_22 = arith.constant dense<0.000000e+00> : vector<4x8xf32>
    %26 = vector.multi_reduction <add>, %23, %cst_22 [2] : vector<4x8x8xf32> to vector<4x8xf32>
    %27 = vector.shape_cast %26 : vector<4x8xf32> to vector<4x8x1xf32>
    %28 = arith.addf %25, %27 : vector<4x8x1xf32>
    %c0_23 = arith.constant 0 : index
    %c0_24 = arith.constant 0 : index
    %c0_25 = arith.constant 0 : index
    %29 = vector.load %arg9[%c0_23, %c0_24, %c0_25] : memref<4x8x1xf32, #tpu.memory_space<vmem>>, vector<4x8x1xf32>
    tpu.vector_store %arg9[%c0_23, %c0_24, %c0_25], %28 {strides = array<i32>} : memref<4x8x1xf32, #tpu.memory_space<vmem>>, vector<4x8x1xf32>,
    %c0_26 = arith.constant 0 : index
    %c0_27 = arith.constant 0 : index
    %c0_28 = arith.constant 0 : index
    %30 = vector.load %arg10[%c0_26, %c0_27, %c0_28] : memref<4x8x8xf32, #tpu.memory_space<vmem>>, vector<4x8x8xf32>
    %31 = vector.broadcast %20 : vector<4x8x1xf32> to vector<4x8x8xf32>
    %32 = arith.mulf %31, %30 : vector<4x8x8xf32>
    %33 = arith.truncf %23 : vector<4x8x8xf32> to vector<4x8x8xbf16>
    %cst_29 = arith.constant dense<0.000000e+00> : vector<4x8x8xf32>
    %34 = tpu.matmul %33, %8, %cst_29 {dimension_numbers = #tpu.dot_dimension_numbers<[2], [1], [1], [2], [0, 0, 0, 1, 1, 2], [0], [0]>} : vector<4x8x8xbf16>, vector<4x8x8xbf16>, vector<4x8x8xf32> -> vector<4x8x8xf32>
    %35 = arith.addf %32, %34 : vector<4x8x8xf32>
    %c0_30 = arith.constant 0 : index
    %c0_31 = arith.constant 0 : index
    %c0_32 = arith.constant 0 : index
    %36 = vector.load %arg10[%c0_30, %c0_31, %c0_32] : memref<4x8x8xf32, #tpu.memory_space<vmem>>, vector<4x8x8xf32>
    tpu.vector_store %arg10[%c0_30, %c0_31, %c0_32], %35 {strides = array<i32>} : memref<4x8x8xf32, #tpu.memory_space<vmem>>, vector<4x8x8xf32>,
    %c0_33 = arith.constant 0 : index
    %c0_34 = arith.constant 0 : index
    %c0_35 = arith.constant 0 : index
    %37 = vector.load %arg8[%c0_33, %c0_34, %c0_35] : memref<4x8x1xf32, #tpu.memory_space<vmem>>, vector<4x8x1xf32>
    tpu.vector_store %arg8[%c0_33, %c0_34, %c0_35], %18 {strides = array<i32>} : memref<4x8x1xf32, #tpu.memory_space<vmem>>, vector<4x8x1xf32>,
    %c0_i32_36 = arith.constant 0 : i32
    %38 = arith.cmpi eq, %arg2, %c0_i32_36 : i32
    %39 = arith.extui %38 : i1 to i32
    %c0_i32_37 = arith.constant 0 : i32
    %40 = arith.cmpi ne, %39, %c0_i32_37 : i32
    scf.if %40 {
      %c0_38 = arith.constant 0 : index
      %c0_39 = arith.constant 0 : index
      %c0_40 = arith.constant 0 : index
      %41 = vector.load %arg10[%c0_38, %c0_39, %c0_40] : memref<4x8x8xf32, #tpu.memory_space<vmem>>, vector<4x8x8xf32>
      %c0_41 = arith.constant 0 : index
      %c0_42 = arith.constant 0 : index
      %c0_43 = arith.constant 0 : index
      %42 = vector.load %arg9[%c0_41, %c0_42, %c0_43] : memref<4x8x1xf32, #tpu.memory_space<vmem>>, vector<4x8x1xf32>
      %43 = tpu.reciprocal %42 {approx = true} : vector<4x8x1xf32> -> vector<4x8x1xf32>
      %44 = vector.broadcast %43 : vector<4x8x1xf32> to vector<4x8x8xf32>
      %45 = arith.mulf %41, %44 : vector<4x8x8xf32>
      %46 = arith.truncf %45 : vector<4x8x8xf32> to vector<4x8x8xbf16>
      %c0_44 = arith.constant 0 : index
      %c0_45 = arith.constant 0 : index
      %c0_46 = arith.constant 0 : index
      %c0_47 = arith.constant 0 : index
      %47 = vector.load %arg7[%c0_44, %c0_45, %c0_46, %c0_47] : memref<1x4x8x8xbf16, #tpu.memory_space<vmem>>, vector<1x4x8x8xbf16>
      %48 = vector.shape_cast %47 : vector<1x4x8x8xbf16> to vector<4x8x8xbf16>
      %49 = vector.shape_cast %46 : vector<4x8x8xbf16> to vector<1x4x8x8xbf16>
      tpu.vector_store %arg7[%c0_44, %c0_45, %c0_46, %c0_47], %49 {strides = array<i32>} : memref<1x4x8x8xbf16, #tpu.memory_space<vmem>>, vector<1x4x8x8xbf16>,
    } else {
    }
    return
  }
  func.func @transform_0(%arg0: i32, %arg1: i32, %arg2: i32) -> (i32, i32, i32, i32) {
    %c0_i32 = arith.constant 0 : i32
    %c0_i32_0 = arith.constant 0 : i32
    %c0_i32_1 = arith.constant 0 : i32
    return %arg0, %c0_i32, %arg1, %c0_i32_0 : i32, i32, i32, i32
  }
  func.func @transform_1(%arg0: i32, %arg1: i32, %arg2: i32) -> (i32, i32, i32, i32) {
    %c0_i32 = arith.constant 0 : i32
    %c0_i32_0 = arith.constant 0 : i32
    %c0_i32_1 = arith.constant 0 : i32
    return %arg0, %c0_i32, %c0_i32_0, %arg2 : i32, i32, i32, i32
  }
  func.func @transform_2(%arg0: i32, %arg1: i32, %arg2: i32) -> (i32, i32, i32, i32) {
    %c0_i32 = arith.constant 0 : i32
    %c0_i32_0 = arith.constant 0 : i32
    %c0_i32_1 = arith.constant 0 : i32
    return %arg0, %c0_i32, %arg2, %c0_i32_0 : i32, i32, i32, i32
  }
  func.func @transform_3(%arg0: i32, %arg1: i32, %arg2: i32) -> (i32, i32, i32) {
    %c0_i32 = arith.constant 0 : i32
    %c0_i32_0 = arith.constant 0 : i32
    return %arg0, %c0_i32, %arg2 : i32, i32, i32
  }
  func.func @transform_4(%arg0: i32, %arg1: i32, %arg2: i32) -> (i32, i32, i32, i32) {
    %c0_i32 = arith.constant 0 : i32
    %c0_i32_0 = arith.constant 0 : i32
    %c0_i32_1 = arith.constant 0 : i32
    return %arg0, %c0_i32, %arg1, %c0_i32_0 : i32, i32, i32, i32
  }
}

module attributes {stable_mosaic.version = 11 : i64} {
  func.func @_linear_kernel(%arg0: i32, %arg1: i32, %arg2: i32, %arg3: memref<16x32xbf16, #tpu.memory_space<vmem>>, %arg4: memref<32x64xbf16, #tpu.memory_space<vmem>>, %arg5: memref<1x64xbf16, #tpu.memory_space<vmem>>, %arg6: memref<1x32xbf16, #tpu.memory_space<vmem>>, %arg7: memref<1x32xbf16, #tpu.memory_space<vmem>>, %arg8: memref<16x64xbf16, #tpu.memory_space<vmem>>, %arg9: memref<16x64xf32, #tpu.memory_space<vmem>>) attributes {dimension_semantics = [#tpu.dimension_semantics<parallel>, #tpu.dimension_semantics<parallel>, #tpu.dimension_semantics<arbitrary>], iteration_bounds = array<i64: 1, 1, 1>, scalar_prefetch = 0 : i64, scratch_operands = 1 : i64, tpu.core_type = #tpu.core_type<tc>, window_params = [{transform_indices = @transform_0, window_bounds = array<i64: 16, 32>}, {transform_indices = @transform_1, window_bounds = array<i64: 32, 64>}, {transform_indices = @transform_2, window_bounds = array<i64: 1, 64>}, {pipeline_mode = #tpu.pipeline_mode<synchronous>, transform_indices = @transform_3, window_bounds = array<i64: 1, 32>}, {pipeline_mode = #tpu.pipeline_mode<synchronous>, transform_indices = @transform_4, window_bounds = array<i64: 1, 32>}, {transform_indices = @transform_5, window_bounds = array<i64: 16, 64>}]} {
    %c0_i32 = arith.constant 0 : i32
    %0 = arith.cmpi eq, %arg2, %c0_i32 : i32
    %1 = arith.extui %0 : i1 to i32
    %c0_i32_0 = arith.constant 0 : i32
    %2 = arith.cmpi ne, %1, %c0_i32_0 : i32
    scf.if %2 {
      %cst_19 = arith.constant 0.000000e+00 : f32
      %39 = vector.broadcast %cst_19 : f32 to vector<16x64xf32>
      %c0_20 = arith.constant 0 : index
      %c0_21 = arith.constant 0 : index
      %40 = vector.load %arg9[%c0_20, %c0_21] : memref<16x64xf32, #tpu.memory_space<vmem>>, vector<16x64xf32>
      tpu.vector_store %arg9[%c0_20, %c0_21], %39 {strides = array<i32>} : memref<16x64xf32, #tpu.memory_space<vmem>>, vector<16x64xf32>,
    } else {
    }
    %c0 = arith.constant 0 : index
    %c0_1 = arith.constant 0 : index
    %3 = vector.load %arg3[%c0, %c0_1] : memref<16x32xbf16, #tpu.memory_space<vmem>>, vector<16x32xbf16>
    %4 = arith.extf %3 : vector<16x32xbf16> to vector<16x32xf32>
    %cst = arith.constant dense<0.000000e+00> : vector<16xf32>
    %5 = vector.multi_reduction <add>, %4, %cst [1] : vector<16x32xf32> to vector<16xf32>
    %6 = vector.shape_cast %5 : vector<16xf32> to vector<16x1xf32>
    %cst_2 = arith.constant 3.200000e+01 : f32
    %7 = vector.broadcast %cst_2 : f32 to vector<16x1xf32>
    %8 = arith.divf %6, %7 : vector<16x1xf32>
    %9 = vector.broadcast %8 : vector<16x1xf32> to vector<16x32xf32>
    %10 = arith.subf %4, %9 : vector<16x32xf32>
    %11 = arith.mulf %10, %10 : vector<16x32xf32>
    %cst_3 = arith.constant dense<0.000000e+00> : vector<16xf32>
    %12 = vector.multi_reduction <add>, %11, %cst_3 [1] : vector<16x32xf32> to vector<16xf32>
    %13 = vector.shape_cast %12 : vector<16xf32> to vector<16x1xf32>
    %cst_4 = arith.constant 3.100000e+01 : f32
    %14 = vector.broadcast %cst_4 : f32 to vector<16x1xf32>
    %15 = arith.divf %13, %14 : vector<16x1xf32>
    %16 = math.sqrt %15 : vector<16x1xf32>
    %cst_5 = arith.constant 9.99999997E-7 : f32
    %17 = vector.broadcast %cst_5 : f32 to vector<16x1xf32>
    %18 = arith.addf %16, %17 : vector<16x1xf32>
    %19 = tpu.reciprocal %18 : vector<16x1xf32> -> vector<16x1xf32>
    %c0_6 = arith.constant 0 : index
    %c0_7 = arith.constant 0 : index
    %20 = vector.load %arg6[%c0_6, %c0_7] : memref<1x32xbf16, #tpu.memory_space<vmem>>, vector<1x32xbf16>
    %21 = arith.extf %20 : vector<1x32xbf16> to vector<1x32xf32>
    %22 = vector.broadcast %21 : vector<1x32xf32> to vector<16x32xf32>
    %23 = arith.mulf %22, %10 : vector<16x32xf32>
    %24 = vector.broadcast %19 : vector<16x1xf32> to vector<16x32xf32>
    %25 = arith.mulf %23, %24 : vector<16x32xf32>
    %c0_8 = arith.constant 0 : index
    %c0_9 = arith.constant 0 : index
    %26 = vector.load %arg7[%c0_8, %c0_9] : memref<1x32xbf16, #tpu.memory_space<vmem>>, vector<1x32xbf16>
    %27 = arith.extf %26 : vector<1x32xbf16> to vector<1x32xf32>
    %28 = vector.broadcast %27 : vector<1x32xf32> to vector<16x32xf32>
    %29 = arith.addf %25, %28 : vector<16x32xf32>
    %30 = arith.truncf %29 : vector<16x32xf32> to vector<16x32xbf16>
    %c0_10 = arith.constant 0 : index
    %c0_11 = arith.constant 0 : index
    %31 = vector.load %arg9[%c0_10, %c0_11] : memref<16x64xf32, #tpu.memory_space<vmem>>, vector<16x64xf32>
    %c0_12 = arith.constant 0 : index
    %c0_13 = arith.constant 0 : index
    %32 = vector.load %arg4[%c0_12, %c0_13] : memref<32x64xbf16, #tpu.memory_space<vmem>>, vector<32x64xbf16>
    %cst_14 = arith.constant dense<0.000000e+00> : vector<16x64xf32>
    %33 = tpu.matmul %30, %32, %cst_14 {dimension_numbers = #tpu.dot_dimension_numbers<[1], [0], [0], [1], [0, 0, 1, 1], [], []>} : vector<16x32xbf16>, vector<32x64xbf16>, vector<16x64xf32> -> vector<16x64xf32>
    %34 = arith.addf %31, %33 : vector<16x64xf32>
    %c0_15 = arith.constant 0 : index
    %c0_16 = arith.constant 0 : index
    %35 = vector.load %arg9[%c0_15, %c0_16] : memref<16x64xf32, #tpu.memory_space<vmem>>, vector<16x64xf32>
    tpu.vector_store %arg9[%c0_15, %c0_16], %34 {strides = array<i32>} : memref<16x64xf32, #tpu.memory_space<vmem>>, vector<16x64xf32>,
    %c0_i32_17 = arith.constant 0 : i32
    %36 = arith.cmpi eq, %arg2, %c0_i32_17 : i32
    %37 = arith.extui %36 : i1 to i32
    %c0_i32_18 = arith.constant 0 : i32
    %38 = arith.cmpi ne, %37, %c0_i32_18 : i32
    scf.if %38 {
      %c0_19 = arith.constant 0 : index
      %c0_20 = arith.constant 0 : index
      %39 = vector.load %arg9[%c0_19, %c0_20] : memref<16x64xf32, #tpu.memory_space<vmem>>, vector<16x64xf32>
      %c0_21 = arith.constant 0 : index
      %c0_22 = arith.constant 0 : index
      %40 = vector.load %arg5[%c0_21, %c0_22] : memref<1x64xbf16, #tpu.memory_space<vmem>>, vector<1x64xbf16>
      %41 = arith.extf %40 : vector<1x64xbf16> to vector<1x64xf32>
      %42 = vector.broadcast %41 : vector<1x64xf32> to vector<16x64xf32>
      %43 = arith.addf %39, %42 : vector<16x64xf32>
      %cst_23 = arith.constant 0.000000e+00 : f32
      %44 = vector.broadcast %cst_23 : f32 to vector<16x64xf32>
      %45 = arith.maximumf %43, %44 : vector<16x64xf32>
      %46 = arith.truncf %45 : vector<16x64xf32> to vector<16x64xbf16>
      %c0_24 = arith.constant 0 : index
      %c0_25 = arith.constant 0 : index
      %47 = vector.load %arg8[%c0_24, %c0_25] : memref<16x64xbf16, #tpu.memory_space<vmem>>, vector<16x64xbf16>
      tpu.vector_store %arg8[%c0_24, %c0_25], %46 {strides = array<i32>} : memref<16x64xbf16, #tpu.memory_space<vmem>>, vector<16x64xbf16>,
    } else {
    }
    return
  }
  func.func @transform_0(%arg0: i32, %arg1: i32, %arg2: i32) -> (i32, i32) {
    %c0_i32 = arith.constant 0 : i32
    return %arg0, %arg2 : i32, i32
  }
  func.func @transform_1(%arg0: i32, %arg1: i32, %arg2: i32) -> (i32, i32) {
    %c0_i32 = arith.constant 0 : i32
    return %arg2, %arg1 : i32, i32
  }
  func.func @transform_2(%arg0: i32, %arg1: i32, %arg2: i32) -> (i32, i32) {
    %c0_i32 = arith.constant 0 : i32
    %c0_i32_0 = arith.constant 0 : i32
    return %c0_i32, %arg1 : i32, i32
  }
  func.func @transform_3(%arg0: i32, %arg1: i32, %arg2: i32) -> (i32, i32) {
    %c0_i32 = arith.constant 0 : i32
    %c0_i32_0 = arith.constant 0 : i32
    %c0_i32_1 = arith.constant 0 : i32
    return %c0_i32, %c0_i32_0 : i32, i32
  }
  func.func @transform_4(%arg0: i32, %arg1: i32, %arg2: i32) -> (i32, i32) {
    %c0_i32 = arith.constant 0 : i32
    %c0_i32_0 = arith.constant 0 : i32
    %c0_i32_1 = arith.constant 0 : i32
    return %c0_i32, %c0_i32_0 : i32, i32
  }
  func.func @transform_5(%arg0: i32, %arg1: i32, %arg2: i32) -> (i32, i32) {
    %c0_i32 = arith.constant 0 : i32
    return %arg0, %arg1 : i32, i32
  }
}

module attributes {stable_mosaic.version = 11 : i64} {
  func.func @_linear_kernel(%arg0: i32, %arg1: i32, %arg2: i32, %arg3: memref<16x64xbf16, #tpu.memory_space<vmem>>, %arg4: memref<64x32xbf16, #tpu.memory_space<vmem>>, %arg5: memref<1x32xbf16, #tpu.memory_space<vmem>>, %arg6: memref<16x32xbf16, #tpu.memory_space<vmem>>, %arg7: memref<16x32xbf16, #tpu.memory_space<vmem>>, %arg8: memref<16x32xf32, #tpu.memory_space<vmem>>) attributes {dimension_semantics = [#tpu.dimension_semantics<parallel>, #tpu.dimension_semantics<parallel>, #tpu.dimension_semantics<arbitrary>], iteration_bounds = array<i64: 1, 1, 1>, scalar_prefetch = 0 : i64, scratch_operands = 1 : i64, tpu.core_type = #tpu.core_type<tc>, window_params = [{transform_indices = @transform_0, window_bounds = array<i64: 16, 64>}, {transform_indices = @transform_1, window_bounds = array<i64: 64, 32>}, {transform_indices = @transform_2, window_bounds = array<i64: 1, 32>}, {transform_indices = @transform_3, window_bounds = array<i64: 16, 32>}, {transform_indices = @transform_4, window_bounds = array<i64: 16, 32>}]} {
    %c0_i32 = arith.constant 0 : i32
    %0 = arith.cmpi eq, %arg2, %c0_i32 : i32
    %1 = arith.extui %0 : i1 to i32
    %c0_i32_0 = arith.constant 0 : i32
    %2 = arith.cmpi ne, %1, %c0_i32_0 : i32
    scf.if %2 {
      %cst_10 = arith.constant 0.000000e+00 : f32
      %12 = vector.broadcast %cst_10 : f32 to vector<16x32xf32>
      %c0_11 = arith.constant 0 : index
      %c0_12 = arith.constant 0 : index
      %13 = vector.load %arg8[%c0_11, %c0_12] : memref<16x32xf32, #tpu.memory_space<vmem>>, vector<16x32xf32>
      tpu.vector_store %arg8[%c0_11, %c0_12], %12 {strides = array<i32>} : memref<16x32xf32, #tpu.memory_space<vmem>>, vector<16x32xf32>,
    } else {
    }
    %c0 = arith.constant 0 : index
    %c0_1 = arith.constant 0 : index
    %3 = vector.load %arg3[%c0, %c0_1] : memref<16x64xbf16, #tpu.memory_space<vmem>>, vector<16x64xbf16>
    %c0_2 = arith.constant 0 : index
    %c0_3 = arith.constant 0 : index
    %4 = vector.load %arg8[%c0_2, %c0_3] : memref<16x32xf32, #tpu.memory_space<vmem>>, vector<16x32xf32>
    %c0_4 = arith.constant 0 : index
    %c0_5 = arith.constant 0 : index
    %5 = vector.load %arg4[%c0_4, %c0_5] : memref<64x32xbf16, #tpu.memory_space<vmem>>, vector<64x32xbf16>
    %cst = arith.constant dense<0.000000e+00> : vector<16x32xf32>
    %6 = tpu.matmul %3, %5, %cst {dimension_numbers = #tpu.dot_dimension_numbers<[1], [0], [0], [1], [0, 0, 1, 1], [], []>} : vector<16x64xbf16>, vector<64x32xbf16>, vector<16x32xf32> -> vector<16x32xf32>
    %7 = arith.addf %4, %6 : vector<16x32xf32>
    %c0_6 = arith.constant 0 : index
    %c0_7 = arith.constant 0 : index
    %8 = vector.load %arg8[%c0_6, %c0_7] : memref<16x32xf32, #tpu.memory_space<vmem>>, vector<16x32xf32>
    tpu.vector_store %arg8[%c0_6, %c0_7], %7 {strides = array<i32>} : memref<16x32xf32, #tpu.memory_space<vmem>>, vector<16x32xf32>,
    %c0_i32_8 = arith.constant 0 : i32
    %9 = arith.cmpi eq, %arg2, %c0_i32_8 : i32
    %10 = arith.extui %9 : i1 to i32
    %c0_i32_9 = arith.constant 0 : i32
    %11 = arith.cmpi ne, %10, %c0_i32_9 : i32
    scf.if %11 {
      %c0_10 = arith.constant 0 : index
      %c0_11 = arith.constant 0 : index
      %12 = vector.load %arg8[%c0_10, %c0_11] : memref<16x32xf32, #tpu.memory_space<vmem>>, vector<16x32xf32>
      %c0_12 = arith.constant 0 : index
      %c0_13 = arith.constant 0 : index
      %13 = vector.load %arg5[%c0_12, %c0_13] : memref<1x32xbf16, #tpu.memory_space<vmem>>, vector<1x32xbf16>
      %14 = arith.extf %13 : vector<1x32xbf16> to vector<1x32xf32>
      %15 = vector.broadcast %14 : vector<1x32xf32> to vector<16x32xf32>
      %16 = arith.addf %12, %15 : vector<16x32xf32>
      %c0_14 = arith.constant 0 : index
      %c0_15 = arith.constant 0 : index
      %17 = vector.load %arg6[%c0_14, %c0_15] : memref<16x32xbf16, #tpu.memory_space<vmem>>, vector<16x32xbf16>
      %18 = arith.extf %17 : vector<16x32xbf16> to vector<16x32xf32>
      %19 = arith.addf %16, %18 : vector<16x32xf32>
      %20 = arith.truncf %19 : vector<16x32xf32> to vector<16x32xbf16>
      %c0_16 = arith.constant 0 : index
      %c0_17 = arith.constant 0 : index
      %21 = vector.load %arg7[%c0_16, %c0_17] : memref<16x32xbf16, #tpu.memory_space<vmem>>, vector<16x32xbf16>
      tpu.vector_store %arg7[%c0_16, %c0_17], %20 {strides = array<i32>} : memref<16x32xbf16, #tpu.memory_space<vmem>>, vector<16x32xbf16>,
    } else {
    }
    return
  }
  func.func @transform_0(%arg0: i32, %arg1: i32, %arg2: i32) -> (i32, i32) {
    %c0_i32 = arith.constant 0 : i32
    return %arg0, %arg2 : i32, i32
  }
  func.func @transform_1(%arg0: i32, %arg1: i32, %arg2: i32) -> (i32, i32) {
    %c0_i32 = arith.constant 0 : i32
    return %arg2, %arg1 : i32, i32
  }
  func.func @transform_2(%arg0: i32, %arg1: i32, %arg2: i32) -> (i32, i32) {
    %c0_i32 = arith.constant 0 : i32
    %c0_i32_0 = arith.constant 0 : i32
    return %c0_i32, %arg1 : i32, i32
  }
  func.func @transform_3(%arg0: i32, %arg1: i32, %arg2: i32) -> (i32, i32) {
    %c0_i32 = arith.constant 0 : i32
    return %arg0, %arg1 : i32, i32
  }
  func.func @transform_4(%arg0: i32, %arg1: i32, %arg2: i32) -> (i32, i32) {
    %c0_i32 = arith.constant 0 : i32
    return %arg0, %arg1 : i32, i32
  }
}

module attributes {stable_mosaic.version = 11 : i64} {
  func.func @_layernorm_kernel(%arg0: i32, %arg1: memref<16x32xbf16, #tpu.memory_space<vmem>>, %arg2: memref<1x32xbf16, #tpu.memory_space<vmem>>, %arg3: memref<1x32xbf16, #tpu.memory_space<vmem>>, %arg4: memref<16x32xbf16, #tpu.memory_space<vmem>>) attributes {dimension_semantics = [#tpu.dimension_semantics<parallel>], iteration_bounds = array<i64: 1>, scalar_prefetch = 0 : i64, scratch_operands = 0 : i64, tpu.core_type = #tpu.core_type<tc>, window_params = [{transform_indices = @transform_0, window_bounds = array<i64: 16, 32>}, {pipeline_mode = #tpu.pipeline_mode<synchronous>, transform_indices = @transform_1, window_bounds = array<i64: 1, 32>}, {pipeline_mode = #tpu.pipeline_mode<synchronous>, transform_indices = @transform_2, window_bounds = array<i64: 1, 32>}, {transform_indices = @transform_3, window_bounds = array<i64: 16, 32>}]} {
    %c0 = arith.constant 0 : index
    %c0_0 = arith.constant 0 : index
    %0 = vector.load %arg1[%c0, %c0_0] : memref<16x32xbf16, #tpu.memory_space<vmem>>, vector<16x32xbf16>
    %1 = arith.extf %0 : vector<16x32xbf16> to vector<16x32xf32>
    %cst = arith.constant dense<0.000000e+00> : vector<16xf32>
    %2 = vector.multi_reduction <add>, %1, %cst [1] : vector<16x32xf32> to vector<16xf32>
    %3 = vector.shape_cast %2 : vector<16xf32> to vector<16x1xf32>
    %cst_1 = arith.constant 3.200000e+01 : f32
    %4 = vector.broadcast %cst_1 : f32 to vector<16x1xf32>
    %5 = arith.divf %3, %4 : vector<16x1xf32>
    %6 = vector.broadcast %5 : vector<16x1xf32> to vector<16x32xf32>
    %7 = arith.subf %1, %6 : vector<16x32xf32>
    %8 = arith.mulf %7, %7 : vector<16x32xf32>
    %cst_2 = arith.constant dense<0.000000e+00> : vector<16xf32>
    %9 = vector.multi_reduction <add>, %8, %cst_2 [1] : vector<16x32xf32> to vector<16xf32>
    %10 = vector.shape_cast %9 : vector<16xf32> to vector<16x1xf32>
    %cst_3 = arith.constant 3.100000e+01 : f32
    %11 = vector.broadcast %cst_3 : f32 to vector<16x1xf32>
    %12 = arith.divf %10, %11 : vector<16x1xf32>
    %13 = math.sqrt %12 : vector<16x1xf32>
    %cst_4 = arith.constant 9.99999997E-7 : f32
    %14 = vector.broadcast %cst_4 : f32 to vector<16x1xf32>
    %15 = arith.addf %13, %14 : vector<16x1xf32>
    %16 = tpu.reciprocal %15 : vector<16x1xf32> -> vector<16x1xf32>
    %c0_5 = arith.constant 0 : index
    %c0_6 = arith.constant 0 : index
    %17 = vector.load %arg2[%c0_5, %c0_6] : memref<1x32xbf16, #tpu.memory_space<vmem>>, vector<1x32xbf16>
    %18 = arith.extf %17 : vector<1x32xbf16> to vector<1x32xf32>
    %19 = vector.broadcast %18 : vector<1x32xf32> to vector<16x32xf32>
    %20 = arith.mulf %19, %7 : vector<16x32xf32>
    %21 = vector.broadcast %16 : vector<16x1xf32> to vector<16x32xf32>
    %22 = arith.mulf %20, %21 : vector<16x32xf32>
    %c0_7 = arith.constant 0 : index
    %c0_8 = arith.constant 0 : index
    %23 = vector.load %arg3[%c0_7, %c0_8] : memref<1x32xbf16, #tpu.memory_space<vmem>>, vector<1x32xbf16>
    %24 = arith.extf %23 : vector<1x32xbf16> to vector<1x32xf32>
    %25 = vector.broadcast %24 : vector<1x32xf32> to vector<16x32xf32>
    %26 = arith.addf %22, %25 : vector<16x32xf32>
    %27 = arith.truncf %26 : vector<16x32xf32> to vector<16x32xbf16>
    %c0_9 = arith.constant 0 : index
    %c0_10 = arith.constant 0 : index
    %28 = vector.load %arg4[%c0_9, %c0_10] : memref<16x32xbf16, #tpu.memory_space<vmem>>, vector<16x32xbf16>
    tpu.vector_store %arg4[%c0_9, %c0_10], %27 {strides = array<i32>} : memref<16x32xbf16, #tpu.memory_space<vmem>>, vector<16x32xbf16>,
    return
  }
  func.func @transform_0(%arg0: i32) -> (i32, i32) {
    %c0_i32 = arith.constant 0 : i32
    %c0_i32_0 = arith.constant 0 : i32
    return %arg0, %c0_i32 : i32, i32
  }
  func.func @transform_1(%arg0: i32) -> (i32, i32) {
    %c0_i32 = arith.constant 0 : i32
    %c0_i32_0 = arith.constant 0 : i32
    %c0_i32_1 = arith.constant 0 : i32
    return %c0_i32, %c0_i32_0 : i32, i32
  }
  func.func @transform_2(%arg0: i32) -> (i32, i32) {
    %c0_i32 = arith.constant 0 : i32
    %c0_i32_0 = arith.constant 0 : i32
    %c0_i32_1 = arith.constant 0 : i32
    return %c0_i32, %c0_i32_0 : i32, i32
  }
  func.func @transform_3(%arg0: i32) -> (i32, i32) {
    %c0_i32 = arith.constant 0 : i32
    %c0_i32_0 = arith.constant 0 : i32
    return %arg0, %c0_i32 : i32, i32
  }
}

module attributes {stable_mosaic.version = 11 : i64} {
  func.func @_linear_kernel(%arg0: i32, %arg1: i32, %arg2: i32, %arg3: memref<16x32xbf16, #tpu.memory_space<vmem>>, %arg4: memref<32x64xbf16, #tpu.memory_space<vmem>>, %arg5: memref<1x64xbf16, #tpu.memory_space<vmem>>, %arg6: memref<16x64xbf16, #tpu.memory_space<vmem>>, %arg7: memref<16x64xf32, #tpu.memory_space<vmem>>) attributes {dimension_semantics = [#tpu.dimension_semantics<parallel>, #tpu.dimension_semantics<parallel>, #tpu.dimension_semantics<arbitrary>], iteration_bounds = array<i64: 1, 1, 1>, scalar_prefetch = 0 : i64, scratch_operands = 1 : i64, tpu.core_type = #tpu.core_type<tc>, window_params = [{transform_indices = @transform_0, window_bounds = array<i64: 16, 32>}, {transform_indices = @transform_1, window_bounds = array<i64: 32, 64>}, {transform_indices = @transform_2, window_bounds = array<i64: 1, 64>}, {transform_indices = @transform_3, window_bounds = array<i64: 16, 64>}]} {
    %c0_i32 = arith.constant 0 : i32
    %0 = arith.cmpi eq, %arg2, %c0_i32 : i32
    %1 = arith.extui %0 : i1 to i32
    %c0_i32_0 = arith.constant 0 : i32
    %2 = arith.cmpi ne, %1, %c0_i32_0 : i32
    scf.if %2 {
      %cst_10 = arith.constant 0.000000e+00 : f32
      %12 = vector.broadcast %cst_10 : f32 to vector<16x64xf32>
      %c0_11 = arith.constant 0 : index
      %c0_12 = arith.constant 0 : index
      %13 = vector.load %arg7[%c0_11, %c0_12] : memref<16x64xf32, #tpu.memory_space<vmem>>, vector<16x64xf32>
      tpu.vector_store %arg7[%c0_11, %c0_12], %12 {strides = array<i32>} : memref<16x64xf32, #tpu.memory_space<vmem>>, vector<16x64xf32>,
    } else {
    }
    %c0 = arith.constant 0 : index
    %c0_1 = arith.constant 0 : index
    %3 = vector.load %arg3[%c0, %c0_1] : memref<16x32xbf16, #tpu.memory_space<vmem>>, vector<16x32xbf16>
    %c0_2 = arith.constant 0 : index
    %c0_3 = arith.constant 0 : index
    %4 = vector.load %arg7[%c0_2, %c0_3] : memref<16x64xf32, #tpu.memory_space<vmem>>, vector<16x64xf32>
    %c0_4 = arith.constant 0 : index
    %c0_5 = arith.constant 0 : index
    %5 = vector.load %arg4[%c0_4, %c0_5] : memref<32x64xbf16, #tpu.memory_space<vmem>>, vector<32x64xbf16>
    %cst = arith.constant dense<0.000000e+00> : vector<16x64xf32>
    %6 = tpu.matmul %3, %5, %cst {dimension_numbers = #tpu.dot_dimension_numbers<[1], [0], [0], [1], [0, 0, 1, 1], [], []>} : vector<16x32xbf16>, vector<32x64xbf16>, vector<16x64xf32> -> vector<16x64xf32>
    %7 = arith.addf %4, %6 : vector<16x64xf32>
    %c0_6 = arith.constant 0 : index
    %c0_7 = arith.constant 0 : index
    %8 = vector.load %arg7[%c0_6, %c0_7] : memref<16x64xf32, #tpu.memory_space<vmem>>, vector<16x64xf32>
    tpu.vector_store %arg7[%c0_6, %c0_7], %7 {strides = array<i32>} : memref<16x64xf32, #tpu.memory_space<vmem>>, vector<16x64xf32>,
    %c0_i32_8 = arith.constant 0 : i32
    %9 = arith.cmpi eq, %arg2, %c0_i32_8 : i32
    %10 = arith.extui %9 : i1 to i32
    %c0_i32_9 = arith.constant 0 : i32
    %11 = arith.cmpi ne, %10, %c0_i32_9 : i32
    scf.if %11 {
      %c0_10 = arith.constant 0 : index
      %c0_11 = arith.constant 0 : index
      %12 = vector.load %arg7[%c0_10, %c0_11] : memref<16x64xf32, #tpu.memory_space<vmem>>, vector<16x64xf32>
      %c0_12 = arith.constant 0 : index
      %c0_13 = arith.constant 0 : index
      %13 = vector.load %arg5[%c0_12, %c0_13] : memref<1x64xbf16, #tpu.memory_space<vmem>>, vector<1x64xbf16>
      %14 = arith.extf %13 : vector<1x64xbf16> to vector<1x64xf32>
      %15 = vector.broadcast %14 : vector<1x64xf32> to vector<16x64xf32>
      %16 = arith.addf %12, %15 : vector<16x64xf32>
      %17 = arith.truncf %16 : vector<16x64xf32> to vector<16x64xbf16>
      %c0_14 = arith.constant 0 : index
      %c0_15 = arith.constant 0 : index
      %18 = vector.load %arg6[%c0_14, %c0_15] : memref<16x64xbf16, #tpu.memory_space<vmem>>, vector<16x64xbf16>
      tpu.vector_store %arg6[%c0_14, %c0_15], %17 {strides = array<i32>} : memref<16x64xbf16, #tpu.memory_space<vmem>>, vector<16x64xbf16>,
    } else {
    }
    return
  }
  func.func @transform_0(%arg0: i32, %arg1: i32, %arg2: i32) -> (i32, i32) {
    %c0_i32 = arith.constant 0 : i32
    return %arg0, %arg2 : i32, i32
  }
  func.func @transform_1(%arg0: i32, %arg1: i32, %arg2: i32) -> (i32, i32) {
    %c0_i32 = arith.constant 0 : i32
    return %arg2, %arg1 : i32, i32
  }
  func.func @transform_2(%arg0: i32, %arg1: i32, %arg2: i32) -> (i32, i32) {
    %c0_i32 = arith.constant 0 : i32
    %c0_i32_0 = arith.constant 0 : i32
    return %c0_i32, %arg1 : i32, i32
  }
  func.func @transform_3(%arg0: i32, %arg1: i32, %arg2: i32) -> (i32, i32) {
    %c0_i32 = arith.constant 0 : i32
    return %arg0, %arg1 : i32, i32
  }
}

</mosaic_0001>

<bundles_post_ra>
// kernel: encoder_decoder_forward.43
= control target key start
LH: loop header
LB: loop body
LE: loop exit
PB: predicated region body
PF: predicated region fallthrough
CT: control target
= control target key end

     0   :  { %vm22_vm0 = vcmask 261120   ;;  %v161_v0 = vmov 0.0   ;;  %vm162_vm1 = vmmov 0   ;;  %v106_v4 = vlaneseq  ;;  %s214_s1 = inlined_call_operand.vmem [shape: bf16[32,32], index: 1, kind: input, shape index: {}]   ;;  %s215_s0 = inlined_call_operand.vmem [shape: bf16[16,32], index: 0, kind: input, shape index: {}]   ;;  %s216_s2 = inlined_call_operand.vmem [shape: bf16[1,32], index: 2, kind: input, shape index: {}]   ;;  %s217_s3 = inlined_call_operand.vmem [shape: bf16[16,32], index: 3, kind: input, shape index: {}]   ;;  %s218_s4 = inlined_call_operand.vmem [shape: bf16[16,32], index: 4, kind: output, shape index: {}]  }
   0x1   :  { %148 = vmatprep.subr.bf16.mxu0 %v161_v0  ;;  %v158_v1 = vld [vmem:[%s214_s1] sm:$0xff]   ;;  %152 = vmatprep.mubr.msk.bf16.mxu0 %vm162_vm1, %v161_v0  ;;  %23 = vst.msk [vmem:[#allocation2] sm:$0xff] %vm22_vm0, %v161_v0  ;;  %24 = vst.msk [vmem:[#allocation2 + $0x8] sm:$0xff] %vm22_vm0, %v161_v0  ;;  %v159_v2 = vld [vmem:[%s214_s1 + $0x8] sm:$0xff]   ;;  %vm126_vm2 = vcmask 257024  }
   0x2   :  { %149 = vmatpush3.bf16.msra.mxu0 %v158_v1  ;;  %v160_v3 = vld [vmem:[%s215_s0] sm:$0xff]   ;;  %v107_v6 = vshrl.u32 %v106_v4, 7 }
   0x3   :  { %150 = vmatprep.subr.bf16.mxu0 %v161_v0  ;;  %v104_v8 = vld [vmem:[%s216_s2] sm:$0x1] }
   0x4   :  { %v105_v13 = vunpack.c.l.bf16 %v104_v8  ;;  %v108_v14 = vsub.s32 0, %v107_v6  ;;  %v142_v17 = vld [vmem:[%s217_s3] sm:$0xff]  }
   0x5   :  { %v143_v19 = vunpack.c.l.bf16 %v142_v17  ;;  %v144_v22 = vunpack.c.h.bf16 %v142_v17 }
   0x6   :  { %151 = vmatpush3.bf16.msra.mxu0 %v159_v2  ;;  %v109_v18 = vrot.slane %v105_v13, %v108_v14 }
   0x8   :  { %v27_v5 = vld [vmem:[#allocation2] sm:$0xff]  ;;  %v28_v9 = vld [vmem:[#allocation2 + $0x8] sm:$0xff] }
   0x9   :  { %153 = vmatmul.mubr.msk.bf16.vlgmr.msra.gmra.mrb[0].mxu0 %vm22_vm0, %v160_v3 }
  0xdc   :  { %v88_v7 = vpop.f32.mrb[0].mxu0 }
  0xdd   :  { %v95_v10 = vadd.f32 %v88_v7, %v27_v5  ;;  %v154_v11 = vpop.f32.mrb[1].mxu0 }
  0xde   :  { %v91_v12 = vpop.f32.mrb[2].mxu0 }
  0xdf   :  { %97 = vst.msk [vmem:[#allocation2] sm:$0xff] %vm22_vm0, %v95_v10  ;;  %v96_v15 = vadd.f32 %v91_v12, %v28_v9  ;;  %v155_v16 = vpop.f32.mrb[3].mxu0 }
  0xe1   :  { %98 = vst.msk [vmem:[#allocation2 + $0x8] sm:$0xff] %vm22_vm0, %v96_v15 }
  0xe6   :  { %v102_v20 = vld [vmem:[#allocation2] sm:$0xff] }
  0xe7   :  { %v110_v21 = vadd.f32 %v109_v18, %v102_v20 }
  0xe8   :  { %v103_v23 = vld [vmem:[#allocation2 + $0x8] sm:$0xff] }
  0xe9   :  { %v116_v24 = vadd.f32 %v143_v19, %v110_v21  ;;  %v111_v25 = vadd.f32 %v109_v18, %v103_v23 }
  0xeb   :  { %v139_v26 = vpack.c.bf16 %v116_v24, %v116_v24  ;;  %v117_v27 = vadd.f32 %v144_v22, %v111_v25 }
  0xed   :  { %127 = vst.msk [vmem:[%s218_s4] sm:$0xf] %vm126_vm2, %v139_v26  ;;  %v140_v28 = vpack.c.bf16 %v117_v27, %v117_v27 }
  0xef   :  { %128 = vst.msk [vmem:[%s218_s4 + $0x4] sm:$0xf] %vm126_vm2, %v140_v28 }

// kernel: encoder_decoder_forward.41
= control target key start
LH: loop header
LB: loop body
LE: loop exit
PB: predicated region body
PF: predicated region fallthrough
CT: control target
= control target key end

     0   :  { %vm32_vm0 = vcmask 261120   ;;  %v221_v15 = vmov 0.0   ;;  %vm222_vm1 = vmmov 0   ;;  %vm25_vm2 = vcmask 785408   ;;  %s286_s0 = inlined_call_operand.vmem [shape: bf16[16,32], index: 0, kind: input, shape index: {}]   ;;  %s287_s1 = inlined_call_operand.vmem [shape: bf16[32,96], index: 1, kind: input, shape index: {}]   ;;  %s288_s3 = inlined_call_operand.vmem [shape: bf16[1,32], index: 3, kind: input, shape index: {}]   ;;  %s289_s4 = inlined_call_operand.vmem [shape: bf16[1,32], index: 4, kind: input, shape index: {}]   ;;  %s290_s2 = inlined_call_operand.vmem [shape: bf16[1,96], index: 2, kind: input, shape index: {}]   ;;  %s291_s5 = inlined_call_operand.vmem [shape: bf16[16,96], index: 5, kind: output, shape index: {}]  }
   0x1   :  { %v195_v0 = vld [vmem:[%s286_s0] sm:$0xff]   ;;  %201 = vmatprep.subr.bf16.mxu0 %v221_v15  ;;  %205 = vmatprep.mubr.msk.bf16.mxu0 %vm222_vm1, %v221_v15  ;;  %v212_v17 = vld [vmem:[%s287_s1 + $0x8] sm:$0xff]   ;;  %26 = vst.msk [vmem:[#allocation2] sm:$0xff] %vm25_vm2, %v221_v15  ;;  %27 = vst.msk [vmem:[#allocation2 + $0x8] sm:$0xff] %vm25_vm2, %v221_v15  ;;  %v75_v24 = vlaneseq  ;;  %vm180_vm7 = vcmask 781312  }
   0x2   :  { %v196_v1 = vunpack.c.l.bf16 %v195_v0  ;;  %v197_v2 = vunpack.c.h.bf16 %v195_v0  ;;  %v211_v16 = vld [vmem:[%s287_s1] sm:$0xff]  }
   0x3   :  { %202 = vmatpush3.bf16.msra.mxu0 %v211_v16  ;;  %v76_v31 = vshrl.u32 %v75_v24, 7  ;;  %v73_v33 = vld [vmem:[%s288_s3] sm:$0x1] }
   0x4   :  { %v33_v3 = vsel %vm32_vm0, %v196_v1, 0.0  ;;  %v36_v4 = vsel %vm32_vm0, %v197_v2, 0.0  ;;  %203 = vmatprep.subr.bf16.mxu0 %v221_v15  ;;  %v74_v37 = vunpack.c.l.bf16 %v73_v33  ;;  %v83_v39 = vld [vmem:[%s289_s4] sm:$0x1] }
   0x5   :  { %34 = vadd.xlane.f32.xlu0 %v33_v3  ;;  %v77_v38 = vsub.s32 0, %v76_v31  ;;  %v84_v41 = vunpack.c.l.bf16 %v83_v39  ;;  %v164_v53 = vld [vmem:[%s290_s2] sm:$0x1] }
   0x6   :  { %v165_v59 = vunpack.c.l.bf16 %v164_v53 }
   0x7   :  { %204 = vmatpush3.bf16.msra.mxu0 %v212_v17  ;;  %v78_v40 = vrot.slane %v74_v37, %v77_v38  ;;  %v88_v46 = vrot.slane %v84_v41, %v77_v38 }
   0x8   :  { %v92_v52 = vld [vmem:[#allocation2] sm:$0xff]  ;;  %v93_v55 = vld [vmem:[#allocation2 + $0x8] sm:$0xff]  ;;  %v169_v62 = vrot.slane %v165_v59, %v77_v38 }
   0x9   :  { %37 = vadd.xlane.f32.xlu0 %v36_v4 }
  0x92   :  { %v35_v5 = vpop.xlane.xlu0 %34 }
  0x93   :  { %v40_v6 = vmul.f32 0.03125, %v35_v5 }
  0x95   :  { %v42_v7 = vsub.f32 %v196_v1, %v40_v6 }
  0x96   :  { %v38_v8 = vpop.xlane.xlu0 %37 }
  0x97   :  { %v41_v9 = vmul.f32 0.03125, %v38_v8  ;;  %v44_v10 = vmul.f32 %v42_v7, %v42_v7  ;;  %v79_v43 = vmul.f32 %v78_v40, %v42_v7 }
  0x99   :  { %v43_v11 = vsub.f32 %v197_v2, %v41_v9  ;;  %v46_v12 = vsel %vm32_vm0, %v44_v10, 0.0 }
  0x9a   :  { %47 = vadd.xlane.f32.xlu1 %v46_v12 }
  0x9b   :  { %v45_v13 = vmul.f32 %v43_v11, %v43_v11  ;;  %v80_v44 = vmul.f32 %v78_v40, %v43_v11 }
  0x9d   :  { %v49_v14 = vsel %vm32_vm0, %v45_v13, 0.0 }
  0x9e   :  { %50 = vadd.xlane.f32.xlu1 %v49_v14 }
 0x127   :  { %v48_v18 = vpop.xlane.xlu1 %47 }
 0x128   :  { %v53_v19 = vmul.f32 0.032258064, %v48_v18 }
 0x12a   :  { %213 = vrsqrt.f32 %v53_v19  ;;  %vm57_vm3 = vcmp.eq.f32.partialorder %v53_v19, inf  ;;  %v60_v25 = vand.u32 2147483648, %v53_v19  ;;  %vm59_vm4 = vcmp.eq.f32.partialorder %v53_v19, 0.0 }
 0x12b   :  { %v51_v20 = vpop.xlane.xlu1 %50 }
 0x12c   :  { %v54_v21 = vmul.f32 0.032258064, %v51_v20 }
 0x12e   :  { %215 = vrsqrt.f32 %v54_v21  ;;  %vm64_vm5 = vcmp.eq.f32.partialorder %v54_v21, inf  ;;  %v67_v32 = vand.u32 2147483648, %v54_v21  ;;  %vm66_vm6 = vcmp.eq.f32.partialorder %v54_v21, 0.0 }
 0x134   :  { %v214_v22 = vpop.eup %213 }
 0x135   :  { %v56_v23 = vmul.f32 %v214_v22, %v53_v19 }
 0x137   :  { %v58_v26 = vsel %vm57_vm3, %v53_v19, %v56_v23 }
 0x138   :  { %v216_v27 = vpop.eup %215  ;;  %v61_v28 = vsel %vm59_vm4, %v60_v25, %v58_v26 }
 0x139   :  { %v69_v29 = vadd.f32 1e-06, %v61_v28  ;;  %v63_v30 = vmul.f32 %v216_v27, %v54_v21 }
 0x13b   :  { %217 = vrcp.f32 %v69_v29  ;;  %v65_v34 = vsel %vm64_vm5, %v54_v21, %v63_v30 }
 0x13c   :  { %v68_v35 = vsel %vm66_vm6, %v67_v32, %v65_v34 }
 0x13d   :  { %v70_v36 = vadd.f32 1e-06, %v68_v35 }
 0x13f   :  { %219 = vrcp.f32 %v70_v36 }
 0x145   :  { %v218_v42 = vpop.eup %217 }
 0x146   :  { %v81_v45 = vmul.f32 %v218_v42, %v79_v43 }
 0x148   :  { %v89_v49 = vadd.f32 %v88_v46, %v81_v45 }
 0x149   :  { %v220_v47 = vpop.eup %219 }
 0x14a   :  { %v82_v48 = vmul.f32 %v220_v47, %v80_v44 }
 0x14c   :  { %v90_v50 = vadd.f32 %v88_v46, %v82_v48 }
 0x14e   :  { %v91_v51 = vpack.c.bf16 %v90_v50, %v89_v49 }
 0x150   :  { %206 = vmatmul.mubr.msk.bf16.vlgmr.msra.gmra.mrb[0].mxu0 %vm32_vm0, %v91_v51 }
 0x223   :  { %v147_v54 = vpop.f32.mrb[0].mxu0 }
 0x224   :  { %v154_v56 = vadd.f32 %v147_v54, %v92_v52  ;;  %v207_v57 = vpop.f32.mrb[1].mxu0 }
 0x225   :  { %v150_v58 = vpop.f32.mrb[2].mxu0 }
 0x226   :  { %157 = vst.msk [vmem:[#allocation2] sm:$0xff] %vm25_vm2, %v154_v56  ;;  %v155_v60 = vadd.f32 %v150_v58, %v93_v55  ;;  %v208_v61 = vpop.f32.mrb[3].mxu0 }
 0x228   :  { %158 = vst.msk [vmem:[#allocation2 + $0x8] sm:$0xff] %vm25_vm2, %v155_v60 }
 0x22d   :  { %v162_v63 = vld [vmem:[#allocation2] sm:$0xff] }
 0x22e   :  { %v170_v0 = vadd.f32 %v169_v62, %v162_v63 }
 0x22f   :  { %v163_v1 = vld [vmem:[#allocation2 + $0x8] sm:$0xff] }
 0x230   :  { %v192_v2 = vpack.c.bf16 %v170_v0, %v170_v0  ;;  %v171_v3 = vadd.f32 %v169_v62, %v163_v1 }
 0x232   :  { %181 = vst.msk [vmem:[%s291_s5] sm:$0xf] %vm180_vm7, %v192_v2  ;;  %v193_v4 = vpack.c.bf16 %v171_v3, %v171_v3 }
 0x234   :  { %182 = vst.msk [vmem:[%s291_s5 + $0x4] sm:$0xf] %vm180_vm7, %v193_v4 }

// kernel: encoder_decoder_forward.42
= control target key start
LH: loop header
LB: loop body
LE: loop exit
PB: predicated region body
PF: predicated region fallthrough
CT: control target
= control target key end

     0   :  { %s1263_s15 = smov 0   ;;  %s1265_s16 = smov 0   ;;  %s1455_s0 = inlined_call_operand.vmem [shape: bf16[2,4,8,8], index: 0, kind: input, shape index: {}]   ;;  %s1456_s1 = inlined_call_operand.vmem [shape: bf16[2,4,8,8], index: 1, kind: input, shape index: {}]   ;;  %s1457_s2 = inlined_call_operand.vmem [shape: bf16[2,4,8,8], index: 2, kind: input, shape index: {}]   ;;  %s1458_s3 = inlined_call_operand.vmem [shape: f32[2,8,8], index: 3, kind: input, shape index: {}]   ;;  %s1459_s4 = inlined_call_operand.vmem [shape: bf16[2,4,8,8], index: 4, kind: output, shape index: {}]  }
   0x1   :  { %s1267_s17 = smov 0  }
   0x2 LB: > { %s33_s18 = sadd.s32 1, %s1228_s16  ;;  %p1068_p0 = scmp.ge.s32.totalorder %s1232_s17, 1  ;;  %s1232_s17 = sphi %s1267_s17, %s14_s17   ;;  %s1228_s16 = sphi %s1265_s16, %s1461_s16   ;;  %s1224_s15 = sphi %s1263_s15, %s1460_s15  }
   0x3   : > { %p35_p1 = scmp.ge.s32.totalorder %s33_s18, 2  ;;  %p237_p2 = scmp.lt.s32.totalorder %s1232_s17, 3 }
   0x5   : > { %s1463_s18 = smov (%p35_p1, %s33_s18), 0  ;;  %p238_p3 = pnand %p1068_p0, %p237_p2 }
   0x6   : > { %p295_p4 = scmp.lt.s32.totalorder (!%p238_p3), %s1224_s15, 1  ;;  %vm351_vm0 = vcmask (!%p238_p3), 64512   ;;  %v1234_v0 = vmov (!%p238_p3), 0.0   ;;  %vm1235_vm1 = vmmov (!%p238_p3), 0   ;;  %vm373_vm2 = vcmask (!%p238_p3), 1043456  }
   0x7   : > { %241 = sbr.rel (%p238_p3) target bundleno = 833 (0x341), region = 36  ;;  %1108 = vmatprep.subr.bf16.mxu0 (!%p238_p3), %v1234_v0  ;;  %1114 = vmatprep.subr.bf16.mxu1 (!%p238_p3), %v1234_v0  ;;  %352 = vst.msk [vmem:[#allocation4] sm:$0xff] (!%p238_p3), %vm351_vm0, %v1234_v0  ;;  %353 = vst.msk [vmem:[#allocation4 + $0x8] sm:$0xff] (!%p238_p3), %vm351_vm0, %v1234_v0  ;;  %vm342_vm3 = vcmask (!%p238_p3), 7168   ;;  %v1236_v13 = vmov (!%p238_p3), -1e+30  }
   0x8   : > { %354 = vst.msk [vmem:[#allocation4 + $0x10] sm:$0xff] (!%p238_p3), %vm351_vm0, %v1234_v0  ;;  %355 = vst.msk [vmem:[#allocation4 + $0x18] sm:$0xff] (!%p238_p3), %vm351_vm0, %v1234_v0  ;;  %1110 = vmatprep.mubr.msk.bf16.mxu0 (!%p238_p3), %vm1235_vm1, %v1234_v0  ;;  %1116 = vmatprep.mubr.msk.bf16.mxu1 (!%p238_p3), %vm1235_vm1, %v1234_v0  ;;  %v1237_v39 = vmov (!%p238_p3), 0   ;;  %vm919_vm4 = vcmask (!%p238_p3), 60416  }
   0x9   : > { %343 = vst.msk [vmem:[#allocation2] sm:$0xff] (!%p238_p3), %vm342_vm3, %v1236_v13  ;;  %344 = vst.msk [vmem:[#allocation2 + $0x8] sm:$0xff] (!%p238_p3), %vm342_vm3, %v1236_v13  ;;  %1184 = vset.pattern.permute.xlu0 (!%p238_p3), %v1237_v39  ;;  %1185 = vset.pattern.permute.xlu1 (!%p238_p3), %v1237_v39 }
   0xa   : > { %345 = vst.msk [vmem:[#allocation2 + $0x10] sm:$0xff] (!%p238_p3), %vm342_vm3, %v1236_v13  ;;  %346 = vst.msk [vmem:[#allocation2 + $0x18] sm:$0xff] (!%p238_p3), %vm342_vm3, %v1236_v13 }
   0xb   : > { %347 = vst.msk [vmem:[#allocation3] sm:$0xff] (!%p238_p3), %vm342_vm3, %v1234_v0  ;;  %348 = vst.msk [vmem:[#allocation3 + $0x8] sm:$0xff] (!%p238_p3), %vm342_vm3, %v1234_v0 }
   0xc   : > { %349 = vst.msk [vmem:[#allocation3 + $0x10] sm:$0xff] (!%p238_p3), %vm342_vm3, %v1234_v0  ;;  %350 = vst.msk [vmem:[#allocation3 + $0x18] sm:$0xff] (!%p238_p3), %vm342_vm3, %v1234_v0 }
   0xe   : > { %s1465_s15 = smov (!%p295_p4, %s1224_s15), 1 }
   0xf   : > { %s1298_s19 = sshll.u32 %s1465_s15, 4  ;;  %s1075_s26 = sshll.u32 %s1465_s15, 3 }
  0x10   : > { %s310_s22 = scalar_lea.vmem %s1456_s1, %s1298_s19  ;;  %s302_s25 = scalar_lea.vmem %s1455_s0, %s1298_s19  ;;  %v1354_v40 = vld [vmem:[#allocation2] sm:$0xff]  ;;  %v1359_v43 = vld [vmem:[#allocation2 + $0x8] sm:$0xff] }
  0x11   : > { %v360_v1 = vld [vmem:[%s310_s22] sm:$0xf]  ;;  %v361_v2 = vld [vmem:[%s310_s22 + $0x4] sm:$0xf]  ;;  %v362_v5 = vld [vmem:[%s310_s22 + $0x8] sm:$0xf]  ;;  %s328_s29 = scalar_lea.vmem %s1458_s3, %s1075_s26  ;;  %s1393_s6 = scalar_lea.vmem %s1457_s2, %s1298_s19 }
  0x12   : > { %v375_v3 = vsel %vm373_vm2, %v360_v1, 0  ;;  %v421_v4 = vsel %vm373_vm2, %v361_v2, 0  ;;  %v356_v6 = vld [vmem:[%s302_s25] sm:$0xf]  ;;  %v357_v7 = vld [vmem:[%s302_s25 + $0x4] sm:$0xf]  ;;  %s336_s9 = scalar_lea.vmem %s1459_s4, %s1298_s19 }
  0x13   : > { %1109 = vmatpush3.bf16.msra.mxu0 %v375_v3  ;;  %1115 = vmatpush3.bf16.msra.mxu1 %v421_v4  ;;  %v363_v8 = vld [vmem:[%s310_s22 + $0xc] sm:$0xf]  ;;  %v467_v9 = vsel %vm373_vm2, %v362_v5, 0  ;;  %v358_v11 = vld [vmem:[%s302_s25 + $0x8] sm:$0xf]  ;;  %v368_v14 = vld [vmem:[%s328_s29] sm:$0xff] }
  0x14   : > { %1120 = vmatprep.subr.bf16.mxu0 %v1234_v0  ;;  %1126 = vmatprep.subr.bf16.mxu1 %v1234_v0  ;;  %v513_v10 = vsel %vm373_vm2, %v363_v8, 0  ;;  %v359_v12 = vld [vmem:[%s302_s25 + $0xc] sm:$0xf]  ;;  %v1369_v47 = vld [vmem:[#allocation2 + $0x10] sm:$0xff]  ;;  %v1379_v51 = vld [vmem:[#allocation2 + $0x18] sm:$0xff] }
  0x15   : > { %v364_v56 = vld [vmem:[%s1393_s6] sm:$0xf]  ;;  %v365_v58 = vld [vmem:[%s1393_s6 + $0x4] sm:$0xf]  ;;  %v366_v8 = vld [vmem:[%s1393_s6 + $0x8] sm:$0xf] }
  0x16   : > { %1111 = vmatmul.mubr.msk.bf16.vlgmr.msra.gmra.mrb[0].mxu0 %vm351_vm0, %v356_v6  ;;  %1117 = vmatmul.mubr.msk.bf16.vlgmr.msra.gmra.mrb[0].mxu1 %vm351_vm0, %v357_v7  ;;  %v684_v57 = vsel %vm373_vm2, %v364_v56, 0  ;;  %v730_v59 = vsel %vm373_vm2, %v365_v58, 0  ;;  %v776_v13 = vsel %vm373_vm2, %v366_v8, 0  ;;  %v621_v39 = vld [vmem:[#allocation3 + $0x10] sm:$0xff]  ;;  %v648_v56 = vld [vmem:[#allocation4] sm:$0xff] }
  0x17   : > { %1121 = vmatpush3.bf16.msra.mxu0 %v467_v9  ;;  %1127 = vmatpush3.bf16.msra.mxu1 %v513_v10 }
  0x18   : > { %1122 = vmatprep.mubr.msk.bf16.mxu0 %vm1235_vm1, %v1234_v0  ;;  %1128 = vmatprep.mubr.msk.bf16.mxu1 %vm1235_vm1, %v1234_v0 }
  0x19   : > { %1132 = vmatprep.subr.bf16.mxu0 %v1234_v0  ;;  %1138 = vmatprep.subr.bf16.mxu1 %v1234_v0 }
  0x1e   : > { %1123 = vmatmul.mubr.msk.bf16.vlgmr.msra.gmra.mrb[4].mxu0 %vm351_vm0, %v358_v11  ;;  %1129 = vmatmul.mubr.msk.bf16.vlgmr.msra.gmra.mrb[4].mxu1 %vm351_vm0, %v359_v12 }
  0x1f   : > { %1134 = vmatprep.mubr.msk.bf16.mxu0 %vm1235_vm1, %v1234_v0  ;;  %1140 = vmatprep.mubr.msk.bf16.mxu1 %vm1235_vm1, %v1234_v0 }
  0x20   : > { %1133 = vmatpush3.bf16.msra.mxu0 %v684_v57  ;;  %1139 = vmatpush3.bf16.msra.mxu1 %v730_v59  ;;  %v649_v59 = vld [vmem:[#allocation4 + $0x8] sm:$0xff] }
  0x21   : > { %1144 = vmatprep.subr.bf16.mxu0 %v1234_v0  ;;  %1150 = vmatprep.subr.bf16.mxu1 %v1234_v0 }
  0xe9   : > { %v411_v15 = vpop.f32.mrb[0].mxu0  ;;  %v457_v16 = vpop.f32.mrb[0].mxu1 }
  0xea   : > { %v1344_v17 = vadd.f32 %v411_v15, %v368_v14  ;;  %v1112_v18 = vpop.f32.mrb[1].mxu0  ;;  %v1346_v19 = vadd.f32 %v457_v16, %v368_v14  ;;  %v1118_v20 = vpop.f32.mrb[1].mxu1 }
  0xeb   : > { %v414_v21 = vpop.f32.mrb[2].mxu0  ;;  %v460_v22 = vpop.f32.mrb[2].mxu1 }
  0xec   : > { %v1113_v23 = vpop.f32.mrb[3].mxu0  ;;  %v559_v24 = vsel %vm351_vm0, %v1344_v17, -inf  ;;  %v1119_v25 = vpop.f32.mrb[3].mxu1  ;;  %v562_v26 = vsel %vm351_vm0, %v1346_v19, -inf }
  0xed   : > { %560 = vmax.xlane.f32.xlu0 %v559_v24 }
  0xf1   : > { %563 = vmax.xlane.f32.xlu0 %v562_v26  ;;  %v503_v27 = vpop.f32.mrb[4].mxu0  ;;  %v549_v28 = vpop.f32.mrb[4].mxu1 }
  0xf2   : > { %v504_v29 = vadd.f32 %v503_v27, %v368_v14  ;;  %v1124_v30 = vpop.f32.mrb[5].mxu0  ;;  %v550_v31 = vadd.f32 %v549_v28, %v368_v14  ;;  %v1130_v32 = vpop.f32.mrb[5].mxu1  ;;  %v367_v14 = vld [vmem:[%s1393_s6 + $0xc] sm:$0xf] }
  0xf3   : > { %v506_v33 = vpop.f32.mrb[6].mxu0  ;;  %v552_v34 = vpop.f32.mrb[6].mxu1  ;;  %v822_v18 = vsel %vm373_vm2, %v367_v14, 0  ;;  %v619_v32 = vld [vmem:[#allocation3] sm:$0xff] }
  0xf4   : > { %v1125_v35 = vpop.f32.mrb[7].mxu0  ;;  %v565_v36 = vsel %vm351_vm0, %v504_v29, -inf  ;;  %v1131_v37 = vpop.f32.mrb[7].mxu1  ;;  %v568_v38 = vsel %vm351_vm0, %v550_v31, -inf }
  0xf5   : > { %566 = vmax.xlane.f32.xlu1 %v565_v36  ;;  %v620_v35 = vld [vmem:[#allocation3 + $0x8] sm:$0xff] }
  0xf9   : > { %569 = vmax.xlane.f32.xlu1 %v568_v38 }
 0x17a   : > { %v561_v41 = vpop.xlane.xlu0 %560 }
 0x17b   : > { %v1357_v42 = vmax.f32 %v1354_v40, %v561_v41 }
 0x17d   : > { %v575_v44 = vsub.f32 %v1354_v40, %v1357_v42  ;;  %872 = vst.msk [vmem:[#allocation2] sm:$0xff] %vm342_vm3, %v1357_v42  ;;  %589 = vperm.xlu0 %1184, %v1357_v42  }
 0x17e   : > { %v564_v45 = vpop.xlane.xlu0 %563 }
 0x17f   : > { %v1367_v46 = vmax.f32 %v1359_v43, %v564_v45  ;;  %v579_v26 = vmul.f32 1.442695, %v575_v44 }
 0x181   : > { %v576_v48 = vsub.f32 %v1359_v43, %v1367_v46  ;;  %873 = vst.msk [vmem:[#allocation2 + $0x8] sm:$0xff] %vm342_vm3, %v1367_v46  ;;  %594 = vperm.xlu1 %1185, %v1367_v46   ;;  %v622_v43 = vld [vmem:[#allocation3 + $0x18] sm:$0xff] }
 0x182   : > { %v567_v49 = vpop.xlane.xlu1 %566 }
 0x183   : > { %v1377_v50 = vmax.f32 %v1369_v47, %v567_v49  ;;  %v581_v23 = vmul.f32 1.442695, %v576_v48 }
 0x185   : > { %v577_v52 = vsub.f32 %v1369_v47, %v1377_v50  ;;  %874 = vst.msk [vmem:[#allocation2 + $0x10] sm:$0xff] %vm342_vm3, %v1377_v50  ;;  %599 = vperm.xlu1 %1185, %v1377_v50  }
 0x186   : > { %v570_v53 = vpop.xlane.xlu1 %569 }
 0x187   : > { %v1387_v54 = vmax.f32 %v1379_v51, %v570_v53 }
 0x189   : > { %v578_v55 = vsub.f32 %v1379_v51, %v1387_v54  ;;  %875 = vst.msk [vmem:[#allocation2 + $0x18] sm:$0xff] %vm342_vm3, %v1387_v54  ;;  %604 = vperm.xlu1 %1185, %v1387_v54  }
 0x18b   : > { %v585_v27 = vmul.f32 1.442695, %v578_v55 }
 0x1fc   : > { %v590_v60 = vpop.permute.xlu0 %589 }
 0x1fd   : > { %v607_v61 = vsub.f32 %v1344_v17, %v590_v60 }
 0x1ff   : > { %v611_v62 = vmul.f32 1.442695, %v607_v61 }
 0x200   : > { %v595_v63 = vpop.permute.xlu1 %594 }
 0x201   : > { %1186 = vpow2.f32 %v611_v62  ;;  %v608_v1 = vsub.f32 %v1346_v19, %v595_v63 }
 0x203   : > { %v613_v2 = vmul.f32 1.442695, %v608_v1 }
 0x204   : > { %v600_v3 = vpop.permute.xlu1 %599 }
 0x205   : > { %1188 = vpow2.f32 %v613_v2  ;;  %v609_v4 = vsub.f32 %v504_v29, %v600_v3 }
 0x207   : > { %v615_v5 = vmul.f32 1.442695, %v609_v4 }
 0x208   : > { %v605_v6 = vpop.permute.xlu1 %604 }
 0x209   : > { %1190 = vpow2.f32 %v615_v5  ;;  %v610_v7 = vsub.f32 %v550_v31, %v605_v6  ;;  %v650_v5 = vld [vmem:[#allocation4 + $0x10] sm:$0xff] }
 0x20b   : > { %v1187_v9 = vpop.eup %1186  ;;  %v617_v10 = vmul.f32 1.442695, %v610_v7 }
 0x20c   : > { %v627_v11 = vsel %vm351_vm0, %v1187_v9, 0.0  ;;  %v676_v12 = vpack.c.bf16 %v1187_v9, %v1187_v9 }
 0x20d   : > { %1192 = vpow2.f32 %v617_v10  ;;  %628 = vadd.xlane.f32.xlu1 %v627_v11 }
 0x20e   : > { %1135 = vmatmul.mubr.msk.bf16.vlgmr.msra.gmra.mrb[8].mxu0 %vm351_vm0, %v676_v12  ;;  %1194 = vpow2.f32 %v581_v23  ;;  %v651_v12 = vld [vmem:[#allocation4 + $0x18] sm:$0xff] }
 0x20f   : > { %v1189_v15 = vpop.eup %1188  ;;  %1145 = vmatpush3.bf16.msra.mxu0 %v776_v13  ;;  %1146 = vmatprep.mubr.msk.bf16.mxu0 %vm1235_vm1, %v1234_v0  ;;  %1196 = vpow2.f32 %v579_v26 }
 0x210   : > { %v630_v16 = vsel %vm351_vm0, %v1189_v15, 0.0  ;;  %v677_v17 = vpack.c.bf16 %v1189_v15, %v1189_v15 }
 0x211   : > { %631 = vadd.xlane.f32.xlu0 %v630_v16 }
 0x212   : > { %1141 = vmatmul.mubr.msk.bf16.vlgmr.msra.gmra.mrb[8].mxu1 %vm351_vm0, %v677_v17 }
 0x213   : > { %v1191_v19 = vpop.eup %1190  ;;  %1151 = vmatpush3.bf16.msra.mxu1 %v822_v18  ;;  %1152 = vmatprep.mubr.msk.bf16.mxu1 %vm1235_vm1, %v1234_v0  ;;  %v583_v0 = vmul.f32 1.442695, %v577_v52 }
 0x214   : > { %v633_v20 = vsel %vm351_vm0, %v1191_v19, 0.0  ;;  %v678_v21 = vpack.c.bf16 %v1191_v19, %v1191_v19 }
 0x215   : > { %634 = vadd.xlane.f32.xlu1 %v633_v20  ;;  %1198 = vpow2.f32 %v583_v0 }
 0x216   : > { %1147 = vmatmul.mubr.msk.bf16.vlgmr.msra.gmra.mrb[12].mxu0 %vm351_vm0, %v678_v21  ;;  %1200 = vpow2.f32 %v585_v27 }
 0x217   : > { %v1193_v22 = vpop.eup %1192 }
 0x218   : > { %v636_v24 = vsel %vm351_vm0, %v1193_v22, 0.0  ;;  %v679_v25 = vpack.c.bf16 %v1193_v22, %v1193_v22  ;;  %v1195_v28 = vpop.eup %1194 }
 0x219   : > { %637 = vadd.xlane.f32.xlu1 %v636_v24  ;;  %v1197_v29 = vpop.eup %1196  ;;  %v624_v37 = vmul.f32 %v1195_v28, %v620_v35 }
 0x21a   : > { %1153 = vmatmul.mubr.msk.bf16.vlgmr.msra.gmra.mrb[12].mxu1 %vm351_vm0, %v679_v25  ;;  %v623_v33 = vmul.f32 %v1197_v29, %v619_v32 }
 0x21f   : > { %v1199_v30 = vpop.eup %1198 }
 0x220   : > { %v1201_v31 = vpop.eup %1200  ;;  %v625_v41 = vmul.f32 %v1199_v30, %v621_v39 }
 0x221   : > { %v626_v46 = vmul.f32 %v1201_v31, %v622_v43 }
 0x227   : > { %659 = vperm.xlu0 %1184, %v1195_v28  }
 0x22a   : > { %654 = vperm.xlu1 %1185, %v1197_v29  }
 0x22e   : > { %664 = vperm.xlu1 %1185, %v1199_v30  }
 0x232   : > { %669 = vperm.xlu1 %1185, %v1201_v31  }
 0x29a   : > { %v629_v34 = vpop.xlane.xlu1 %628 }
 0x29b   : > { %v639_v36 = vadd.f32 %v629_v34, %v623_v33 }
 0x29d   : > { %644 = vst.msk [vmem:[#allocation3] sm:$0xff] %vm342_vm3, %v639_v36 }
 0x29e   : > { %v632_v38 = vpop.xlane.xlu0 %631 }
 0x29f   : > { %v640_v40 = vadd.f32 %v632_v38, %v624_v37 }
 0x2a1   : > { %645 = vst.msk [vmem:[#allocation3 + $0x8] sm:$0xff] %vm342_vm3, %v640_v40 }
 0x2a2   : > { %v635_v42 = vpop.xlane.xlu1 %634 }
 0x2a3   : > { %v641_v44 = vadd.f32 %v635_v42, %v625_v41 }
 0x2a4   : > { %v883_v45 = vld [vmem:[#allocation3] sm:$0xff] }
 0x2a5   : > { %646 = vst.msk [vmem:[#allocation3 + $0x10] sm:$0xff] %vm342_vm3, %v641_v44  ;;  %1202 = vrcp.f32 %v883_v45 }
 0x2a6   : > { %v638_v47 = vpop.xlane.xlu1 %637  ;;  %v660_v60 = vpop.permute.xlu0 %659 }
 0x2a7   : > { %v642_v48 = vadd.f32 %v638_v47, %v626_v46  ;;  %v673_v3 = vmul.f32 %v660_v60, %v649_v59 }
 0x2a8   : > { %v884_v49 = vld [vmem:[#allocation3 + $0x8] sm:$0xff] }
 0x2a9   : > { %647 = vst.msk [vmem:[#allocation3 + $0x18] sm:$0xff] %vm342_vm3, %v642_v48  ;;  %1204 = vrcp.f32 %v884_v49 }
 0x2aa   : > { %v655_v57 = vpop.permute.xlu1 %654 }
 0x2ab   : > { %v672_v58 = vmul.f32 %v655_v57, %v648_v56 }
 0x2ac   : > { %v885_v50 = vld [vmem:[#allocation3 + $0x10] sm:$0xff] }
 0x2ad   : > { %1206 = vrcp.f32 %v885_v50 }
 0x2ae   : > { %v665_v1 = vpop.permute.xlu1 %664 }
 0x2af   : > { %v1203_v51 = vpop.eup %1202  ;;  %v674_v10 = vmul.f32 %v665_v1, %v650_v5 }
 0x2b0   : > { %893 = vperm.xlu1 %1185, %v1203_v51   ;;  %v886_v52 = vld [vmem:[#allocation3 + $0x18] sm:$0xff] }
 0x2b1   : > { %1208 = vrcp.f32 %v886_v52 }
 0x2b2   : > { %v670_v13 = vpop.permute.xlu1 %669 }
 0x2b3   : > { %v1205_v53 = vpop.eup %1204  ;;  %v675_v18 = vmul.f32 %v670_v13, %v651_v12 }
 0x2b4   : > { %898 = vperm.xlu0 %1184, %v1205_v53  }
 0x2b7   : > { %v1207_v54 = vpop.eup %1206 }
 0x2b8   : > { %903 = vperm.xlu1 %1185, %v1207_v54  }
 0x2bb   : > { %v1209_v55 = vpop.eup %1208 }
 0x2bc   : > { %908 = vperm.xlu0 %1184, %v1209_v55  }
 0x2e1   : > { %v720_v61 = vpop.f32.mrb[8].mxu0 }
 0x2e2   : > { %v864_v62 = vadd.f32 %v720_v61, %v672_v58  ;;  %v1136_v63 = vpop.f32.mrb[9].mxu0 }
 0x2e3   : > { %v723_v2 = vpop.f32.mrb[10].mxu0 }
 0x2e4   : > { %868 = vst.msk [vmem:[#allocation4] sm:$0xff] %vm351_vm0, %v864_v62  ;;  %v1137_v4 = vpop.f32.mrb[11].mxu0 }
 0x2e5   : > { %v766_v6 = vpop.f32.mrb[8].mxu1 }
 0x2e6   : > { %v865_v7 = vadd.f32 %v766_v6, %v673_v3  ;;  %v1142_v8 = vpop.f32.mrb[9].mxu1 }
 0x2e7   : > { %v769_v9 = vpop.f32.mrb[10].mxu1 }
 0x2e8   : > { %869 = vst.msk [vmem:[#allocation4 + $0x8] sm:$0xff] %vm351_vm0, %v865_v7  ;;  %v1143_v11 = vpop.f32.mrb[11].mxu1 }
 0x2e9   : > { %v812_v14 = vpop.f32.mrb[12].mxu0 }
 0x2ea   : > { %v866_v15 = vadd.f32 %v812_v14, %v674_v10  ;;  %v1148_v16 = vpop.f32.mrb[13].mxu0 }
 0x2eb   : > { %v815_v17 = vpop.f32.mrb[14].mxu0  ;;  %v879_v26 = vld [vmem:[#allocation4] sm:$0xff] }
 0x2ec   : > { %870 = vst.msk [vmem:[#allocation4 + $0x10] sm:$0xff] %vm351_vm0, %v866_v15  ;;  %v1149_v19 = vpop.f32.mrb[15].mxu0 }
 0x2ed   : > { %v858_v20 = vpop.f32.mrb[12].mxu1 }
 0x2ee   : > { %v867_v21 = vadd.f32 %v858_v20, %v675_v18  ;;  %v1154_v22 = vpop.f32.mrb[13].mxu1 }
 0x2ef   : > { %v861_v23 = vpop.f32.mrb[14].mxu1  ;;  %v880_v28 = vld [vmem:[#allocation4 + $0x8] sm:$0xff] }
 0x2f0   : > { %871 = vst.msk [vmem:[#allocation4 + $0x18] sm:$0xff] %vm351_vm0, %v867_v21  ;;  %v1155_v24 = vpop.f32.mrb[15].mxu1 }
 0x2f3   : > { %v881_v33 = vld [vmem:[#allocation4 + $0x10] sm:$0xff] }
 0x2f7   : > { %v882_v37 = vld [vmem:[#allocation4 + $0x18] sm:$0xff] }
 0x32f   : > { %v894_v25 = vpop.permute.xlu1 %893 }
 0x330   : > { %v911_v0 = vmul.f32 %v894_v25, %v879_v26 }
 0x332   : > { %v915_v27 = vpack.c.bf16 %v911_v0, %v911_v0 }
 0x333   : > { %v899_v29 = vpop.permute.xlu0 %898 }
 0x334   : > { %920 = vst.msk [vmem:[%s336_s9] sm:$0xf] %vm919_vm4, %v915_v27  ;;  %v912_v30 = vmul.f32 %v899_v29, %v880_v28 }
 0x336   : > { %v916_v31 = vpack.c.bf16 %v912_v30, %v912_v30 }
 0x337   : > { %v904_v32 = vpop.permute.xlu1 %903 }
 0x338   : > { %921 = vst.msk [vmem:[%s336_s9 + $0x4] sm:$0xf] %vm919_vm4, %v916_v31  ;;  %v913_v34 = vmul.f32 %v904_v32, %v881_v33 }
 0x33a   : > { %v917_v35 = vpack.c.bf16 %v913_v34, %v913_v34 }
 0x33b   : > { %v909_v36 = vpop.permute.xlu0 %908 }
 0x33c   : > { %922 = vst.msk [vmem:[%s336_s9 + $0x8] sm:$0xf] %vm919_vm4, %v917_v35  ;;  %v914_v38 = vmul.f32 %v909_v36, %v882_v37 }
 0x33e   : > { %v918_v39 = vpack.c.bf16 %v914_v38, %v914_v38 }
 0x340   : > { %923 = vst.msk [vmem:[%s336_s9 + $0xc] sm:$0xf] %vm919_vm4, %v918_v39 }
 0x341 PF: > { %s14_s17 = sadd.s32 1, %s1232_s17   ;;  %s1460_s15 = smov %s1228_s16 }
 0x342   : > { %p11_p5 = scmp.ge.s32.totalorder %s14_s17, 4   ;;  %s1461_s16 = smov %s1463_s18 }
 0x344   :  { %13 = sbr.rel (!%p11_p5) target bundleno = 2 (0x2), region = 83 }

// kernel: encoder_decoder_forward.44
= control target key start
LH: loop header
LB: loop body
LE: loop exit
PB: predicated region body
PF: predicated region fallthrough
CT: control target
= control target key end

     0   :  { %vm25_vm0 = vcmask 261120   ;;  %v220_v15 = vmov 0.0   ;;  %vm221_vm1 = vmmov 0   ;;  %v75_v24 = vlaneseq  ;;  %s285_s0 = inlined_call_operand.vmem [shape: bf16[16,32], index: 0, kind: input, shape index: {}]   ;;  %s286_s1 = inlined_call_operand.vmem [shape: bf16[32,32], index: 1, kind: input, shape index: {}]   ;;  %s287_s3 = inlined_call_operand.vmem [shape: bf16[1,32], index: 3, kind: input, shape index: {}]   ;;  %s288_s4 = inlined_call_operand.vmem [shape: bf16[1,32], index: 4, kind: input, shape index: {}]   ;;  %s289_s2 = inlined_call_operand.vmem [shape: bf16[1,32], index: 2, kind: input, shape index: {}]   ;;  %s290_s5 = inlined_call_operand.vmem [shape: bf16[16,32], index: 5, kind: output, shape index: {}]  }
   0x1   :  { %v194_v0 = vld [vmem:[%s285_s0] sm:$0xff]   ;;  %200 = vmatprep.subr.bf16.mxu0 %v220_v15  ;;  %26 = vst.msk [vmem:[#allocation2] sm:$0xff] %vm25_vm0, %v220_v15  ;;  %27 = vst.msk [vmem:[#allocation2 + $0x8] sm:$0xff] %vm25_vm0, %v220_v15  ;;  %204 = vmatprep.mubr.msk.bf16.mxu0 %vm221_vm1, %v220_v15  ;;  %v211_v17 = vld [vmem:[%s286_s1 + $0x8] sm:$0xff]   ;;  %vm179_vm6 = vcmask 257024  }
   0x2   :  { %v195_v1 = vunpack.c.l.bf16 %v194_v0  ;;  %v196_v2 = vunpack.c.h.bf16 %v194_v0  ;;  %v210_v16 = vld [vmem:[%s286_s1] sm:$0xff]   ;;  %v76_v31 = vshrl.u32 %v75_v24, 7 }
   0x3   :  { %201 = vmatpush3.bf16.msra.mxu0 %v210_v16  ;;  %v73_v33 = vld [vmem:[%s287_s3] sm:$0x1] }
   0x4   :  { %v33_v3 = vsel %vm25_vm0, %v195_v1, 0.0  ;;  %v36_v4 = vsel %vm25_vm0, %v196_v2, 0.0  ;;  %202 = vmatprep.subr.bf16.mxu0 %v220_v15  ;;  %v74_v37 = vunpack.c.l.bf16 %v73_v33  ;;  %v77_v38 = vsub.s32 0, %v76_v31  ;;  %v83_v39 = vld [vmem:[%s288_s4] sm:$0x1] }
   0x5   :  { %34 = vadd.xlane.f32.xlu0 %v33_v3  ;;  %v84_v41 = vunpack.c.l.bf16 %v83_v39  ;;  %v163_v53 = vld [vmem:[%s289_s2] sm:$0x1] }
   0x6   :  { %v78_v40 = vrot.slane %v74_v37, %v77_v38  ;;  %v164_v59 = vunpack.c.l.bf16 %v163_v53 }
   0x7   :  { %203 = vmatpush3.bf16.msra.mxu0 %v211_v17  ;;  %v88_v46 = vrot.slane %v84_v41, %v77_v38 }
   0x8   :  { %v92_v52 = vld [vmem:[#allocation2] sm:$0xff]  ;;  %v93_v55 = vld [vmem:[#allocation2 + $0x8] sm:$0xff]  ;;  %v168_v62 = vrot.slane %v164_v59, %v77_v38 }
   0x9   :  { %37 = vadd.xlane.f32.xlu0 %v36_v4 }
  0x92   :  { %v35_v5 = vpop.xlane.xlu0 %34 }
  0x93   :  { %v40_v6 = vmul.f32 0.03125, %v35_v5 }
  0x95   :  { %v42_v7 = vsub.f32 %v195_v1, %v40_v6 }
  0x96   :  { %v38_v8 = vpop.xlane.xlu0 %37 }
  0x97   :  { %v41_v9 = vmul.f32 0.03125, %v38_v8  ;;  %v44_v10 = vmul.f32 %v42_v7, %v42_v7  ;;  %v79_v43 = vmul.f32 %v78_v40, %v42_v7 }
  0x99   :  { %v43_v11 = vsub.f32 %v196_v2, %v41_v9  ;;  %v46_v12 = vsel %vm25_vm0, %v44_v10, 0.0 }
  0x9a   :  { %47 = vadd.xlane.f32.xlu1 %v46_v12 }
  0x9b   :  { %v45_v13 = vmul.f32 %v43_v11, %v43_v11  ;;  %v80_v44 = vmul.f32 %v78_v40, %v43_v11 }
  0x9d   :  { %v49_v14 = vsel %vm25_vm0, %v45_v13, 0.0 }
  0x9e   :  { %50 = vadd.xlane.f32.xlu1 %v49_v14 }
 0x127   :  { %v48_v18 = vpop.xlane.xlu1 %47 }
 0x128   :  { %v53_v19 = vmul.f32 0.032258064, %v48_v18 }
 0x12a   :  { %212 = vrsqrt.f32 %v53_v19  ;;  %vm57_vm2 = vcmp.eq.f32.partialorder %v53_v19, inf  ;;  %v60_v25 = vand.u32 2147483648, %v53_v19  ;;  %vm59_vm3 = vcmp.eq.f32.partialorder %v53_v19, 0.0 }
 0x12b   :  { %v51_v20 = vpop.xlane.xlu1 %50 }
 0x12c   :  { %v54_v21 = vmul.f32 0.032258064, %v51_v20 }
 0x12e   :  { %214 = vrsqrt.f32 %v54_v21  ;;  %vm64_vm4 = vcmp.eq.f32.partialorder %v54_v21, inf  ;;  %v67_v32 = vand.u32 2147483648, %v54_v21  ;;  %vm66_vm5 = vcmp.eq.f32.partialorder %v54_v21, 0.0 }
 0x134   :  { %v213_v22 = vpop.eup %212 }
 0x135   :  { %v56_v23 = vmul.f32 %v213_v22, %v53_v19 }
 0x137   :  { %v58_v26 = vsel %vm57_vm2, %v53_v19, %v56_v23 }
 0x138   :  { %v215_v27 = vpop.eup %214  ;;  %v61_v28 = vsel %vm59_vm3, %v60_v25, %v58_v26 }
 0x139   :  { %v69_v29 = vadd.f32 1e-06, %v61_v28  ;;  %v63_v30 = vmul.f32 %v215_v27, %v54_v21 }
 0x13b   :  { %216 = vrcp.f32 %v69_v29  ;;  %v65_v34 = vsel %vm64_vm4, %v54_v21, %v63_v30 }
 0x13c   :  { %v68_v35 = vsel %vm66_vm5, %v67_v32, %v65_v34 }
 0x13d   :  { %v70_v36 = vadd.f32 1e-06, %v68_v35 }
 0x13f   :  { %218 = vrcp.f32 %v70_v36 }
 0x145   :  { %v217_v42 = vpop.eup %216 }
 0x146   :  { %v81_v45 = vmul.f32 %v217_v42, %v79_v43 }
 0x148   :  { %v89_v49 = vadd.f32 %v88_v46, %v81_v45 }
 0x149   :  { %v219_v47 = vpop.eup %218 }
 0x14a   :  { %v82_v48 = vmul.f32 %v219_v47, %v80_v44 }
 0x14c   :  { %v90_v50 = vadd.f32 %v88_v46, %v82_v48 }
 0x14e   :  { %v91_v51 = vpack.c.bf16 %v90_v50, %v89_v49 }
 0x150   :  { %205 = vmatmul.mubr.msk.bf16.vlgmr.msra.gmra.mrb[0].mxu0 %vm25_vm0, %v91_v51 }
 0x223   :  { %v147_v54 = vpop.f32.mrb[0].mxu0 }
 0x224   :  { %v154_v56 = vadd.f32 %v147_v54, %v92_v52  ;;  %v206_v57 = vpop.f32.mrb[1].mxu0 }
 0x225   :  { %v150_v58 = vpop.f32.mrb[2].mxu0 }
 0x226   :  { %156 = vst.msk [vmem:[#allocation2] sm:$0xff] %vm25_vm0, %v154_v56  ;;  %v155_v60 = vadd.f32 %v150_v58, %v93_v55  ;;  %v207_v61 = vpop.f32.mrb[3].mxu0 }
 0x228   :  { %157 = vst.msk [vmem:[#allocation2 + $0x8] sm:$0xff] %vm25_vm0, %v155_v60 }
 0x22d   :  { %v161_v63 = vld [vmem:[#allocation2] sm:$0xff] }
 0x22e   :  { %v169_v0 = vadd.f32 %v168_v62, %v161_v63 }
 0x22f   :  { %v162_v1 = vld [vmem:[#allocation2 + $0x8] sm:$0xff] }
 0x230   :  { %v191_v2 = vpack.c.bf16 %v169_v0, %v169_v0  ;;  %v170_v3 = vadd.f32 %v168_v62, %v162_v1 }
 0x232   :  { %180 = vst.msk [vmem:[%s290_s5] sm:$0xf] %vm179_vm6, %v191_v2  ;;  %v192_v4 = vpack.c.bf16 %v170_v3, %v170_v3 }
 0x234   :  { %181 = vst.msk [vmem:[%s290_s5 + $0x4] sm:$0xf] %vm179_vm6, %v192_v4 }

// kernel: encoder_decoder_forward.33
= control target key start
LH: loop header
LB: loop body
LE: loop exit
PB: predicated region body
PF: predicated region fallthrough
CT: control target
= control target key end

     0   :  { %vm32_vm0 = vcmask 261120   ;;  %v223_v15 = vmov 0.0   ;;  %vm224_vm1 = vmmov 0   ;;  %vm25_vm2 = vcmask 523264   ;;  %s288_s0 = inlined_call_operand.vmem [shape: bf16[16,32], index: 0, kind: input, shape index: {}]   ;;  %s289_s1 = inlined_call_operand.vmem [shape: bf16[32,64], index: 1, kind: input, shape index: {}]   ;;  %s290_s3 = inlined_call_operand.vmem [shape: bf16[1,32], index: 3, kind: input, shape index: {}]   ;;  %s291_s4 = inlined_call_operand.vmem [shape: bf16[1,32], index: 4, kind: input, shape index: {}]   ;;  %s292_s2 = inlined_call_operand.vmem [shape: bf16[1,64], index: 2, kind: input, shape index: {}]   ;;  %s293_s5 = inlined_call_operand.vmem [shape: bf16[16,64], index: 5, kind: output, shape index: {}]  }
   0x1   :  { %v197_v0 = vld [vmem:[%s288_s0] sm:$0xff]   ;;  %203 = vmatprep.subr.bf16.mxu0 %v223_v15  ;;  %207 = vmatprep.mubr.msk.bf16.mxu0 %vm224_vm1, %v223_v15  ;;  %v214_v17 = vld [vmem:[%s289_s1 + $0x8] sm:$0xff]   ;;  %26 = vst.msk [vmem:[#allocation2] sm:$0xff] %vm25_vm2, %v223_v15  ;;  %27 = vst.msk [vmem:[#allocation2 + $0x8] sm:$0xff] %vm25_vm2, %v223_v15  ;;  %v75_v24 = vlaneseq  ;;  %vm182_vm7 = vcmask 519168  }
   0x2   :  { %v198_v1 = vunpack.c.l.bf16 %v197_v0  ;;  %v199_v2 = vunpack.c.h.bf16 %v197_v0  ;;  %v213_v16 = vld [vmem:[%s289_s1] sm:$0xff]  }
   0x3   :  { %204 = vmatpush3.bf16.msra.mxu0 %v213_v16  ;;  %v76_v31 = vshrl.u32 %v75_v24, 7  ;;  %v73_v33 = vld [vmem:[%s290_s3] sm:$0x1] }
   0x4   :  { %v33_v3 = vsel %vm32_vm0, %v198_v1, 0.0  ;;  %v36_v4 = vsel %vm32_vm0, %v199_v2, 0.0  ;;  %205 = vmatprep.subr.bf16.mxu0 %v223_v15  ;;  %v74_v37 = vunpack.c.l.bf16 %v73_v33  ;;  %v83_v39 = vld [vmem:[%s291_s4] sm:$0x1] }
   0x5   :  { %34 = vadd.xlane.f32.xlu0 %v33_v3  ;;  %v77_v38 = vsub.s32 0, %v76_v31  ;;  %v84_v41 = vunpack.c.l.bf16 %v83_v39  ;;  %v164_v53 = vld [vmem:[%s292_s2] sm:$0x1] }
   0x6   :  { %v165_v59 = vunpack.c.l.bf16 %v164_v53 }
   0x7   :  { %206 = vmatpush3.bf16.msra.mxu0 %v214_v17  ;;  %v78_v40 = vrot.slane %v74_v37, %v77_v38  ;;  %v88_v46 = vrot.slane %v84_v41, %v77_v38 }
   0x8   :  { %v92_v52 = vld [vmem:[#allocation2] sm:$0xff]  ;;  %v93_v55 = vld [vmem:[#allocation2 + $0x8] sm:$0xff]  ;;  %v169_v62 = vrot.slane %v165_v59, %v77_v38 }
   0x9   :  { %37 = vadd.xlane.f32.xlu0 %v36_v4 }
  0x92   :  { %v35_v5 = vpop.xlane.xlu0 %34 }
  0x93   :  { %v40_v6 = vmul.f32 0.03125, %v35_v5 }
  0x95   :  { %v42_v7 = vsub.f32 %v198_v1, %v40_v6 }
  0x96   :  { %v38_v8 = vpop.xlane.xlu0 %37 }
  0x97   :  { %v41_v9 = vmul.f32 0.03125, %v38_v8  ;;  %v44_v10 = vmul.f32 %v42_v7, %v42_v7  ;;  %v79_v43 = vmul.f32 %v78_v40, %v42_v7 }
  0x99   :  { %v43_v11 = vsub.f32 %v199_v2, %v41_v9  ;;  %v46_v12 = vsel %vm32_vm0, %v44_v10, 0.0 }
  0x9a   :  { %47 = vadd.xlane.f32.xlu1 %v46_v12 }
  0x9b   :  { %v45_v13 = vmul.f32 %v43_v11, %v43_v11  ;;  %v80_v44 = vmul.f32 %v78_v40, %v43_v11 }
  0x9d   :  { %v49_v14 = vsel %vm32_vm0, %v45_v13, 0.0 }
  0x9e   :  { %50 = vadd.xlane.f32.xlu1 %v49_v14 }
 0x127   :  { %v48_v18 = vpop.xlane.xlu1 %47 }
 0x128   :  { %v53_v19 = vmul.f32 0.032258064, %v48_v18 }
 0x12a   :  { %215 = vrsqrt.f32 %v53_v19  ;;  %vm57_vm3 = vcmp.eq.f32.partialorder %v53_v19, inf  ;;  %v60_v25 = vand.u32 2147483648, %v53_v19  ;;  %vm59_vm4 = vcmp.eq.f32.partialorder %v53_v19, 0.0 }
 0x12b   :  { %v51_v20 = vpop.xlane.xlu1 %50 }
 0x12c   :  { %v54_v21 = vmul.f32 0.032258064, %v51_v20 }
 0x12e   :  { %217 = vrsqrt.f32 %v54_v21  ;;  %vm64_vm5 = vcmp.eq.f32.partialorder %v54_v21, inf  ;;  %v67_v32 = vand.u32 2147483648, %v54_v21  ;;  %vm66_vm6 = vcmp.eq.f32.partialorder %v54_v21, 0.0 }
 0x134   :  { %v216_v22 = vpop.eup %215 }
 0x135   :  { %v56_v23 = vmul.f32 %v216_v22, %v53_v19 }
 0x137   :  { %v58_v26 = vsel %vm57_vm3, %v53_v19, %v56_v23 }
 0x138   :  { %v218_v27 = vpop.eup %217  ;;  %v61_v28 = vsel %vm59_vm4, %v60_v25, %v58_v26 }
 0x139   :  { %v69_v29 = vadd.f32 1e-06, %v61_v28  ;;  %v63_v30 = vmul.f32 %v218_v27, %v54_v21 }
 0x13b   :  { %219 = vrcp.f32 %v69_v29  ;;  %v65_v34 = vsel %vm64_vm5, %v54_v21, %v63_v30 }
 0x13c   :  { %v68_v35 = vsel %vm66_vm6, %v67_v32, %v65_v34 }
 0x13d   :  { %v70_v36 = vadd.f32 1e-06, %v68_v35 }
 0x13f   :  { %221 = vrcp.f32 %v70_v36 }
 0x145   :  { %v220_v42 = vpop.eup %219 }
 0x146   :  { %v81_v45 = vmul.f32 %v220_v42, %v79_v43 }
 0x148   :  { %v89_v49 = vadd.f32 %v88_v46, %v81_v45 }
 0x149   :  { %v222_v47 = vpop.eup %221 }
 0x14a   :  { %v82_v48 = vmul.f32 %v222_v47, %v80_v44 }
 0x14c   :  { %v90_v50 = vadd.f32 %v88_v46, %v82_v48 }
 0x14e   :  { %v91_v51 = vpack.c.bf16 %v90_v50, %v89_v49 }
 0x150   :  { %208 = vmatmul.mubr.msk.bf16.vlgmr.msra.gmra.mrb[0].mxu0 %vm32_vm0, %v91_v51 }
 0x223   :  { %v147_v54 = vpop.f32.mrb[0].mxu0 }
 0x224   :  { %v154_v56 = vadd.f32 %v147_v54, %v92_v52  ;;  %v209_v57 = vpop.f32.mrb[1].mxu0 }
 0x225   :  { %v150_v58 = vpop.f32.mrb[2].mxu0 }
 0x226   :  { %157 = vst.msk [vmem:[#allocation2] sm:$0xff] %vm25_vm2, %v154_v56  ;;  %v155_v60 = vadd.f32 %v150_v58, %v93_v55  ;;  %v210_v61 = vpop.f32.mrb[3].mxu0 }
 0x228   :  { %158 = vst.msk [vmem:[#allocation2 + $0x8] sm:$0xff] %vm25_vm2, %v155_v60 }
 0x22d   :  { %v162_v63 = vld [vmem:[#allocation2] sm:$0xff] }
 0x22e   :  { %v170_v0 = vadd.f32 %v169_v62, %v162_v63 }
 0x22f   :  { %v163_v1 = vld [vmem:[#allocation2 + $0x8] sm:$0xff] }
 0x230   :  { %v172_v2 = vmax.f32 %v170_v0, 0.0  ;;  %v171_v3 = vadd.f32 %v169_v62, %v163_v1 }
 0x232   :  { %v194_v4 = vpack.c.bf16 %v172_v2, %v172_v2  ;;  %v173_v5 = vmax.f32 %v171_v3, 0.0 }
 0x234   :  { %183 = vst.msk [vmem:[%s293_s5] sm:$0xf] %vm182_vm7, %v194_v4  ;;  %v195_v6 = vpack.c.bf16 %v173_v5, %v173_v5 }
 0x236   :  { %184 = vst.msk [vmem:[%s293_s5 + $0x4] sm:$0xf] %vm182_vm7, %v195_v6 }

// kernel: encoder_decoder_forward.34
= control target key start
LH: loop header
LB: loop body
LE: loop exit
PB: predicated region body
PF: predicated region fallthrough
CT: control target
= control target key end

     0   :  { %vm22_vm0 = vcmask 261120   ;;  %v188_v0 = vmov 0.0   ;;  %vm189_vm1 = vmmov 0   ;;  %vm66_vm2 = vcmask 523264   ;;  %s246_s1 = inlined_call_operand.vmem [shape: bf16[64,32], index: 1, kind: input, shape index: {}]   ;;  %s247_s0 = inlined_call_operand.vmem [shape: bf16[16,64], index: 0, kind: input, shape index: {}]   ;;  %s248_s2 = inlined_call_operand.vmem [shape: bf16[1,32], index: 2, kind: input, shape index: {}]   ;;  %s249_s3 = inlined_call_operand.vmem [shape: bf16[16,32], index: 3, kind: input, shape index: {}]   ;;  %s250_s4 = inlined_call_operand.vmem [shape: bf16[16,32], index: 4, kind: output, shape index: {}]  }
   0x1   :  { %169 = vmatprep.subr.bf16.mxu0 %v188_v0  ;;  %v183_v1 = vld [vmem:[%s246_s1] sm:$0xff]   ;;  %177 = vmatprep.mubr.msk.bf16.mxu0 %vm189_vm1, %v188_v0  ;;  %23 = vst.msk [vmem:[#allocation2] sm:$0xff] %vm22_vm0, %v188_v0  ;;  %24 = vst.msk [vmem:[#allocation2 + $0x8] sm:$0xff] %vm22_vm0, %v188_v0  ;;  %v184_v2 = vld [vmem:[%s246_s1 + $0x8] sm:$0xff]   ;;  %v123_v6 = vlaneseq  ;;  %vm143_vm3 = vcmask 257024  }
   0x2   :  { %170 = vmatpush3.bf16.msra.mxu0 %v183_v1  ;;  %v185_v3 = vld [vmem:[%s246_s1 + $0x10] sm:$0xff]   ;;  %v186_v4 = vld [vmem:[%s246_s1 + $0x18] sm:$0xff]   ;;  %v187_v5 = vld [vmem:[%s247_s0] sm:$0xff]  }
   0x3   :  { %171 = vmatprep.subr.bf16.mxu0 %v188_v0  ;;  %v124_v8 = vshrl.u32 %v123_v6, 7  ;;  %v121_v10 = vld [vmem:[%s248_s2] sm:$0x1] }
   0x4   :  { %v122_v15 = vunpack.c.l.bf16 %v121_v10  ;;  %v161_v19 = vld [vmem:[%s249_s3] sm:$0xff]  }
   0x5   :  { %v125_v16 = vsub.s32 0, %v124_v8  ;;  %v162_v21 = vunpack.c.l.bf16 %v161_v19  ;;  %v163_v24 = vunpack.c.h.bf16 %v161_v19 }
   0x6   :  { %172 = vmatpush3.bf16.msra.mxu0 %v184_v2 }
   0x7   :  { %173 = vmatprep.subr.bf16.mxu0 %v188_v0  ;;  %v126_v20 = vrot.slane %v122_v15, %v125_v16 }
   0x8   :  { %v27_v7 = vld [vmem:[#allocation2] sm:$0xff]  ;;  %v28_v11 = vld [vmem:[#allocation2 + $0x8] sm:$0xff] }
   0xa   :  { %174 = vmatpush3.bf16.msra.mxu0 %v185_v3 }
   0xb   :  { %175 = vmatprep.subr.bf16.mxu0 %v188_v0 }
   0xe   :  { %176 = vmatpush3.bf16.msra.mxu0 %v186_v4 }
  0x11   :  { %178 = vmatmul.mubr.msk.bf16.vlgmr.msra.gmra.mrb[0].mxu0 %vm66_vm2, %v187_v5 }
  0xe4   :  { %v104_v9 = vpop.f32.mrb[0].mxu0 }
  0xe5   :  { %v111_v12 = vadd.f32 %v104_v9, %v27_v7  ;;  %v179_v13 = vpop.f32.mrb[1].mxu0 }
  0xe6   :  { %v107_v14 = vpop.f32.mrb[2].mxu0 }
  0xe7   :  { %114 = vst.msk [vmem:[#allocation2] sm:$0xff] %vm22_vm0, %v111_v12  ;;  %v112_v17 = vadd.f32 %v107_v14, %v28_v11  ;;  %v180_v18 = vpop.f32.mrb[3].mxu0 }
  0xe9   :  { %115 = vst.msk [vmem:[#allocation2 + $0x8] sm:$0xff] %vm22_vm0, %v112_v17 }
  0xee   :  { %v119_v22 = vld [vmem:[#allocation2] sm:$0xff] }
  0xef   :  { %v127_v23 = vadd.f32 %v126_v20, %v119_v22 }
  0xf0   :  { %v120_v25 = vld [vmem:[#allocation2 + $0x8] sm:$0xff] }
  0xf1   :  { %v133_v26 = vadd.f32 %v162_v21, %v127_v23  ;;  %v128_v27 = vadd.f32 %v126_v20, %v120_v25 }
  0xf3   :  { %v158_v28 = vpack.c.bf16 %v133_v26, %v133_v26  ;;  %v134_v29 = vadd.f32 %v163_v24, %v128_v27 }
  0xf5   :  { %144 = vst.msk [vmem:[%s250_s4] sm:$0xf] %vm143_vm3, %v158_v28  ;;  %v159_v30 = vpack.c.bf16 %v134_v29, %v134_v29 }
  0xf7   :  { %145 = vst.msk [vmem:[%s250_s4 + $0x4] sm:$0xf] %vm143_vm3, %v159_v30 }

// kernel: encoder_decoder_forward.31
= control target key start
LH: loop header
LB: loop body
LE: loop exit
PB: predicated region body
PF: predicated region fallthrough
CT: control target
= control target key end

     0   :  { %s1249_s15 = smov 0   ;;  %s1251_s16 = smov 0   ;;  %s1441_s0 = inlined_call_operand.vmem [shape: bf16[2,4,8,8], index: 0, kind: input, shape index: {}]   ;;  %s1442_s1 = inlined_call_operand.vmem [shape: bf16[2,4,8,8], index: 1, kind: input, shape index: {}]   ;;  %s1443_s2 = inlined_call_operand.vmem [shape: bf16[2,4,8,8], index: 2, kind: input, shape index: {}]   ;;  %s1444_s3 = inlined_call_operand.vmem [shape: f32[2,1,8], index: 3, kind: input, shape index: {}]   ;;  %s1445_s4 = inlined_call_operand.vmem [shape: bf16[2,4,8,8], index: 4, kind: output, shape index: {}]  }
   0x1   :  { %s1253_s17 = smov 0  }
   0x2 LB: > { %s33_s18 = sadd.s32 1, %s1214_s16  ;;  %p1054_p0 = scmp.ge.s32.totalorder %s1218_s17, 1  ;;  %s1218_s17 = sphi %s1253_s17, %s14_s17   ;;  %s1214_s16 = sphi %s1251_s16, %s1447_s16   ;;  %s1210_s15 = sphi %s1249_s15, %s1446_s15  }
   0x3   : > { %p35_p1 = scmp.ge.s32.totalorder %s33_s18, 2  ;;  %p231_p2 = scmp.lt.s32.totalorder %s1218_s17, 3 }
   0x5   : > { %s1449_s18 = smov (%p35_p1, %s33_s18), 0  ;;  %p232_p3 = pnand %p1054_p0, %p231_p2 }
   0x6   : > { %p285_p4 = scmp.lt.s32.totalorder (!%p232_p3), %s1210_s15, 1  ;;  %vm337_vm0 = vcmask (!%p232_p3), 64512   ;;  %v1220_v0 = vmov (!%p232_p3), 0.0   ;;  %vm1221_vm1 = vmmov (!%p232_p3), 0   ;;  %vm365_vm2 = vcmask (!%p232_p3), 1043456  }
   0x7   : > { %235 = sbr.rel (%p232_p3) target bundleno = 833 (0x341), region = 36  ;;  %1094 = vmatprep.subr.bf16.mxu0 (!%p232_p3), %v1220_v0  ;;  %1100 = vmatprep.subr.bf16.mxu1 (!%p232_p3), %v1220_v0  ;;  %338 = vst.msk [vmem:[#allocation4] sm:$0xff] (!%p232_p3), %vm337_vm0, %v1220_v0  ;;  %339 = vst.msk [vmem:[#allocation4 + $0x8] sm:$0xff] (!%p232_p3), %vm337_vm0, %v1220_v0  ;;  %vm328_vm3 = vcmask (!%p232_p3), 7168   ;;  %v1222_v13 = vmov (!%p232_p3), -1e+30  }
   0x8   : > { %340 = vst.msk [vmem:[#allocation4 + $0x10] sm:$0xff] (!%p232_p3), %vm337_vm0, %v1220_v0  ;;  %341 = vst.msk [vmem:[#allocation4 + $0x18] sm:$0xff] (!%p232_p3), %vm337_vm0, %v1220_v0  ;;  %1096 = vmatprep.mubr.msk.bf16.mxu0 (!%p232_p3), %vm1221_vm1, %v1220_v0  ;;  %1102 = vmatprep.mubr.msk.bf16.mxu1 (!%p232_p3), %vm1221_vm1, %v1220_v0  ;;  %v1223_v39 = vmov (!%p232_p3), 0   ;;  %vm911_vm4 = vcmask (!%p232_p3), 60416  }
   0x9   : > { %329 = vst.msk [vmem:[#allocation2] sm:$0xff] (!%p232_p3), %vm328_vm3, %v1222_v13  ;;  %330 = vst.msk [vmem:[#allocation2 + $0x8] sm:$0xff] (!%p232_p3), %vm328_vm3, %v1222_v13  ;;  %1170 = vset.pattern.permute.xlu0 (!%p232_p3), %v1223_v39  ;;  %1171 = vset.pattern.permute.xlu1 (!%p232_p3), %v1223_v39 }
   0xa   : > { %331 = vst.msk [vmem:[#allocation2 + $0x10] sm:$0xff] (!%p232_p3), %vm328_vm3, %v1222_v13  ;;  %332 = vst.msk [vmem:[#allocation2 + $0x18] sm:$0xff] (!%p232_p3), %vm328_vm3, %v1222_v13 }
   0xb   : > { %333 = vst.msk [vmem:[#allocation3] sm:$0xff] (!%p232_p3), %vm328_vm3, %v1220_v0  ;;  %334 = vst.msk [vmem:[#allocation3 + $0x8] sm:$0xff] (!%p232_p3), %vm328_vm3, %v1220_v0 }
   0xc   : > { %335 = vst.msk [vmem:[#allocation3 + $0x10] sm:$0xff] (!%p232_p3), %vm328_vm3, %v1220_v0  ;;  %336 = vst.msk [vmem:[#allocation3 + $0x18] sm:$0xff] (!%p232_p3), %vm328_vm3, %v1220_v0 }
   0xe   : > { %s1451_s15 = smov (!%p285_p4, %s1210_s15), 1 }
   0xf   : > { %s1284_s19 = sshll.u32 %s1451_s15, 4  ;;  %s314_s28 = scalar_lea.vmem %s1444_s3, %s1451_s15 }
  0x10   : > { %s300_s22 = scalar_lea.vmem %s1442_s1, %s1284_s19  ;;  %s292_s25 = scalar_lea.vmem %s1441_s0, %s1284_s19  ;;  %v1063_v14 = vld [vmem:[%s314_s28] ss:$0 sm:$0xff]  ;;  %v1345_v43 = vld [vmem:[#allocation2 + $0x8] sm:$0xff] }
  0x11   : > { %v346_v1 = vld [vmem:[%s300_s22] sm:$0xf]  ;;  %v347_v2 = vld [vmem:[%s300_s22 + $0x4] sm:$0xf]  ;;  %v348_v5 = vld [vmem:[%s300_s22 + $0x8] sm:$0xf]  ;;  %s1379_s5 = scalar_lea.vmem %s1443_s2, %s1284_s19  ;;  %s322_s8 = scalar_lea.vmem %s1445_s4, %s1284_s19 }
  0x12   : > { %v367_v3 = vsel %vm365_vm2, %v346_v1, 0  ;;  %v413_v4 = vsel %vm365_vm2, %v347_v2, 0  ;;  %v342_v6 = vld [vmem:[%s292_s25] sm:$0xf]  ;;  %v343_v7 = vld [vmem:[%s292_s25 + $0x4] sm:$0xf] }
  0x13   : > { %1095 = vmatpush3.bf16.msra.mxu0 %v367_v3  ;;  %1101 = vmatpush3.bf16.msra.mxu1 %v413_v4  ;;  %v349_v8 = vld [vmem:[%s300_s22 + $0xc] sm:$0xf]  ;;  %v459_v9 = vsel %vm365_vm2, %v348_v5, 0  ;;  %v344_v11 = vld [vmem:[%s292_s25 + $0x8] sm:$0xf]  ;;  %v1340_v40 = vld [vmem:[#allocation2] sm:$0xff] }
  0x14   : > { %1106 = vmatprep.subr.bf16.mxu0 %v1220_v0  ;;  %1112 = vmatprep.subr.bf16.mxu1 %v1220_v0  ;;  %v505_v10 = vsel %vm365_vm2, %v349_v8, 0  ;;  %v345_v12 = vld [vmem:[%s292_s25 + $0xc] sm:$0xf]  ;;  %v1355_v47 = vld [vmem:[#allocation2 + $0x10] sm:$0xff]  ;;  %v1365_v51 = vld [vmem:[#allocation2 + $0x18] sm:$0xff] }
  0x15   : > { %v350_v56 = vld [vmem:[%s1379_s5] sm:$0xf]  ;;  %v351_v58 = vld [vmem:[%s1379_s5 + $0x4] sm:$0xf]  ;;  %v352_v8 = vld [vmem:[%s1379_s5 + $0x8] sm:$0xf] }
  0x16   : > { %1097 = vmatmul.mubr.msk.bf16.vlgmr.msra.gmra.mrb[0].mxu0 %vm337_vm0, %v342_v6  ;;  %1103 = vmatmul.mubr.msk.bf16.vlgmr.msra.gmra.mrb[0].mxu1 %vm337_vm0, %v343_v7  ;;  %v676_v57 = vsel %vm365_vm2, %v350_v56, 0  ;;  %v722_v59 = vsel %vm365_vm2, %v351_v58, 0  ;;  %v768_v13 = vsel %vm365_vm2, %v352_v8, 0  ;;  %v613_v39 = vld [vmem:[#allocation3 + $0x10] sm:$0xff]  ;;  %v640_v56 = vld [vmem:[#allocation4] sm:$0xff] }
  0x17   : > { %1107 = vmatpush3.bf16.msra.mxu0 %v459_v9  ;;  %1113 = vmatpush3.bf16.msra.mxu1 %v505_v10 }
  0x18   : > { %1108 = vmatprep.mubr.msk.bf16.mxu0 %vm1221_vm1, %v1220_v0  ;;  %1114 = vmatprep.mubr.msk.bf16.mxu1 %vm1221_vm1, %v1220_v0 }
  0x19   : > { %1118 = vmatprep.subr.bf16.mxu0 %v1220_v0  ;;  %1124 = vmatprep.subr.bf16.mxu1 %v1220_v0 }
  0x1e   : > { %1109 = vmatmul.mubr.msk.bf16.vlgmr.msra.gmra.mrb[4].mxu0 %vm337_vm0, %v344_v11  ;;  %1115 = vmatmul.mubr.msk.bf16.vlgmr.msra.gmra.mrb[4].mxu1 %vm337_vm0, %v345_v12 }
  0x1f   : > { %1120 = vmatprep.mubr.msk.bf16.mxu0 %vm1221_vm1, %v1220_v0  ;;  %1126 = vmatprep.mubr.msk.bf16.mxu1 %vm1221_vm1, %v1220_v0 }
  0x20   : > { %1119 = vmatpush3.bf16.msra.mxu0 %v676_v57  ;;  %1125 = vmatpush3.bf16.msra.mxu1 %v722_v59  ;;  %v641_v59 = vld [vmem:[#allocation4 + $0x8] sm:$0xff] }
  0x21   : > { %1130 = vmatprep.subr.bf16.mxu0 %v1220_v0  ;;  %1136 = vmatprep.subr.bf16.mxu1 %v1220_v0 }
  0xe9   : > { %v403_v15 = vpop.f32.mrb[0].mxu0  ;;  %v449_v16 = vpop.f32.mrb[0].mxu1 }
  0xea   : > { %v1330_v17 = vadd.f32 %v1063_v14, %v403_v15  ;;  %v1098_v18 = vpop.f32.mrb[1].mxu0  ;;  %v1332_v19 = vadd.f32 %v1063_v14, %v449_v16  ;;  %v1104_v20 = vpop.f32.mrb[1].mxu1 }
  0xeb   : > { %v406_v21 = vpop.f32.mrb[2].mxu0  ;;  %v452_v22 = vpop.f32.mrb[2].mxu1 }
  0xec   : > { %v1099_v23 = vpop.f32.mrb[3].mxu0  ;;  %v551_v24 = vsel %vm337_vm0, %v1330_v17, -inf  ;;  %v1105_v25 = vpop.f32.mrb[3].mxu1  ;;  %v554_v26 = vsel %vm337_vm0, %v1332_v19, -inf }
  0xed   : > { %552 = vmax.xlane.f32.xlu0 %v551_v24 }
  0xf1   : > { %555 = vmax.xlane.f32.xlu0 %v554_v26  ;;  %v495_v27 = vpop.f32.mrb[4].mxu0  ;;  %v541_v28 = vpop.f32.mrb[4].mxu1 }
  0xf2   : > { %v496_v29 = vadd.f32 %v1063_v14, %v495_v27  ;;  %v1110_v30 = vpop.f32.mrb[5].mxu0  ;;  %v542_v31 = vadd.f32 %v1063_v14, %v541_v28  ;;  %v1116_v32 = vpop.f32.mrb[5].mxu1  ;;  %v353_v14 = vld [vmem:[%s1379_s5 + $0xc] sm:$0xf] }
  0xf3   : > { %v498_v33 = vpop.f32.mrb[6].mxu0  ;;  %v544_v34 = vpop.f32.mrb[6].mxu1  ;;  %v814_v18 = vsel %vm365_vm2, %v353_v14, 0  ;;  %v611_v32 = vld [vmem:[#allocation3] sm:$0xff] }
  0xf4   : > { %v1111_v35 = vpop.f32.mrb[7].mxu0  ;;  %v557_v36 = vsel %vm337_vm0, %v496_v29, -inf  ;;  %v1117_v37 = vpop.f32.mrb[7].mxu1  ;;  %v560_v38 = vsel %vm337_vm0, %v542_v31, -inf }
  0xf5   : > { %558 = vmax.xlane.f32.xlu1 %v557_v36  ;;  %v612_v35 = vld [vmem:[#allocation3 + $0x8] sm:$0xff] }
  0xf9   : > { %561 = vmax.xlane.f32.xlu1 %v560_v38 }
 0x17a   : > { %v553_v41 = vpop.xlane.xlu0 %552 }
 0x17b   : > { %v1343_v42 = vmax.f32 %v1340_v40, %v553_v41 }
 0x17d   : > { %v567_v44 = vsub.f32 %v1340_v40, %v1343_v42  ;;  %864 = vst.msk [vmem:[#allocation2] sm:$0xff] %vm328_vm3, %v1343_v42  ;;  %581 = vperm.xlu0 %1170, %v1343_v42  }
 0x17e   : > { %v556_v45 = vpop.xlane.xlu0 %555 }
 0x17f   : > { %v1353_v46 = vmax.f32 %v1345_v43, %v556_v45  ;;  %v571_v26 = vmul.f32 1.442695, %v567_v44 }
 0x181   : > { %v568_v48 = vsub.f32 %v1345_v43, %v1353_v46  ;;  %865 = vst.msk [vmem:[#allocation2 + $0x8] sm:$0xff] %vm328_vm3, %v1353_v46  ;;  %586 = vperm.xlu1 %1171, %v1353_v46   ;;  %v614_v43 = vld [vmem:[#allocation3 + $0x18] sm:$0xff] }
 0x182   : > { %v559_v49 = vpop.xlane.xlu1 %558 }
 0x183   : > { %v1363_v50 = vmax.f32 %v1355_v47, %v559_v49  ;;  %v573_v23 = vmul.f32 1.442695, %v568_v48 }
 0x185   : > { %v569_v52 = vsub.f32 %v1355_v47, %v1363_v50  ;;  %866 = vst.msk [vmem:[#allocation2 + $0x10] sm:$0xff] %vm328_vm3, %v1363_v50  ;;  %591 = vperm.xlu1 %1171, %v1363_v50  }
 0x186   : > { %v562_v53 = vpop.xlane.xlu1 %561 }
 0x187   : > { %v1373_v54 = vmax.f32 %v1365_v51, %v562_v53 }
 0x189   : > { %v570_v55 = vsub.f32 %v1365_v51, %v1373_v54  ;;  %867 = vst.msk [vmem:[#allocation2 + $0x18] sm:$0xff] %vm328_vm3, %v1373_v54  ;;  %596 = vperm.xlu1 %1171, %v1373_v54  }
 0x18b   : > { %v577_v27 = vmul.f32 1.442695, %v570_v55 }
 0x1fc   : > { %v582_v60 = vpop.permute.xlu0 %581 }
 0x1fd   : > { %v599_v61 = vsub.f32 %v1330_v17, %v582_v60 }
 0x1ff   : > { %v603_v62 = vmul.f32 1.442695, %v599_v61 }
 0x200   : > { %v587_v63 = vpop.permute.xlu1 %586 }
 0x201   : > { %1172 = vpow2.f32 %v603_v62  ;;  %v600_v1 = vsub.f32 %v1332_v19, %v587_v63 }
 0x203   : > { %v605_v2 = vmul.f32 1.442695, %v600_v1 }
 0x204   : > { %v592_v3 = vpop.permute.xlu1 %591 }
 0x205   : > { %1174 = vpow2.f32 %v605_v2  ;;  %v601_v4 = vsub.f32 %v496_v29, %v592_v3 }
 0x207   : > { %v607_v5 = vmul.f32 1.442695, %v601_v4 }
 0x208   : > { %v597_v6 = vpop.permute.xlu1 %596 }
 0x209   : > { %1176 = vpow2.f32 %v607_v5  ;;  %v602_v7 = vsub.f32 %v542_v31, %v597_v6  ;;  %v642_v5 = vld [vmem:[#allocation4 + $0x10] sm:$0xff] }
 0x20b   : > { %v1173_v9 = vpop.eup %1172  ;;  %v609_v10 = vmul.f32 1.442695, %v602_v7 }
 0x20c   : > { %v619_v11 = vsel %vm337_vm0, %v1173_v9, 0.0  ;;  %v668_v12 = vpack.c.bf16 %v1173_v9, %v1173_v9 }
 0x20d   : > { %1178 = vpow2.f32 %v609_v10  ;;  %620 = vadd.xlane.f32.xlu1 %v619_v11 }
 0x20e   : > { %1121 = vmatmul.mubr.msk.bf16.vlgmr.msra.gmra.mrb[8].mxu0 %vm337_vm0, %v668_v12  ;;  %1180 = vpow2.f32 %v573_v23  ;;  %v643_v12 = vld [vmem:[#allocation4 + $0x18] sm:$0xff] }
 0x20f   : > { %v1175_v15 = vpop.eup %1174  ;;  %1131 = vmatpush3.bf16.msra.mxu0 %v768_v13  ;;  %1132 = vmatprep.mubr.msk.bf16.mxu0 %vm1221_vm1, %v1220_v0  ;;  %1182 = vpow2.f32 %v571_v26 }
 0x210   : > { %v622_v16 = vsel %vm337_vm0, %v1175_v15, 0.0  ;;  %v669_v17 = vpack.c.bf16 %v1175_v15, %v1175_v15 }
 0x211   : > { %623 = vadd.xlane.f32.xlu0 %v622_v16 }
 0x212   : > { %1127 = vmatmul.mubr.msk.bf16.vlgmr.msra.gmra.mrb[8].mxu1 %vm337_vm0, %v669_v17 }
 0x213   : > { %v1177_v19 = vpop.eup %1176  ;;  %1137 = vmatpush3.bf16.msra.mxu1 %v814_v18  ;;  %1138 = vmatprep.mubr.msk.bf16.mxu1 %vm1221_vm1, %v1220_v0  ;;  %v575_v0 = vmul.f32 1.442695, %v569_v52 }
 0x214   : > { %v625_v20 = vsel %vm337_vm0, %v1177_v19, 0.0  ;;  %v670_v21 = vpack.c.bf16 %v1177_v19, %v1177_v19 }
 0x215   : > { %626 = vadd.xlane.f32.xlu1 %v625_v20  ;;  %1184 = vpow2.f32 %v575_v0 }
 0x216   : > { %1133 = vmatmul.mubr.msk.bf16.vlgmr.msra.gmra.mrb[12].mxu0 %vm337_vm0, %v670_v21  ;;  %1186 = vpow2.f32 %v577_v27 }
 0x217   : > { %v1179_v22 = vpop.eup %1178 }
 0x218   : > { %v628_v24 = vsel %vm337_vm0, %v1179_v22, 0.0  ;;  %v671_v25 = vpack.c.bf16 %v1179_v22, %v1179_v22  ;;  %v1181_v28 = vpop.eup %1180 }
 0x219   : > { %629 = vadd.xlane.f32.xlu1 %v628_v24  ;;  %v1183_v29 = vpop.eup %1182  ;;  %v616_v37 = vmul.f32 %v1181_v28, %v612_v35 }
 0x21a   : > { %1139 = vmatmul.mubr.msk.bf16.vlgmr.msra.gmra.mrb[12].mxu1 %vm337_vm0, %v671_v25  ;;  %v615_v33 = vmul.f32 %v1183_v29, %v611_v32 }
 0x21f   : > { %v1185_v30 = vpop.eup %1184 }
 0x220   : > { %v1187_v31 = vpop.eup %1186  ;;  %v617_v41 = vmul.f32 %v1185_v30, %v613_v39 }
 0x221   : > { %v618_v46 = vmul.f32 %v1187_v31, %v614_v43 }
 0x227   : > { %651 = vperm.xlu0 %1170, %v1181_v28  }
 0x22a   : > { %646 = vperm.xlu1 %1171, %v1183_v29  }
 0x22e   : > { %656 = vperm.xlu1 %1171, %v1185_v30  }
 0x232   : > { %661 = vperm.xlu1 %1171, %v1187_v31  }
 0x29a   : > { %v621_v34 = vpop.xlane.xlu1 %620 }
 0x29b   : > { %v631_v36 = vadd.f32 %v621_v34, %v615_v33 }
 0x29d   : > { %636 = vst.msk [vmem:[#allocation3] sm:$0xff] %vm328_vm3, %v631_v36 }
 0x29e   : > { %v624_v38 = vpop.xlane.xlu0 %623 }
 0x29f   : > { %v632_v40 = vadd.f32 %v624_v38, %v616_v37 }
 0x2a1   : > { %637 = vst.msk [vmem:[#allocation3 + $0x8] sm:$0xff] %vm328_vm3, %v632_v40 }
 0x2a2   : > { %v627_v42 = vpop.xlane.xlu1 %626 }
 0x2a3   : > { %v633_v44 = vadd.f32 %v627_v42, %v617_v41 }
 0x2a4   : > { %v875_v45 = vld [vmem:[#allocation3] sm:$0xff] }
 0x2a5   : > { %638 = vst.msk [vmem:[#allocation3 + $0x10] sm:$0xff] %vm328_vm3, %v633_v44  ;;  %1188 = vrcp.f32 %v875_v45 }
 0x2a6   : > { %v630_v47 = vpop.xlane.xlu1 %629  ;;  %v652_v60 = vpop.permute.xlu0 %651 }
 0x2a7   : > { %v634_v48 = vadd.f32 %v630_v47, %v618_v46  ;;  %v665_v3 = vmul.f32 %v652_v60, %v641_v59 }
 0x2a8   : > { %v876_v49 = vld [vmem:[#allocation3 + $0x8] sm:$0xff] }
 0x2a9   : > { %639 = vst.msk [vmem:[#allocation3 + $0x18] sm:$0xff] %vm328_vm3, %v634_v48  ;;  %1190 = vrcp.f32 %v876_v49 }
 0x2aa   : > { %v647_v57 = vpop.permute.xlu1 %646 }
 0x2ab   : > { %v664_v58 = vmul.f32 %v647_v57, %v640_v56 }
 0x2ac   : > { %v877_v50 = vld [vmem:[#allocation3 + $0x10] sm:$0xff] }
 0x2ad   : > { %1192 = vrcp.f32 %v877_v50 }
 0x2ae   : > { %v657_v1 = vpop.permute.xlu1 %656 }
 0x2af   : > { %v1189_v51 = vpop.eup %1188  ;;  %v666_v10 = vmul.f32 %v657_v1, %v642_v5 }
 0x2b0   : > { %885 = vperm.xlu1 %1171, %v1189_v51   ;;  %v878_v52 = vld [vmem:[#allocation3 + $0x18] sm:$0xff] }
 0x2b1   : > { %1194 = vrcp.f32 %v878_v52 }
 0x2b2   : > { %v662_v13 = vpop.permute.xlu1 %661 }
 0x2b3   : > { %v1191_v53 = vpop.eup %1190  ;;  %v667_v18 = vmul.f32 %v662_v13, %v643_v12 }
 0x2b4   : > { %890 = vperm.xlu0 %1170, %v1191_v53  }
 0x2b7   : > { %v1193_v54 = vpop.eup %1192 }
 0x2b8   : > { %895 = vperm.xlu1 %1171, %v1193_v54  }
 0x2bb   : > { %v1195_v55 = vpop.eup %1194 }
 0x2bc   : > { %900 = vperm.xlu0 %1170, %v1195_v55  }
 0x2e1   : > { %v712_v61 = vpop.f32.mrb[8].mxu0 }
 0x2e2   : > { %v856_v62 = vadd.f32 %v712_v61, %v664_v58  ;;  %v1122_v63 = vpop.f32.mrb[9].mxu0 }
 0x2e3   : > { %v715_v2 = vpop.f32.mrb[10].mxu0 }
 0x2e4   : > { %860 = vst.msk [vmem:[#allocation4] sm:$0xff] %vm337_vm0, %v856_v62  ;;  %v1123_v4 = vpop.f32.mrb[11].mxu0 }
 0x2e5   : > { %v758_v6 = vpop.f32.mrb[8].mxu1 }
 0x2e6   : > { %v857_v7 = vadd.f32 %v758_v6, %v665_v3  ;;  %v1128_v8 = vpop.f32.mrb[9].mxu1 }
 0x2e7   : > { %v761_v9 = vpop.f32.mrb[10].mxu1 }
 0x2e8   : > { %861 = vst.msk [vmem:[#allocation4 + $0x8] sm:$0xff] %vm337_vm0, %v857_v7  ;;  %v1129_v11 = vpop.f32.mrb[11].mxu1 }
 0x2e9   : > { %v804_v14 = vpop.f32.mrb[12].mxu0 }
 0x2ea   : > { %v858_v15 = vadd.f32 %v804_v14, %v666_v10  ;;  %v1134_v16 = vpop.f32.mrb[13].mxu0 }
 0x2eb   : > { %v807_v17 = vpop.f32.mrb[14].mxu0  ;;  %v871_v26 = vld [vmem:[#allocation4] sm:$0xff] }
 0x2ec   : > { %862 = vst.msk [vmem:[#allocation4 + $0x10] sm:$0xff] %vm337_vm0, %v858_v15  ;;  %v1135_v19 = vpop.f32.mrb[15].mxu0 }
 0x2ed   : > { %v850_v20 = vpop.f32.mrb[12].mxu1 }
 0x2ee   : > { %v859_v21 = vadd.f32 %v850_v20, %v667_v18  ;;  %v1140_v22 = vpop.f32.mrb[13].mxu1 }
 0x2ef   : > { %v853_v23 = vpop.f32.mrb[14].mxu1  ;;  %v872_v28 = vld [vmem:[#allocation4 + $0x8] sm:$0xff] }
 0x2f0   : > { %863 = vst.msk [vmem:[#allocation4 + $0x18] sm:$0xff] %vm337_vm0, %v859_v21  ;;  %v1141_v24 = vpop.f32.mrb[15].mxu1 }
 0x2f3   : > { %v873_v33 = vld [vmem:[#allocation4 + $0x10] sm:$0xff] }
 0x2f7   : > { %v874_v37 = vld [vmem:[#allocation4 + $0x18] sm:$0xff] }
 0x32f   : > { %v886_v25 = vpop.permute.xlu1 %885 }
 0x330   : > { %v903_v0 = vmul.f32 %v886_v25, %v871_v26 }
 0x332   : > { %v907_v27 = vpack.c.bf16 %v903_v0, %v903_v0 }
 0x333   : > { %v891_v29 = vpop.permute.xlu0 %890 }
 0x334   : > { %912 = vst.msk [vmem:[%s322_s8] sm:$0xf] %vm911_vm4, %v907_v27  ;;  %v904_v30 = vmul.f32 %v891_v29, %v872_v28 }
 0x336   : > { %v908_v31 = vpack.c.bf16 %v904_v30, %v904_v30 }
 0x337   : > { %v896_v32 = vpop.permute.xlu1 %895 }
 0x338   : > { %913 = vst.msk [vmem:[%s322_s8 + $0x4] sm:$0xf] %vm911_vm4, %v908_v31  ;;  %v905_v34 = vmul.f32 %v896_v32, %v873_v33 }
 0x33a   : > { %v909_v35 = vpack.c.bf16 %v905_v34, %v905_v34 }
 0x33b   : > { %v901_v36 = vpop.permute.xlu0 %900 }
 0x33c   : > { %914 = vst.msk [vmem:[%s322_s8 + $0x8] sm:$0xf] %vm911_vm4, %v909_v35  ;;  %v906_v38 = vmul.f32 %v901_v36, %v874_v37 }
 0x33e   : > { %v910_v39 = vpack.c.bf16 %v906_v38, %v906_v38 }
 0x340   : > { %915 = vst.msk [vmem:[%s322_s8 + $0xc] sm:$0xf] %vm911_vm4, %v910_v39 }
 0x341 PF: > { %s14_s17 = sadd.s32 1, %s1218_s17   ;;  %s1446_s15 = smov %s1214_s16 }
 0x342   : > { %p11_p5 = scmp.ge.s32.totalorder %s14_s17, 4   ;;  %s1447_s16 = smov %s1449_s18 }
 0x344   :  { %13 = sbr.rel (!%p11_p5) target bundleno = 2 (0x2), region = 83 }

// kernel: encoder_decoder_forward.40
= control target key start
LH: loop header
LB: loop body
LE: loop exit
PB: predicated region body
PF: predicated region fallthrough
CT: control target
= control target key end

     0   :  { %vm18_vm0 = vcmask 261120   ;;  %v61_v20 = vlaneseq  ;;  %vm85_vm5 = vcmask 257024   ;;  %s147_s0 = inlined_call_operand.vmem [shape: bf16[16,32], index: 0, kind: input, shape index: {}]   ;;  %s148_s1 = inlined_call_operand.vmem [shape: bf16[1,32], index: 1, kind: input, shape index: {}]   ;;  %s149_s2 = inlined_call_operand.vmem [shape: bf16[1,32], index: 2, kind: input, shape index: {}]   ;;  %s150_s3 = inlined_call_operand.vmem [shape: bf16[16,32], index: 3, kind: output, shape index: {}]  }
   0x1   :  { %v97_v0 = vld [vmem:[%s147_s0] sm:$0xff]  }
   0x2   :  { %v98_v1 = vunpack.c.l.bf16 %v97_v0  ;;  %v99_v2 = vunpack.c.h.bf16 %v97_v0  ;;  %v62_v25 = vshrl.u32 %v61_v20, 7  ;;  %v59_v27 = vld [vmem:[%s148_s1] sm:$0x1] }
   0x3   :  { %v60_v32 = vunpack.c.l.bf16 %v59_v27  ;;  %v69_v35 = vld [vmem:[%s149_s2] sm:$0x1] }
   0x4   :  { %v19_v3 = vsel %vm18_vm0, %v98_v1, 0.0  ;;  %v22_v4 = vsel %vm18_vm0, %v99_v2, 0.0  ;;  %v63_v33 = vsub.s32 0, %v62_v25  ;;  %v70_v38 = vunpack.c.l.bf16 %v69_v35 }
   0x5   :  { %20 = vadd.xlane.f32.xlu0 %v19_v3 }
   0x6   :  { %v64_v37 = vrot.slane %v60_v32, %v63_v33  ;;  %v74_v39 = vrot.slane %v70_v38, %v63_v33 }
   0x9   :  { %23 = vadd.xlane.f32.xlu0 %v22_v4 }
  0x92   :  { %v21_v5 = vpop.xlane.xlu0 %20 }
  0x93   :  { %v26_v6 = vmul.f32 0.03125, %v21_v5 }
  0x95   :  { %v28_v7 = vsub.f32 %v98_v1, %v26_v6 }
  0x96   :  { %v24_v8 = vpop.xlane.xlu0 %23 }
  0x97   :  { %v27_v9 = vmul.f32 0.03125, %v24_v8  ;;  %v30_v10 = vmul.f32 %v28_v7, %v28_v7  ;;  %v65_v40 = vmul.f32 %v64_v37, %v28_v7 }
  0x99   :  { %v29_v11 = vsub.f32 %v99_v2, %v27_v9  ;;  %v32_v12 = vsel %vm18_vm0, %v30_v10, 0.0 }
  0x9a   :  { %33 = vadd.xlane.f32.xlu1 %v32_v12 }
  0x9b   :  { %v31_v13 = vmul.f32 %v29_v11, %v29_v11  ;;  %v66_v43 = vmul.f32 %v64_v37, %v29_v11 }
  0x9d   :  { %v35_v14 = vsel %vm18_vm0, %v31_v13, 0.0 }
  0x9e   :  { %36 = vadd.xlane.f32.xlu1 %v35_v14 }
 0x127   :  { %v34_v15 = vpop.xlane.xlu1 %33 }
 0x128   :  { %v39_v16 = vmul.f32 0.032258064, %v34_v15 }
 0x12a   :  { %100 = vrsqrt.f32 %v39_v16  ;;  %vm43_vm1 = vcmp.eq.f32.partialorder %v39_v16, inf  ;;  %v46_v22 = vand.u32 2147483648, %v39_v16  ;;  %vm45_vm2 = vcmp.eq.f32.partialorder %v39_v16, 0.0 }
 0x12b   :  { %v37_v17 = vpop.xlane.xlu1 %36 }
 0x12c   :  { %v40_v18 = vmul.f32 0.032258064, %v37_v17 }
 0x12e   :  { %102 = vrsqrt.f32 %v40_v18  ;;  %vm50_vm3 = vcmp.eq.f32.partialorder %v40_v18, inf  ;;  %v53_v30 = vand.u32 2147483648, %v40_v18  ;;  %vm52_vm4 = vcmp.eq.f32.partialorder %v40_v18, 0.0 }
 0x134   :  { %v101_v19 = vpop.eup %100 }
 0x135   :  { %v42_v21 = vmul.f32 %v101_v19, %v39_v16 }
 0x137   :  { %v44_v23 = vsel %vm43_vm1, %v39_v16, %v42_v21 }
 0x138   :  { %v103_v24 = vpop.eup %102  ;;  %v47_v26 = vsel %vm45_vm2, %v46_v22, %v44_v23 }
 0x139   :  { %v55_v28 = vadd.f32 1e-06, %v47_v26  ;;  %v49_v29 = vmul.f32 %v103_v24, %v40_v18 }
 0x13b   :  { %104 = vrcp.f32 %v55_v28  ;;  %v51_v31 = vsel %vm50_vm3, %v40_v18, %v49_v29 }
 0x13c   :  { %v54_v34 = vsel %vm52_vm4, %v53_v30, %v51_v31 }
 0x13d   :  { %v56_v36 = vadd.f32 1e-06, %v54_v34 }
 0x13f   :  { %106 = vrcp.f32 %v56_v36 }
 0x145   :  { %v105_v41 = vpop.eup %104 }
 0x146   :  { %v67_v42 = vmul.f32 %v105_v41, %v65_v40 }
 0x148   :  { %v75_v44 = vadd.f32 %v74_v39, %v67_v42 }
 0x149   :  { %v107_v45 = vpop.eup %106 }
 0x14a   :  { %v94_v46 = vpack.c.bf16 %v75_v44, %v75_v44  ;;  %v68_v47 = vmul.f32 %v107_v45, %v66_v43 }
 0x14c   :  { %86 = vst.msk [vmem:[%s150_s3] sm:$0xf] %vm85_vm5, %v94_v46  ;;  %v76_v48 = vadd.f32 %v74_v39, %v68_v47 }
 0x14e   :  { %v95_v49 = vpack.c.bf16 %v76_v48, %v76_v48 }
 0x150   :  { %87 = vst.msk [vmem:[%s150_s3 + $0x4] sm:$0xf] %vm85_vm5, %v95_v49 }

// kernel: encoder_decoder_forward.45
= control target key start
LH: loop header
LB: loop body
LE: loop exit
PB: predicated region body
PF: predicated region fallthrough
CT: control target
= control target key end

     0   :  { %vm19_vm0 = vcmask 523264   ;;  %v149_v0 = vmov 0.0   ;;  %vm150_vm1 = vmmov 0   ;;  %vm47_vm2 = vcmask 261120   ;;  %s193_s1 = inlined_call_operand.vmem [shape: bf16[32,64], index: 1, kind: input, shape index: {}]   ;;  %s194_s0 = inlined_call_operand.vmem [shape: bf16[16,32], index: 0, kind: input, shape index: {}]   ;;  %s195_s2 = inlined_call_operand.vmem [shape: bf16[1,64], index: 2, kind: input, shape index: {}]   ;;  %s196_s3 = inlined_call_operand.vmem [shape: bf16[16,64], index: 3, kind: output, shape index: {}]  }
   0x1   :  { %136 = vmatprep.subr.bf16.mxu0 %v149_v0  ;;  %v146_v1 = vld [vmem:[%s193_s1] sm:$0xff]   ;;  %140 = vmatprep.mubr.msk.bf16.mxu0 %vm150_vm1, %v149_v0  ;;  %20 = vst.msk [vmem:[#allocation2] sm:$0xff] %vm19_vm0, %v149_v0  ;;  %21 = vst.msk [vmem:[#allocation2 + $0x8] sm:$0xff] %vm19_vm0, %v149_v0  ;;  %v147_v2 = vld [vmem:[%s193_s1 + $0x8] sm:$0xff]   ;;  %v104_v4 = vlaneseq  ;;  %vm118_vm3 = vcmask 519168  }
   0x2   :  { %137 = vmatpush3.bf16.msra.mxu0 %v146_v1  ;;  %v148_v3 = vld [vmem:[%s194_s0] sm:$0xff]  }
   0x3   :  { %138 = vmatprep.subr.bf16.mxu0 %v149_v0  ;;  %v105_v6 = vshrl.u32 %v104_v4, 7  ;;  %v102_v8 = vld [vmem:[%s195_s2] sm:$0x1] }
   0x4   :  { %v103_v13 = vunpack.c.l.bf16 %v102_v8 }
   0x5   :  { %v106_v14 = vsub.s32 0, %v105_v6 }
   0x6   :  { %139 = vmatpush3.bf16.msra.mxu0 %v147_v2 }
   0x7   :  { %v107_v17 = vrot.slane %v103_v13, %v106_v14 }
   0x8   :  { %v24_v5 = vld [vmem:[#allocation2] sm:$0xff]  ;;  %v25_v9 = vld [vmem:[#allocation2 + $0x8] sm:$0xff] }
   0x9   :  { %141 = vmatmul.mubr.msk.bf16.vlgmr.msra.gmra.mrb[0].mxu0 %vm47_vm2, %v148_v3 }
  0xdc   :  { %v85_v7 = vpop.f32.mrb[0].mxu0 }
  0xdd   :  { %v92_v10 = vadd.f32 %v85_v7, %v24_v5  ;;  %v142_v11 = vpop.f32.mrb[1].mxu0 }
  0xde   :  { %v88_v12 = vpop.f32.mrb[2].mxu0 }
  0xdf   :  { %95 = vst.msk [vmem:[#allocation2] sm:$0xff] %vm19_vm0, %v92_v10  ;;  %v93_v15 = vadd.f32 %v88_v12, %v25_v9  ;;  %v143_v16 = vpop.f32.mrb[3].mxu0 }
  0xe1   :  { %96 = vst.msk [vmem:[#allocation2 + $0x8] sm:$0xff] %vm19_vm0, %v93_v15 }
  0xe6   :  { %v100_v18 = vld [vmem:[#allocation2] sm:$0xff] }
  0xe7   :  { %v108_v19 = vadd.f32 %v107_v17, %v100_v18 }
  0xe8   :  { %v101_v20 = vld [vmem:[#allocation2 + $0x8] sm:$0xff] }
  0xe9   :  { %v131_v21 = vpack.c.bf16 %v108_v19, %v108_v19  ;;  %v109_v22 = vadd.f32 %v107_v17, %v101_v20 }
  0xeb   :  { %119 = vst.msk [vmem:[%s196_s3] sm:$0xf] %vm118_vm3, %v131_v21  ;;  %v132_v23 = vpack.c.bf16 %v109_v22, %v109_v22 }
  0xed   :  { %120 = vst.msk [vmem:[%s196_s3 + $0x4] sm:$0xf] %vm118_vm3, %v132_v23 }

</bundles_post_ra>
